<compile_context>
chip_gen: v6e
topology: v6e:2x2x1
jax: 0.10.0
libtpu: 0.0.40
codegen_flags: <defaults>
</compile_context>

<pallas_src>
import functools

import jax
import jax.numpy as jnp
import numpy as np
from jax import lax
from jax.experimental import pallas as pl
from jax.experimental.pallas import tpu as pltpu


# ------------------------------ fused kernel --------------------------------


def _fused_kernel(x_ref, mask_ref, w1_ref, b1_ref, w2_ref, b2_ref, wf1_hbm,
                  bf1_ref, wf2_ref, bf2_ref, wf3_ref, bf3_ref,
                  o_ref,
                  col1_ref, a1_ref, col2_ref, a2_ref, m2_ref, fc1_ref,
                  wf1_vmem, wf1_sem, *, batch):
    NP = batch * 100        # padded 10x10 rows per image: rp = b*100 + py*10 + px
    HALO = 16               # activations sit at row offset 16 inside halo'd buffers

    # Kick off the big fc1-weight DMA immediately; it runs behind both convs and
    # the pooling phase and is awaited just before the fc1 matmul.
    wf1_copy = pltpu.make_async_copy(wf1_hbm, wf1_vmem, wf1_sem)
    wf1_copy.start()

    # Zero only the halo rows that shifted reads can touch.
    a1_ref[pl.ds(0, HALO), :] = jnp.zeros((HALO, 32), jnp.float32)
    a1_ref[pl.ds(HALO + NP, HALO), :] = jnp.zeros((HALO, 32), jnp.float32)
    a2_ref[pl.ds(NP, 16), :] = jnp.zeros((16, 64), jnp.float32)

    # Shifting the flattened padded rows by (dy-1)*10 + (dx-1) is a (dy,dx)
    # spatial shift; off-board taps land on zero padding rows, so no masks.
    shifts = [(dy - 1) * 10 + (dx - 1) for dy in range(3) for dx in range(3)]

    # ---------------- conv1: im2col (NP, 18) -> one MXU matmul ----------------
    for t, s in enumerate(shifts):
        col1_ref[:, t * 2:(t + 1) * 2] = x_ref[pl.ds(HALO + s, NP), :]
    a1 = jnp.dot(col1_ref[...].astype(jnp.bfloat16), w1_ref[...],
                 preferred_element_type=jnp.float32)
    a1 = jnp.maximum(a1 + b1_ref[...], 0.0)
    # Zero the 10x10 padding positions so conv2's shifted reads see true zeros.
    a1 = a1 * mask_ref[...]
    a1_ref[pl.ds(HALO, NP), :] = a1                       # (NP, 32)

    # ---------------- conv2: im2col (NP, 288) -> one MXU matmul ---------------
    for t, s in enumerate(shifts):
        col2_ref[:, t * 32:(t + 1) * 32] = a1_ref[pl.ds(HALO + s, NP), :]
    a2 = jnp.dot(col2_ref[...].astype(jnp.bfloat16), w2_ref[...],
                 preferred_element_type=jnp.float32)
    a2 = jnp.maximum(a2 + b2_ref[...], 0.0)
    a2_ref[pl.ds(0, NP), :] = a2                          # (NP, 64)

    # ------------- 2x2/stride-2 max-pool: 3 full-width maximums ---------------
    # m2[r] = max over rows {r, r+1, r+10, r+11}; the pooled value for output
    # position (b, yo, xo) is m2[b*100 + (2yo+1)*10 + (2xo+1)].
    m2 = jnp.maximum(
        jnp.maximum(a2_ref[pl.ds(0, NP), :], a2_ref[pl.ds(1, NP), :]),
        jnp.maximum(a2_ref[pl.ds(10, NP), :], a2_ref[pl.ds(11, NP), :]))
    m2_ref[...] = m2

    # ------- gather the 16 pooled rows/image into a lane-dense (B, 1024) ------
    # wf1 rows were permuted to (yo, xo, c) order at parameter-prep time, so the
    # NCHW flatten of the PyTorch module is already folded into the weight.
    for yo in range(4):
        for xo in range(4):
            p = yo * 4 + xo
            base = (2 * yo + 1) * 10 + (2 * xo + 1)
            fc1_ref[:, p * 64:(p + 1) * 64] = (
                m2_ref[pl.ds(base, batch, stride=100), :])

    # ---------------------------- fc head -------------------------------------
    wf1_copy.wait()                                       # prefetch done by now
    h1 = jnp.dot(fc1_ref[...].astype(jnp.bfloat16), wf1_vmem[...],
                 preferred_element_type=jnp.float32)
    h1 = jnp.maximum(h1 + bf1_ref[...], 0.0)              # (B, 128)
    h2 = jnp.dot(h1.astype(jnp.bfloat16), wf2_ref[...],
                 preferred_element_type=jnp.float32)
    h2 = jnp.maximum(h2 + bf2_ref[...], 0.0)              # (B, 64)
    out = jnp.dot(h2.astype(jnp.bfloat16), wf3_ref[...],
                  preferred_element_type=jnp.float32) + bf3_ref[...]
    o_ref[...] = out.astype(o_ref.dtype)


# ----------------------------- parameter prep --------------------------------


def _prepare_params(params):
    """One-time conversion of PyTorch-layout f32 params into kernel layout.

    Weight matrices are stored in bf16 (halves the dominant HBM transfer, feeds
    the MXU bf16 path); biases stay f32 for the elementwise adds.
    """
    def conv_w_2d(w_oihw):   # (Cout, Cin, 3, 3) -> (9*Cin, Cout), rows (dy, dx, cin)
        return (jnp.transpose(w_oihw, (2, 3, 1, 0))
                .reshape(-1, w_oihw.shape[0]).astype(jnp.bfloat16))

    # Fold the NCHW flatten order (c, yo, xo) -> (yo, xo, c) into fc1's rows.
    fc1_nhwc = (params["fc1_w"].reshape(64, 4, 4, 128)
                .transpose(1, 2, 0, 3).reshape(1024, 128))
    return {
        "w1": conv_w_2d(params["conv1_w"]),
        "b1": params["conv1_b"].reshape(1, -1),
        "w2": conv_w_2d(params["conv2_w"]),
        "b2": params["conv2_b"].reshape(1, -1),
        "wf1": fc1_nhwc.astype(jnp.bfloat16),
        "bf1": params["fc1_b"].reshape(1, -1),
        "wf2": params["fc2_w"].astype(jnp.bfloat16),
        "bf2": params["fc2_b"].reshape(1, -1),
        "wf3": params["fc3_w"].astype(jnp.bfloat16),
        "bf3": params["fc3_b"].reshape(1, -1),
    }


# --------------------------------- forward -----------------------------------


@jax.jit
def model_sl2_forward(x_nchw, kp):
    B = x_nchw.shape[0]
    NP = B * 100

    # Layout plumbing only (~2 KB): NCHW -> NHWC -> zero-padded 10x10 rows,
    # plus a 16-row zero halo so every shifted read stays in bounds.
    x_nhwc = jnp.transpose(x_nchw, (0, 2, 3, 1))                    # (B, 8, 8, 2)
    x_rows = jnp.pad(x_nhwc, ((0, 0), (1, 1), (1, 1), (0, 0))).reshape(NP, 2)
    x_rows = jnp.pad(x_rows, ((16, 16), (0, 0)))                    # (NP+32, 2)

    # (NP, 1) {0,1} mask of on-board rows in the padded layout (applied once to
    # conv1's output so conv2 reads true zeros at padding positions).
    iy = jnp.arange(10)
    ix = jnp.arange(10)
    inner = ((iy[:, None] >= 1) & (iy[:, None] <= 8)
             & (ix[None, :] >= 1) & (ix[None, :] <= 8)).astype(jnp.float32)
    mask = jnp.tile(inner.reshape(1, 100), (B, 1)).reshape(NP, 1)

    operands = (x_rows, mask, kp["w1"], kp["b1"], kp["w2"], kp["b2"], kp["wf1"],
                kp["bf1"], kp["wf2"], kp["bf2"], kp["wf3"], kp["bf3"])
    WF1_IDX = 6

    def _vmem_spec(a):
        return pl.BlockSpec(a.shape, lambda: (0,) * a.ndim)

    in_specs = [pl.BlockSpec(memory_space=pl.ANY) if i == WF1_IDX else _vmem_spec(a)
                for i, a in enumerate(operands)]

    return pl.pallas_call(
        functools.partial(_fused_kernel, batch=B),
        out_shape=jax.ShapeDtypeStruct((B, 64), jnp.float32),
        in_specs=in_specs,
        out_specs=pl.BlockSpec((B, 64), lambda: (0, 0)),
        scratch_shapes=[
            pltpu.VMEM((NP, 18), jnp.float32),        # conv1 im2col
            pltpu.VMEM((NP + 32, 32), jnp.float32),   # conv1 output (padded + halos)
            pltpu.VMEM((NP, 288), jnp.float32),       # conv2 im2col
            pltpu.VMEM((NP + 16, 64), jnp.float32),   # conv2 output (+ pooling halo)
            pltpu.VMEM((NP, 64), jnp.float32),        # pooled max buffer
            pltpu.VMEM((B, 1024), jnp.float32),       # gathered fc1 input
            pltpu.VMEM((1024, 128), jnp.bfloat16),    # wf1 prefetch destination
            pltpu.SemaphoreType.DMA(()),              # wf1 DMA completion
        ],
    )(*operands)


# ------------------------- pure-JAX reference check --------------------------


def reference_forward(x_nchw, params):
    dn = ("NCHW", "OIHW", "NCHW")
    y = lax.conv_general_dilated(x_nchw, params["conv1_w"], (1, 1), "SAME",
                                 dimension_numbers=dn)
    y = jax.nn.relu(y + params["conv1_b"][None, :, None, None])
    y = lax.conv_general_dilated(y, params["conv2_w"], (1, 1), "SAME",
                                 dimension_numbers=dn)
    y = jax.nn.relu(y + params["conv2_b"][None, :, None, None])
    y = lax.reduce_window(y, -jnp.inf, lax.max, (1, 1, 2, 2), (1, 1, 2, 2), "VALID")
    y = y.reshape(y.shape[0], -1)
    y = jax.nn.relu(y @ params["fc1_w"] + params["fc1_b"])
    y = jax.nn.relu(y @ params["fc2_w"] + params["fc2_b"])
    return y @ params["fc3_w"] + params["fc3_b"]


# ---------------------------------- driver -----------------------------------


def init_params(key):
    ks = jax.random.split(key, 10)

    def w(k, shape, fan_in):
        return (jax.random.normal(k, shape, jnp.float32) / np.sqrt(fan_in)).astype(jnp.float32)

    return {
        "conv1_w": w(ks[0], (32, 2, 3, 3), 2 * 9),
        "conv1_b": w(ks[1], (32,), 2 * 9),
        "conv2_w": w(ks[2], (64, 32, 3, 3), 32 * 9),
        "conv2_b": w(ks[3], (64,), 32 * 9),
        "fc1_w": w(ks[4], (1024, 128), 1024),   # stored (in, out); PyTorch uses (out, in).T
        "fc1_b": w(ks[5], (128,), 1024),
        "fc2_w": w(ks[6], (128, 64), 128),
        "fc2_b": w(ks[7], (64,), 128),
        "fc3_w": w(ks[8], (64, 64), 64),
        "fc3_b": w(ks[9], (64,), 64),
    }


if __name__ == "__main__":
    key = jax.random.PRNGKey(0)
    pkey, xkey = jax.random.split(key)
    params = init_params(pkey)
    kparams = _prepare_params(params)        # one-time, outside the jitted forward

    # Reversi-style input: batch=2, 2 channels, 8x8 board (NCHW like the PyTorch module).
    x = jax.random.normal(xkey, (2, 2, 8, 8), jnp.float32)

    out = jax.block_until_ready(model_sl2_forward(x, kparams))

    # Tolerance loosened (review item): weights are intentionally bf16 on the MXU
    # path; accumulation stays f32, so ~1% relative error is expected.
    ref = jax.block_until_ready(reference_forward(x, params))
    np.testing.assert_allclose(np.asarray(out), np.asarray(ref), rtol=3e-2, atol=3e-2)
    assert out.shape == (2, 64)

    print("KERNEL_OK")
</pallas_src>

<mosaic_0001>
module attributes {stable_mosaic.version = 11 : i64} {
  func.func @_fused_kernel(%arg0: memref<232x2xf32, #tpu.memory_space<vmem>>, %arg1: memref<200x1xf32, #tpu.memory_space<vmem>>, %arg2: memref<18x32xbf16, #tpu.memory_space<vmem>>, %arg3: memref<1x32xf32, #tpu.memory_space<vmem>>, %arg4: memref<288x64xbf16, #tpu.memory_space<vmem>>, %arg5: memref<1x64xf32, #tpu.memory_space<vmem>>, %arg6: memref<1024x128xbf16, #tpu.memory_space<any>>, %arg7: memref<1x128xf32, #tpu.memory_space<vmem>>, %arg8: memref<128x64xbf16, #tpu.memory_space<vmem>>, %arg9: memref<1x64xf32, #tpu.memory_space<vmem>>, %arg10: memref<64x64xbf16, #tpu.memory_space<vmem>>, %arg11: memref<1x64xf32, #tpu.memory_space<vmem>>, %arg12: memref<2x64xf32, #tpu.memory_space<vmem>>, %arg13: memref<200x18xf32, #tpu.memory_space<vmem>>, %arg14: memref<232x32xf32, #tpu.memory_space<vmem>>, %arg15: memref<200x288xf32, #tpu.memory_space<vmem>>, %arg16: memref<216x64xf32, #tpu.memory_space<vmem>>, %arg17: memref<200x64xf32, #tpu.memory_space<vmem>>, %arg18: memref<2x1024xf32, #tpu.memory_space<vmem>>, %arg19: memref<1024x128xbf16, #tpu.memory_space<vmem>>, %arg20: memref<!tpu.dma_semaphore, #tpu.memory_space<semaphore_mem>>) attributes {dimension_semantics = [], scalar_prefetch = 0 : i64, scratch_operands = 8 : i64, tpu.core_type = #tpu.core_type<tc>} {
    tpu.enqueue_dma source(%arg6 : memref<1024x128xbf16, #tpu.memory_space<any>>) target(%arg19 : memref<1024x128xbf16, #tpu.memory_space<vmem>>) target_semaphore(%arg20 : memref<!tpu.dma_semaphore, #tpu.memory_space<semaphore_mem>>)
    %cst = arith.constant 0.000000e+00 : f32
    %0 = vector.broadcast %cst : f32 to vector<16x32xf32>
    %c0 = arith.constant 0 : index
    %c0_0 = arith.constant 0 : index
    %1 = vector.load %arg14[%c0, %c0_0] : memref<232x32xf32, #tpu.memory_space<vmem>>, vector<16x32xf32>
    tpu.vector_store %arg14[%c0, %c0_0], %0 {strides = array<i32>} : memref<232x32xf32, #tpu.memory_space<vmem>>, vector<16x32xf32>,
    %cst_1 = arith.constant 0.000000e+00 : f32
    %2 = vector.broadcast %cst_1 : f32 to vector<16x32xf32>
    %c216 = arith.constant 216 : index
    %c0_2 = arith.constant 0 : index
    %3 = vector.load %arg14[%c216, %c0_2] : memref<232x32xf32, #tpu.memory_space<vmem>>, vector<16x32xf32>
    tpu.vector_store %arg14[%c216, %c0_2], %2 {strides = array<i32>} : memref<232x32xf32, #tpu.memory_space<vmem>>, vector<16x32xf32>,
    %cst_3 = arith.constant 0.000000e+00 : f32
    %4 = vector.broadcast %cst_3 : f32 to vector<16x64xf32>
    %c200 = arith.constant 200 : index
    %c0_4 = arith.constant 0 : index
    %5 = vector.load %arg16[%c200, %c0_4] : memref<216x64xf32, #tpu.memory_space<vmem>>, vector<16x64xf32>
    tpu.vector_store %arg16[%c200, %c0_4], %4 {strides = array<i32>} : memref<216x64xf32, #tpu.memory_space<vmem>>, vector<16x64xf32>,
    %c5 = arith.constant 5 : index
    %c0_5 = arith.constant 0 : index
    %6 = vector.load %arg0[%c5, %c0_5] : memref<232x2xf32, #tpu.memory_space<vmem>>, vector<200x2xf32>
    %c0_6 = arith.constant 0 : index
    %c0_7 = arith.constant 0 : index
    %7 = vector.load %arg13[%c0_6, %c0_7] : memref<200x18xf32, #tpu.memory_space<vmem>>, vector<200x2xf32>
    tpu.vector_store %arg13[%c0_6, %c0_7], %6 {strides = array<i32>} : memref<200x18xf32, #tpu.memory_space<vmem>>, vector<200x2xf32>,
    %c6 = arith.constant 6 : index
    %c0_8 = arith.constant 0 : index
    %8 = vector.load %arg0[%c6, %c0_8] : memref<232x2xf32, #tpu.memory_space<vmem>>, vector<200x2xf32>
    %c0_9 = arith.constant 0 : index
    %c2 = arith.constant 2 : index
    %9 = vector.load %arg13[%c0_9, %c2] : memref<200x18xf32, #tpu.memory_space<vmem>>, vector<200x2xf32>
    tpu.vector_store %arg13[%c0_9, %c2], %8 {strides = array<i32>} : memref<200x18xf32, #tpu.memory_space<vmem>>, vector<200x2xf32>,
    %c7 = arith.constant 7 : index
    %c0_10 = arith.constant 0 : index
    %10 = vector.load %arg0[%c7, %c0_10] : memref<232x2xf32, #tpu.memory_space<vmem>>, vector<200x2xf32>
    %c0_11 = arith.constant 0 : index
    %c4 = arith.constant 4 : index
    %11 = vector.load %arg13[%c0_11, %c4] : memref<200x18xf32, #tpu.memory_space<vmem>>, vector<200x2xf32>
    tpu.vector_store %arg13[%c0_11, %c4], %10 {strides = array<i32>} : memref<200x18xf32, #tpu.memory_space<vmem>>, vector<200x2xf32>,
    %c15 = arith.constant 15 : index
    %c0_12 = arith.constant 0 : index
    %12 = vector.load %arg0[%c15, %c0_12] : memref<232x2xf32, #tpu.memory_space<vmem>>, vector<200x2xf32>
    %c0_13 = arith.constant 0 : index
    %c6_14 = arith.constant 6 : index
    %13 = vector.load %arg13[%c0_13, %c6_14] : memref<200x18xf32, #tpu.memory_space<vmem>>, vector<200x2xf32>
    tpu.vector_store %arg13[%c0_13, %c6_14], %12 {strides = array<i32>} : memref<200x18xf32, #tpu.memory_space<vmem>>, vector<200x2xf32>,
    %c16 = arith.constant 16 : index
    %c0_15 = arith.constant 0 : index
    %14 = vector.load %arg0[%c16, %c0_15] : memref<232x2xf32, #tpu.memory_space<vmem>>, vector<200x2xf32>
    %c0_16 = arith.constant 0 : index
    %c8 = arith.constant 8 : index
    %15 = vector.load %arg13[%c0_16, %c8] : memref<200x18xf32, #tpu.memory_space<vmem>>, vector<200x2xf32>
    tpu.vector_store %arg13[%c0_16, %c8], %14 {strides = array<i32>} : memref<200x18xf32, #tpu.memory_space<vmem>>, vector<200x2xf32>,
    %c17 = arith.constant 17 : index
    %c0_17 = arith.constant 0 : index
    %16 = vector.load %arg0[%c17, %c0_17] : memref<232x2xf32, #tpu.memory_space<vmem>>, vector<200x2xf32>
    %c0_18 = arith.constant 0 : index
    %c10 = arith.constant 10 : index
    %17 = vector.load %arg13[%c0_18, %c10] : memref<200x18xf32, #tpu.memory_space<vmem>>, vector<200x2xf32>
    tpu.vector_store %arg13[%c0_18, %c10], %16 {strides = array<i32>} : memref<200x18xf32, #tpu.memory_space<vmem>>, vector<200x2xf32>,
    %c25 = arith.constant 25 : index
    %c0_19 = arith.constant 0 : index
    %18 = vector.load %arg0[%c25, %c0_19] : memref<232x2xf32, #tpu.memory_space<vmem>>, vector<200x2xf32>
    %c0_20 = arith.constant 0 : index
    %c12 = arith.constant 12 : index
    %19 = vector.load %arg13[%c0_20, %c12] : memref<200x18xf32, #tpu.memory_space<vmem>>, vector<200x2xf32>
    tpu.vector_store %arg13[%c0_20, %c12], %18 {strides = array<i32>} : memref<200x18xf32, #tpu.memory_space<vmem>>, vector<200x2xf32>,
    %c26 = arith.constant 26 : index
    %c0_21 = arith.constant 0 : index
    %20 = vector.load %arg0[%c26, %c0_21] : memref<232x2xf32, #tpu.memory_space<vmem>>, vector<200x2xf32>
    %c0_22 = arith.constant 0 : index
    %c14 = arith.constant 14 : index
    %21 = vector.load %arg13[%c0_22, %c14] : memref<200x18xf32, #tpu.memory_space<vmem>>, vector<200x2xf32>
    tpu.vector_store %arg13[%c0_22, %c14], %20 {strides = array<i32>} : memref<200x18xf32, #tpu.memory_space<vmem>>, vector<200x2xf32>,
    %c27 = arith.constant 27 : index
    %c0_23 = arith.constant 0 : index
    %22 = vector.load %arg0[%c27, %c0_23] : memref<232x2xf32, #tpu.memory_space<vmem>>, vector<200x2xf32>
    %c0_24 = arith.constant 0 : index
    %c16_25 = arith.constant 16 : index
    %23 = vector.load %arg13[%c0_24, %c16_25] : memref<200x18xf32, #tpu.memory_space<vmem>>, vector<200x2xf32>
    tpu.vector_store %arg13[%c0_24, %c16_25], %22 {strides = array<i32>} : memref<200x18xf32, #tpu.memory_space<vmem>>, vector<200x2xf32>,
    %c0_26 = arith.constant 0 : index
    %c0_27 = arith.constant 0 : index
    %24 = vector.load %arg13[%c0_26, %c0_27] : memref<200x18xf32, #tpu.memory_space<vmem>>, vector<200x18xf32>
    %25 = arith.truncf %24 : vector<200x18xf32> to vector<200x18xbf16>
    %c0_28 = arith.constant 0 : index
    %c0_29 = arith.constant 0 : index
    %26 = vector.load %arg2[%c0_28, %c0_29] : memref<18x32xbf16, #tpu.memory_space<vmem>>, vector<18x32xbf16>
    %cst_30 = arith.constant dense<0.000000e+00> : vector<200x32xf32>
    %27 = tpu.matmul %25, %26, %cst_30 {dimension_numbers = #tpu.dot_dimension_numbers<[1], [0], [0], [1], [0, 0, 1, 1], [], []>} : vector<200x18xbf16>, vector<18x32xbf16>, vector<200x32xf32> -> vector<200x32xf32>
    %c0_31 = arith.constant 0 : index
    %c0_32 = arith.constant 0 : index
    %28 = vector.load %arg3[%c0_31, %c0_32] : memref<1x32xf32, #tpu.memory_space<vmem>>, vector<1x32xf32>
    %29 = vector.broadcast %28 : vector<1x32xf32> to vector<200x32xf32>
    %30 = arith.addf %27, %29 : vector<200x32xf32>
    %cst_33 = arith.constant 0.000000e+00 : f32
    %31 = vector.broadcast %cst_33 : f32 to vector<200x32xf32>
    %32 = arith.maximumf %30, %31 : vector<200x32xf32>
    %c0_34 = arith.constant 0 : index
    %c0_35 = arith.constant 0 : index
    %33 = vector.load %arg1[%c0_34, %c0_35] : memref<200x1xf32, #tpu.memory_space<vmem>>, vector<200x1xf32>
    %34 = vector.broadcast %33 : vector<200x1xf32> to vector<200x32xf32>
    %35 = arith.mulf %32, %34 : vector<200x32xf32>
    %c16_36 = arith.constant 16 : index
    %c0_37 = arith.constant 0 : index
    %36 = vector.load %arg14[%c16_36, %c0_37] : memref<232x32xf32, #tpu.memory_space<vmem>>, vector<200x32xf32>
    tpu.vector_store %arg14[%c16_36, %c0_37], %35 {strides = array<i32>} : memref<232x32xf32, #tpu.memory_space<vmem>>, vector<200x32xf32>,
    %c5_38 = arith.constant 5 : index
    %c0_39 = arith.constant 0 : index
    %37 = vector.load %arg14[%c5_38, %c0_39] : memref<232x32xf32, #tpu.memory_space<vmem>>, vector<200x32xf32>
    %c0_40 = arith.constant 0 : index
    %c0_41 = arith.constant 0 : index
    %38 = vector.load %arg15[%c0_40, %c0_41] : memref<200x288xf32, #tpu.memory_space<vmem>>, vector<200x32xf32>
    tpu.vector_store %arg15[%c0_40, %c0_41], %37 {strides = array<i32>} : memref<200x288xf32, #tpu.memory_space<vmem>>, vector<200x32xf32>,
    %c6_42 = arith.constant 6 : index
    %c0_43 = arith.constant 0 : index
    %39 = vector.load %arg14[%c6_42, %c0_43] : memref<232x32xf32, #tpu.memory_space<vmem>>, vector<200x32xf32>
    %c0_44 = arith.constant 0 : index
    %c32 = arith.constant 32 : index
    %40 = vector.load %arg15[%c0_44, %c32] : memref<200x288xf32, #tpu.memory_space<vmem>>, vector<200x32xf32>
    tpu.vector_store %arg15[%c0_44, %c32], %39 {strides = array<i32>} : memref<200x288xf32, #tpu.memory_space<vmem>>, vector<200x32xf32>,
    %c7_45 = arith.constant 7 : index
    %c0_46 = arith.constant 0 : index
    %41 = vector.load %arg14[%c7_45, %c0_46] : memref<232x32xf32, #tpu.memory_space<vmem>>, vector<200x32xf32>
    %c0_47 = arith.constant 0 : index
    %c64 = arith.constant 64 : index
    %42 = vector.load %arg15[%c0_47, %c64] : memref<200x288xf32, #tpu.memory_space<vmem>>, vector<200x32xf32>
    tpu.vector_store %arg15[%c0_47, %c64], %41 {strides = array<i32>} : memref<200x288xf32, #tpu.memory_space<vmem>>, vector<200x32xf32>,
    %c15_48 = arith.constant 15 : index
    %c0_49 = arith.constant 0 : index
    %43 = vector.load %arg14[%c15_48, %c0_49] : memref<232x32xf32, #tpu.memory_space<vmem>>, vector<200x32xf32>
    %c0_50 = arith.constant 0 : index
    %c96 = arith.constant 96 : index
    %44 = vector.load %arg15[%c0_50, %c96] : memref<200x288xf32, #tpu.memory_space<vmem>>, vector<200x32xf32>
    tpu.vector_store %arg15[%c0_50, %c96], %43 {strides = array<i32>} : memref<200x288xf32, #tpu.memory_space<vmem>>, vector<200x32xf32>,
    %c16_51 = arith.constant 16 : index
    %c0_52 = arith.constant 0 : index
    %45 = vector.load %arg14[%c16_51, %c0_52] : memref<232x32xf32, #tpu.memory_space<vmem>>, vector<200x32xf32>
    %c0_53 = arith.constant 0 : index
    %c128 = arith.constant 128 : index
    %46 = vector.load %arg15[%c0_53, %c128] : memref<200x288xf32, #tpu.memory_space<vmem>>, vector<200x32xf32>
    tpu.vector_store %arg15[%c0_53, %c128], %45 {strides = array<i32>} : memref<200x288xf32, #tpu.memory_space<vmem>>, vector<200x32xf32>,
    %c17_54 = arith.constant 17 : index
    %c0_55 = arith.constant 0 : index
    %47 = vector.load %arg14[%c17_54, %c0_55] : memref<232x32xf32, #tpu.memory_space<vmem>>, vector<200x32xf32>
    %c0_56 = arith.constant 0 : index
    %c160 = arith.constant 160 : index
    %48 = vector.load %arg15[%c0_56, %c160] : memref<200x288xf32, #tpu.memory_space<vmem>>, vector<200x32xf32>
    tpu.vector_store %arg15[%c0_56, %c160], %47 {strides = array<i32>} : memref<200x288xf32, #tpu.memory_space<vmem>>, vector<200x32xf32>,
    %c25_57 = arith.constant 25 : index
    %c0_58 = arith.constant 0 : index
    %49 = vector.load %arg14[%c25_57, %c0_58] : memref<232x32xf32, #tpu.memory_space<vmem>>, vector<200x32xf32>
    %c0_59 = arith.constant 0 : index
    %c192 = arith.constant 192 : index
    %50 = vector.load %arg15[%c0_59, %c192] : memref<200x288xf32, #tpu.memory_space<vmem>>, vector<200x32xf32>
    tpu.vector_store %arg15[%c0_59, %c192], %49 {strides = array<i32>} : memref<200x288xf32, #tpu.memory_space<vmem>>, vector<200x32xf32>,
    %c26_60 = arith.constant 26 : index
    %c0_61 = arith.constant 0 : index
    %51 = vector.load %arg14[%c26_60, %c0_61] : memref<232x32xf32, #tpu.memory_space<vmem>>, vector<200x32xf32>
    %c0_62 = arith.constant 0 : index
    %c224 = arith.constant 224 : index
    %52 = vector.load %arg15[%c0_62, %c224] : memref<200x288xf32, #tpu.memory_space<vmem>>, vector<200x32xf32>
    tpu.vector_store %arg15[%c0_62, %c224], %51 {strides = array<i32>} : memref<200x288xf32, #tpu.memory_space<vmem>>, vector<200x32xf32>,
    %c27_63 = arith.constant 27 : index
    %c0_64 = arith.constant 0 : index
    %53 = vector.load %arg14[%c27_63, %c0_64] : memref<232x32xf32, #tpu.memory_space<vmem>>, vector<200x32xf32>
    %c0_65 = arith.constant 0 : index
    %c256 = arith.constant 256 : index
    %54 = vector.load %arg15[%c0_65, %c256] : memref<200x288xf32, #tpu.memory_space<vmem>>, vector<200x32xf32>
    tpu.vector_store %arg15[%c0_65, %c256], %53 {strides = array<i32>} : memref<200x288xf32, #tpu.memory_space<vmem>>, vector<200x32xf32>,
    %c0_66 = arith.constant 0 : index
    %c0_67 = arith.constant 0 : index
    %55 = vector.load %arg15[%c0_66, %c0_67] : memref<200x288xf32, #tpu.memory_space<vmem>>, vector<200x288xf32>
    %56 = arith.truncf %55 : vector<200x288xf32> to vector<200x288xbf16>
    %c0_68 = arith.constant 0 : index
    %c0_69 = arith.constant 0 : index
    %57 = vector.load %arg4[%c0_68, %c0_69] : memref<288x64xbf16, #tpu.memory_space<vmem>>, vector<288x64xbf16>
    %cst_70 = arith.constant dense<0.000000e+00> : vector<200x64xf32>
    %58 = tpu.matmul %56, %57, %cst_70 {dimension_numbers = #tpu.dot_dimension_numbers<[1], [0], [0], [1], [0, 0, 1, 1], [], []>} : vector<200x288xbf16>, vector<288x64xbf16>, vector<200x64xf32> -> vector<200x64xf32>
    %c0_71 = arith.constant 0 : index
    %c0_72 = arith.constant 0 : index
    %59 = vector.load %arg5[%c0_71, %c0_72] : memref<1x64xf32, #tpu.memory_space<vmem>>, vector<1x64xf32>
    %60 = vector.broadcast %59 : vector<1x64xf32> to vector<200x64xf32>
    %61 = arith.addf %58, %60 : vector<200x64xf32>
    %cst_73 = arith.constant 0.000000e+00 : f32
    %62 = vector.broadcast %cst_73 : f32 to vector<200x64xf32>
    %63 = arith.maximumf %61, %62 : vector<200x64xf32>
    %c0_74 = arith.constant 0 : index
    %c0_75 = arith.constant 0 : index
    %64 = vector.load %arg16[%c0_74, %c0_75] : memref<216x64xf32, #tpu.memory_space<vmem>>, vector<200x64xf32>
    tpu.vector_store %arg16[%c0_74, %c0_75], %63 {strides = array<i32>} : memref<216x64xf32, #tpu.memory_space<vmem>>, vector<200x64xf32>,
    %c0_76 = arith.constant 0 : index
    %c0_77 = arith.constant 0 : index
    %65 = vector.load %arg16[%c0_76, %c0_77] : memref<216x64xf32, #tpu.memory_space<vmem>>, vector<200x64xf32>
    %c1 = arith.constant 1 : index
    %c0_78 = arith.constant 0 : index
    %66 = vector.load %arg16[%c1, %c0_78] : memref<216x64xf32, #tpu.memory_space<vmem>>, vector<200x64xf32>
    %67 = arith.maximumf %65, %66 : vector<200x64xf32>
    %c10_79 = arith.constant 10 : index
    %c0_80 = arith.constant 0 : index
    %68 = vector.load %arg16[%c10_79, %c0_80] : memref<216x64xf32, #tpu.memory_space<vmem>>, vector<200x64xf32>
    %c11 = arith.constant 11 : index
    %c0_81 = arith.constant 0 : index
    %69 = vector.load %arg16[%c11, %c0_81] : memref<216x64xf32, #tpu.memory_space<vmem>>, vector<200x64xf32>
    %70 = arith.maximumf %68, %69 : vector<200x64xf32>
    %71 = arith.maximumf %67, %70 : vector<200x64xf32>
    %c0_82 = arith.constant 0 : index
    %c0_83 = arith.constant 0 : index
    %72 = vector.load %arg17[%c0_82, %c0_83] : memref<200x64xf32, #tpu.memory_space<vmem>>, vector<200x64xf32>
    tpu.vector_store %arg17[%c0_82, %c0_83], %71 {strides = array<i32>} : memref<200x64xf32, #tpu.memory_space<vmem>>, vector<200x64xf32>,
    %c11_84 = arith.constant 11 : index
    %c0_85 = arith.constant 0 : index
    %73 = tpu.strided_load %arg17[%c11_84, %c0_85] {strides = array<i32: 100, 1>} : memref<200x64xf32, #tpu.memory_space<vmem>>, vector<2x64xf32>
    %c0_86 = arith.constant 0 : index
    %c0_87 = arith.constant 0 : index
    %74 = vector.load %arg18[%c0_86, %c0_87] : memref<2x1024xf32, #tpu.memory_space<vmem>>, vector<2x64xf32>
    tpu.vector_store %arg18[%c0_86, %c0_87], %73 {strides = array<i32>} : memref<2x1024xf32, #tpu.memory_space<vmem>>, vector<2x64xf32>,
    %c13 = arith.constant 13 : index
    %c0_88 = arith.constant 0 : index
    %75 = tpu.strided_load %arg17[%c13, %c0_88] {strides = array<i32: 100, 1>} : memref<200x64xf32, #tpu.memory_space<vmem>>, vector<2x64xf32>
    %c0_89 = arith.constant 0 : index
    %c64_90 = arith.constant 64 : index
    %76 = vector.load %arg18[%c0_89, %c64_90] : memref<2x1024xf32, #tpu.memory_space<vmem>>, vector<2x64xf32>
    tpu.vector_store %arg18[%c0_89, %c64_90], %75 {strides = array<i32>} : memref<2x1024xf32, #tpu.memory_space<vmem>>, vector<2x64xf32>,
    %c15_91 = arith.constant 15 : index
    %c0_92 = arith.constant 0 : index
    %77 = tpu.strided_load %arg17[%c15_91, %c0_92] {strides = array<i32: 100, 1>} : memref<200x64xf32, #tpu.memory_space<vmem>>, vector<2x64xf32>
    %c0_93 = arith.constant 0 : index
    %c128_94 = arith.constant 128 : index
    %78 = vector.load %arg18[%c0_93, %c128_94] : memref<2x1024xf32, #tpu.memory_space<vmem>>, vector<2x64xf32>
    tpu.vector_store %arg18[%c0_93, %c128_94], %77 {strides = array<i32>} : memref<2x1024xf32, #tpu.memory_space<vmem>>, vector<2x64xf32>,
    %c17_95 = arith.constant 17 : index
    %c0_96 = arith.constant 0 : index
    %79 = tpu.strided_load %arg17[%c17_95, %c0_96] {strides = array<i32: 100, 1>} : memref<200x64xf32, #tpu.memory_space<vmem>>, vector<2x64xf32>
    %c0_97 = arith.constant 0 : index
    %c192_98 = arith.constant 192 : index
    %80 = vector.load %arg18[%c0_97, %c192_98] : memref<2x1024xf32, #tpu.memory_space<vmem>>, vector<2x64xf32>
    tpu.vector_store %arg18[%c0_97, %c192_98], %79 {strides = array<i32>} : memref<2x1024xf32, #tpu.memory_space<vmem>>, vector<2x64xf32>,
    %c31 = arith.constant 31 : index
    %c0_99 = arith.constant 0 : index
    %81 = tpu.strided_load %arg17[%c31, %c0_99] {strides = array<i32: 100, 1>} : memref<200x64xf32, #tpu.memory_space<vmem>>, vector<2x64xf32>
    %c0_100 = arith.constant 0 : index
    %c256_101 = arith.constant 256 : index
    %82 = vector.load %arg18[%c0_100, %c256_101] : memref<2x1024xf32, #tpu.memory_space<vmem>>, vector<2x64xf32>
    tpu.vector_store %arg18[%c0_100, %c256_101], %81 {strides = array<i32>} : memref<2x1024xf32, #tpu.memory_space<vmem>>, vector<2x64xf32>,
    %c33 = arith.constant 33 : index
    %c0_102 = arith.constant 0 : index
    %83 = tpu.strided_load %arg17[%c33, %c0_102] {strides = array<i32: 100, 1>} : memref<200x64xf32, #tpu.memory_space<vmem>>, vector<2x64xf32>
    %c0_103 = arith.constant 0 : index
    %c320 = arith.constant 320 : index
    %84 = vector.load %arg18[%c0_103, %c320] : memref<2x1024xf32, #tpu.memory_space<vmem>>, vector<2x64xf32>
    tpu.vector_store %arg18[%c0_103, %c320], %83 {strides = array<i32>} : memref<2x1024xf32, #tpu.memory_space<vmem>>, vector<2x64xf32>,
    %c35 = arith.constant 35 : index
    %c0_104 = arith.constant 0 : index
    %85 = tpu.strided_load %arg17[%c35, %c0_104] {strides = array<i32: 100, 1>} : memref<200x64xf32, #tpu.memory_space<vmem>>, vector<2x64xf32>
    %c0_105 = arith.constant 0 : index
    %c384 = arith.constant 384 : index
    %86 = vector.load %arg18[%c0_105, %c384] : memref<2x1024xf32, #tpu.memory_space<vmem>>, vector<2x64xf32>
    tpu.vector_store %arg18[%c0_105, %c384], %85 {strides = array<i32>} : memref<2x1024xf32, #tpu.memory_space<vmem>>, vector<2x64xf32>,
    %c37 = arith.constant 37 : index
    %c0_106 = arith.constant 0 : index
    %87 = tpu.strided_load %arg17[%c37, %c0_106] {strides = array<i32: 100, 1>} : memref<200x64xf32, #tpu.memory_space<vmem>>, vector<2x64xf32>
    %c0_107 = arith.constant 0 : index
    %c448 = arith.constant 448 : index
    %88 = vector.load %arg18[%c0_107, %c448] : memref<2x1024xf32, #tpu.memory_space<vmem>>, vector<2x64xf32>
    tpu.vector_store %arg18[%c0_107, %c448], %87 {strides = array<i32>} : memref<2x1024xf32, #tpu.memory_space<vmem>>, vector<2x64xf32>,
    %c51 = arith.constant 51 : index
    %c0_108 = arith.constant 0 : index
    %89 = tpu.strided_load %arg17[%c51, %c0_108] {strides = array<i32: 100, 1>} : memref<200x64xf32, #tpu.memory_space<vmem>>, vector<2x64xf32>
    %c0_109 = arith.constant 0 : index
    %c512 = arith.constant 512 : index
    %90 = vector.load %arg18[%c0_109, %c512] : memref<2x1024xf32, #tpu.memory_space<vmem>>, vector<2x64xf32>
    tpu.vector_store %arg18[%c0_109, %c512], %89 {strides = array<i32>} : memref<2x1024xf32, #tpu.memory_space<vmem>>, vector<2x64xf32>,
    %c53 = arith.constant 53 : index
    %c0_110 = arith.constant 0 : index
    %91 = tpu.strided_load %arg17[%c53, %c0_110] {strides = array<i32: 100, 1>} : memref<200x64xf32, #tpu.memory_space<vmem>>, vector<2x64xf32>
    %c0_111 = arith.constant 0 : index
    %c576 = arith.constant 576 : index
    %92 = vector.load %arg18[%c0_111, %c576] : memref<2x1024xf32, #tpu.memory_space<vmem>>, vector<2x64xf32>
    tpu.vector_store %arg18[%c0_111, %c576], %91 {strides = array<i32>} : memref<2x1024xf32, #tpu.memory_space<vmem>>, vector<2x64xf32>,
    %c55 = arith.constant 55 : index
    %c0_112 = arith.constant 0 : index
    %93 = tpu.strided_load %arg17[%c55, %c0_112] {strides = array<i32: 100, 1>} : memref<200x64xf32, #tpu.memory_space<vmem>>, vector<2x64xf32>
    %c0_113 = arith.constant 0 : index
    %c640 = arith.constant 640 : index
    %94 = vector.load %arg18[%c0_113, %c640] : memref<2x1024xf32, #tpu.memory_space<vmem>>, vector<2x64xf32>
    tpu.vector_store %arg18[%c0_113, %c640], %93 {strides = array<i32>} : memref<2x1024xf32, #tpu.memory_space<vmem>>, vector<2x64xf32>,
    %c57 = arith.constant 57 : index
    %c0_114 = arith.constant 0 : index
    %95 = tpu.strided_load %arg17[%c57, %c0_114] {strides = array<i32: 100, 1>} : memref<200x64xf32, #tpu.memory_space<vmem>>, vector<2x64xf32>
    %c0_115 = arith.constant 0 : index
    %c704 = arith.constant 704 : index
    %96 = vector.load %arg18[%c0_115, %c704] : memref<2x1024xf32, #tpu.memory_space<vmem>>, vector<2x64xf32>
    tpu.vector_store %arg18[%c0_115, %c704], %95 {strides = array<i32>} : memref<2x1024xf32, #tpu.memory_space<vmem>>, vector<2x64xf32>,
    %c71 = arith.constant 71 : index
    %c0_116 = arith.constant 0 : index
    %97 = tpu.strided_load %arg17[%c71, %c0_116] {strides = array<i32: 100, 1>} : memref<200x64xf32, #tpu.memory_space<vmem>>, vector<2x64xf32>
    %c0_117 = arith.constant 0 : index
    %c768 = arith.constant 768 : index
    %98 = vector.load %arg18[%c0_117, %c768] : memref<2x1024xf32, #tpu.memory_space<vmem>>, vector<2x64xf32>
    tpu.vector_store %arg18[%c0_117, %c768], %97 {strides = array<i32>} : memref<2x1024xf32, #tpu.memory_space<vmem>>, vector<2x64xf32>,
    %c73 = arith.constant 73 : index
    %c0_118 = arith.constant 0 : index
    %99 = tpu.strided_load %arg17[%c73, %c0_118] {strides = array<i32: 100, 1>} : memref<200x64xf32, #tpu.memory_space<vmem>>, vector<2x64xf32>
    %c0_119 = arith.constant 0 : index
    %c832 = arith.constant 832 : index
    %100 = vector.load %arg18[%c0_119, %c832] : memref<2x1024xf32, #tpu.memory_space<vmem>>, vector<2x64xf32>
    tpu.vector_store %arg18[%c0_119, %c832], %99 {strides = array<i32>} : memref<2x1024xf32, #tpu.memory_space<vmem>>, vector<2x64xf32>,
    %c75 = arith.constant 75 : index
    %c0_120 = arith.constant 0 : index
    %101 = tpu.strided_load %arg17[%c75, %c0_120] {strides = array<i32: 100, 1>} : memref<200x64xf32, #tpu.memory_space<vmem>>, vector<2x64xf32>
    %c0_121 = arith.constant 0 : index
    %c896 = arith.constant 896 : index
    %102 = vector.load %arg18[%c0_121, %c896] : memref<2x1024xf32, #tpu.memory_space<vmem>>, vector<2x64xf32>
    tpu.vector_store %arg18[%c0_121, %c896], %101 {strides = array<i32>} : memref<2x1024xf32, #tpu.memory_space<vmem>>, vector<2x64xf32>,
    %c77 = arith.constant 77 : index
    %c0_122 = arith.constant 0 : index
    %103 = tpu.strided_load %arg17[%c77, %c0_122] {strides = array<i32: 100, 1>} : memref<200x64xf32, #tpu.memory_space<vmem>>, vector<2x64xf32>
    %c0_123 = arith.constant 0 : index
    %c960 = arith.constant 960 : index
    %104 = vector.load %arg18[%c0_123, %c960] : memref<2x1024xf32, #tpu.memory_space<vmem>>, vector<2x64xf32>
    tpu.vector_store %arg18[%c0_123, %c960], %103 {strides = array<i32>} : memref<2x1024xf32, #tpu.memory_space<vmem>>, vector<2x64xf32>,
    tpu.wait_dma2 semaphore(%arg20 : memref<!tpu.dma_semaphore, #tpu.memory_space<semaphore_mem>>) src(%arg6 : memref<1024x128xbf16, #tpu.memory_space<any>>) dst(%arg19 : memref<1024x128xbf16, #tpu.memory_space<vmem>>)
    %c0_124 = arith.constant 0 : index
    %c0_125 = arith.constant 0 : index
    %105 = vector.load %arg18[%c0_124, %c0_125] : memref<2x1024xf32, #tpu.memory_space<vmem>>, vector<2x1024xf32>
    %106 = arith.truncf %105 : vector<2x1024xf32> to vector<2x1024xbf16>
    %c0_126 = arith.constant 0 : index
    %c0_127 = arith.constant 0 : index
    %107 = vector.load %arg19[%c0_126, %c0_127] : memref<1024x128xbf16, #tpu.memory_space<vmem>>, vector<1024x128xbf16>
    %cst_128 = arith.constant dense<0.000000e+00> : vector<2x128xf32>
    %108 = tpu.matmul %106, %107, %cst_128 {dimension_numbers = #tpu.dot_dimension_numbers<[1], [0], [0], [1], [0, 0, 1, 1], [], []>} : vector<2x1024xbf16>, vector<1024x128xbf16>, vector<2x128xf32> -> vector<2x128xf32>
    %c0_129 = arith.constant 0 : index
    %c0_130 = arith.constant 0 : index
    %109 = vector.load %arg7[%c0_129, %c0_130] : memref<1x128xf32, #tpu.memory_space<vmem>>, vector<1x128xf32>
    %110 = vector.broadcast %109 : vector<1x128xf32> to vector<2x128xf32>
    %111 = arith.addf %108, %110 : vector<2x128xf32>
    %cst_131 = arith.constant 0.000000e+00 : f32
    %112 = vector.broadcast %cst_131 : f32 to vector<2x128xf32>
    %113 = arith.maximumf %111, %112 : vector<2x128xf32>
    %114 = arith.truncf %113 : vector<2x128xf32> to vector<2x128xbf16>
    %c0_132 = arith.constant 0 : index
    %c0_133 = arith.constant 0 : index
    %115 = vector.load %arg8[%c0_132, %c0_133] : memref<128x64xbf16, #tpu.memory_space<vmem>>, vector<128x64xbf16>
    %cst_134 = arith.constant dense<0.000000e+00> : vector<2x64xf32>
    %116 = tpu.matmul %114, %115, %cst_134 {dimension_numbers = #tpu.dot_dimension_numbers<[1], [0], [0], [1], [0, 0, 1, 1], [], []>} : vector<2x128xbf16>, vector<128x64xbf16>, vector<2x64xf32> -> vector<2x64xf32>
    %c0_135 = arith.constant 0 : index
    %c0_136 = arith.constant 0 : index
    %117 = vector.load %arg9[%c0_135, %c0_136] : memref<1x64xf32, #tpu.memory_space<vmem>>, vector<1x64xf32>
    %118 = vector.broadcast %117 : vector<1x64xf32> to vector<2x64xf32>
    %119 = arith.addf %116, %118 : vector<2x64xf32>
    %cst_137 = arith.constant 0.000000e+00 : f32
    %120 = vector.broadcast %cst_137 : f32 to vector<2x64xf32>
    %121 = arith.maximumf %119, %120 : vector<2x64xf32>
    %122 = arith.truncf %121 : vector<2x64xf32> to vector<2x64xbf16>
    %c0_138 = arith.constant 0 : index
    %c0_139 = arith.constant 0 : index
    %123 = vector.load %arg10[%c0_138, %c0_139] : memref<64x64xbf16, #tpu.memory_space<vmem>>, vector<64x64xbf16>
    %cst_140 = arith.constant dense<0.000000e+00> : vector<2x64xf32>
    %124 = tpu.matmul %122, %123, %cst_140 {dimension_numbers = #tpu.dot_dimension_numbers<[1], [0], [0], [1], [0, 0, 1, 1], [], []>} : vector<2x64xbf16>, vector<64x64xbf16>, vector<2x64xf32> -> vector<2x64xf32>
    %c0_141 = arith.constant 0 : index
    %c0_142 = arith.constant 0 : index
    %125 = vector.load %arg11[%c0_141, %c0_142] : memref<1x64xf32, #tpu.memory_space<vmem>>, vector<1x64xf32>
    %126 = vector.broadcast %125 : vector<1x64xf32> to vector<2x64xf32>
    %127 = arith.addf %124, %126 : vector<2x64xf32>
    %c0_143 = arith.constant 0 : index
    %c0_144 = arith.constant 0 : index
    %128 = vector.load %arg12[%c0_143, %c0_144] : memref<2x64xf32, #tpu.memory_space<vmem>>, vector<2x64xf32>
    tpu.vector_store %arg12[%c0_143, %c0_144], %127 {strides = array<i32>} : memref<2x64xf32, #tpu.memory_space<vmem>>, vector<2x64xf32>,
    return
  }
}

</mosaic_0001>

<bundles_post_ra>
// kernel: tile.6
= control target key start
LH: loop header
LB: loop body
LE: loop exit
PB: predicated region body
PF: predicated region fallthrough
CT: control target
= control target key end

     0   :  { %s22_s0 = inlined_call_operand.vmem [shape: f32[100], index: 0, kind: input, shape index: {}]   ;;  %s23_s1 = inlined_call_operand.vmem [shape: f32[2,1,1,100], index: 1, kind: output, shape index: {}]  }
   0x1   :  { %v4_v0 = vld [vmem:[%s22_s0] ss:$0 sm:$0xff] }
   0x2   :  { %5 = vst [vmem:[%s23_s1] sm:$0x3] %v4_v0 }

// kernel: tile.0
= control target key start
LH: loop header
LB: loop body
LE: loop exit
PB: predicated region body
PF: predicated region fallthrough
CT: control target
= control target key end

     0   :  { %s827_s8 = smov 125   ;;  %s828_s9 = smov 126   ;;  %vm8_vm0 = vcmask 7168   ;;  %s1338_s0 = inlined_call_operand.vmem [shape: f32[2,1,1,100], index: 0, kind: input, shape index: {}]   ;;  %s1339_s1 = inlined_call_operand.vmem [shape: f32[200,1], index: 1, kind: output, shape index: {}]  }
   0x1   :  { %v5_v0 = vld [vmem:[%s1338_s0] sm:$0x3]  ;;  %s826_s0 = smov 127   ;;  %s829_s10 = smov 124  }
   0x2   :  { %6 = vst [vmem:[#allocation0] sm:$0x3] %v5_v0  ;;  %s830_s11 = smov 123   ;;  %s831_s12 = smov 122  }
   0x3   :  { %s832_s13 = smov 121   ;;  %s833_s14 = smov 120  }
   0x4   :  { %s834_s15 = smov 119   ;;  %s835_s16 = smov 118  }
   0x5   :  { %s836_s17 = smov 117   ;;  %s837_s18 = smov 116  }
   0x6   :  { %s838_s19 = smov 115   ;;  %s839_s20 = smov 114  }
   0x7   :  { %s840_s21 = smov 113   ;;  %s841_s22 = smov 112  }
   0x8   :  { %s842_s23 = smov 111   ;;  %s843_s24 = smov 110  }
   0x9   :  { %v10_v1 = vld [vmem:[#allocation0] sm:$0x3]   ;;  %s844_s25 = smov 109   ;;  %s845_s26 = smov 108  }
   0xa   :  { %v22_v2 = vld [vmem:[#allocation0] sm:$0x3]   ;;  %11 = vrot.lane.b32.xlu0 %v10_v1, %s826_s0  ;;  %s846_s27 = smov 107   ;;  %s847_s28 = smov 106  }
   0xb   :  { %23 = vrot.lane.b32.xlu1 %v22_v2, %s827_s8  ;;  %v16_v3 = vld [vmem:[#allocation0] sm:$0x3]   ;;  %s848_s29 = smov 105   ;;  %s849_s30 = smov 104  }
   0xc   :  { %v28_v4 = vld [vmem:[#allocation0] sm:$0x3]   ;;  %s173_s2 = smov 3  ;;  %s850_s3 = smov 103  }
   0xd   :  { %v34_v5 = vld [vmem:[#allocation0] sm:$0x3]   ;;  %s851_s4 = smov 102   ;;  %s181_s5 = smov 3 }
   0xe   :  { %17 = vrot.lane.b32.xlu0 %v16_v3, %s828_s9  ;;  %v40_v6 = vld [vmem:[#allocation0] sm:$0x3]   ;;  %s189_s6 = smov 3  ;;  %s852_s7 = smov 101  }
   0xf   :  { %29 = vrot.lane.b32.xlu1 %v28_v4, %s829_s10  ;;  %v46_v7 = vld [vmem:[#allocation0] sm:$0x3]   ;;  %s853_s0 = smov 100   ;;  %s197_s8 = smov 3 }
  0x10   :  { %v52_v8 = vld [vmem:[#allocation0] sm:$0x3]   ;;  %s854_s9 = smov 99   ;;  %s855_s10 = smov 98  }
  0x11   :  { %v58_v9 = vld [vmem:[#allocation0] sm:$0x3]  }
  0x12   :  { %35 = vrot.lane.b32.xlu0 %v34_v5, %s830_s11  ;;  %v64_v10 = vld [vmem:[#allocation0] sm:$0x3]   ;;  %s856_s11 = smov 97  }
  0x13   :  { %41 = vrot.lane.b32.xlu1 %v40_v6, %s831_s12  ;;  %v70_v11 = vld [vmem:[#allocation0] sm:$0x3]   ;;  %s857_s12 = smov 96  }
  0x14   :  { %v76_v12 = vld [vmem:[#allocation0] sm:$0x3]  }
  0x15   :  { %v82_v13 = vld [vmem:[#allocation0] sm:$0x3]  }
  0x16   :  { %47 = vrot.lane.b32.xlu0 %v46_v7, %s832_s13  ;;  %v88_v14 = vld [vmem:[#allocation0] sm:$0x3]   ;;  %s858_s13 = smov 95  }
  0x17   :  { %53 = vrot.lane.b32.xlu1 %v52_v8, %s833_s14  ;;  %v94_v15 = vld [vmem:[#allocation0] sm:$0x3]   ;;  %s859_s14 = smov 94  }
  0x18   :  { %v100_v16 = vld [vmem:[#allocation0] sm:$0x3]  }
  0x19   :  { %v106_v17 = vld [vmem:[#allocation0] sm:$0x3]  }
  0x1a   :  { %59 = vrot.lane.b32.xlu0 %v58_v9, %s834_s15  ;;  %v112_v18 = vld [vmem:[#allocation0] sm:$0x3]   ;;  %s860_s15 = smov 93  }
  0x1b   :  { %65 = vrot.lane.b32.xlu1 %v64_v10, %s835_s16  ;;  %v118_v19 = vld [vmem:[#allocation0] sm:$0x3]   ;;  %s861_s16 = smov 92  }
  0x1c   :  { %v124_v20 = vld [vmem:[#allocation0] sm:$0x3]  }
  0x1d   :  { %v130_v21 = vld [vmem:[#allocation0] sm:$0x3]  }
  0x1e   :  { %71 = vrot.lane.b32.xlu0 %v70_v11, %s836_s17  ;;  %v136_v22 = vld [vmem:[#allocation0] sm:$0x3]   ;;  %s862_s17 = smov 91  }
  0x1f   :  { %77 = vrot.lane.b32.xlu1 %v76_v12, %s837_s18  ;;  %v142_v23 = vld [vmem:[#allocation0] sm:$0x3]   ;;  %s863_s18 = smov 90  }
  0x20   :  { %v148_v24 = vld [vmem:[#allocation0] sm:$0x3]  }
  0x21   :  { %v154_v25 = vld [vmem:[#allocation0] sm:$0x3]  }
  0x22   :  { %83 = vrot.lane.b32.xlu0 %v82_v13, %s838_s19  ;;  %v160_v26 = vld [vmem:[#allocation0] sm:$0x3]   ;;  %s864_s19 = smov 89  }
  0x23   :  { %89 = vrot.lane.b32.xlu1 %v88_v14, %s839_s20  ;;  %v166_v27 = vld [vmem:[#allocation0] sm:$0x3]   ;;  %s865_s20 = smov 88  }
  0x24   :  { %v174_v28 = vld [vmem:[#allocation0 + $0x1] ss:$-1 sm:%s173_s2]   ;;  %s876_s2 = smov 77  }
  0x25   :  { %v182_v29 = vld [vmem:[#allocation0 + $0x1] ss:$-1 sm:%s181_s5]   ;;  %s879_s5 = smov 74  }
  0x26   :  { %95 = vrot.lane.b32.xlu0 %v94_v15, %s840_s21  ;;  %v190_v30 = vld [vmem:[#allocation0 + $0x1] ss:$-1 sm:%s189_s6]   ;;  %s866_s21 = smov 87   ;;  %s880_s6 = smov 73  }
  0x27   :  { %101 = vrot.lane.b32.xlu1 %v100_v16, %s841_s22  ;;  %v198_v31 = vld [vmem:[#allocation0 + $0x1] ss:$-1 sm:%s197_s8]   ;;  %s867_s22 = smov 86   ;;  %s882_s8 = smov 71  }
  0x28   :  { %v204_v32 = vld [vmem:[#allocation0] sm:$0x3]  }
  0x29   :  { %v210_v33 = vld [vmem:[#allocation0] sm:$0x3]  }
  0x2a   :  { %107 = vrot.lane.b32.xlu0 %v106_v17, %s842_s23  ;;  %v216_v34 = vld [vmem:[#allocation0] sm:$0x3]   ;;  %s868_s23 = smov 85  }
  0x2b   :  { %113 = vrot.lane.b32.xlu1 %v112_v18, %s843_s24  ;;  %v222_v35 = vld [vmem:[#allocation0] sm:$0x3]   ;;  %s869_s24 = smov 84  }
  0x2c   :  { %v228_v36 = vld [vmem:[#allocation0] sm:$0x3]  }
  0x2d   :  { %v234_v37 = vld [vmem:[#allocation0] sm:$0x3]  }
  0x2e   :  { %119 = vrot.lane.b32.xlu0 %v118_v19, %s844_s25  ;;  %v240_v38 = vld [vmem:[#allocation0] sm:$0x3]   ;;  %s870_s25 = smov 83  }
  0x2f   :  { %125 = vrot.lane.b32.xlu1 %v124_v20, %s845_s26  ;;  %v246_v39 = vld [vmem:[#allocation0] sm:$0x3]   ;;  %s871_s26 = smov 82  }
  0x30   :  { %v252_v40 = vld [vmem:[#allocation0] sm:$0x3]  }
  0x31   :  { %v258_v41 = vld [vmem:[#allocation0] sm:$0x3]  }
  0x32   :  { %131 = vrot.lane.b32.xlu0 %v130_v21, %s846_s27  ;;  %v264_v42 = vld [vmem:[#allocation0] sm:$0x3]   ;;  %s872_s27 = smov 81  }
  0x33   :  { %137 = vrot.lane.b32.xlu1 %v136_v22, %s847_s28  ;;  %v270_v43 = vld [vmem:[#allocation0] sm:$0x3]   ;;  %s873_s28 = smov 80  }
  0x34   :  { %v276_v44 = vld [vmem:[#allocation0] sm:$0x3]  }
  0x35   :  { %v282_v45 = vld [vmem:[#allocation0] sm:$0x3]  }
  0x36   :  { %143 = vrot.lane.b32.xlu0 %v142_v23, %s848_s29  ;;  %v288_v46 = vld [vmem:[#allocation0] sm:$0x3]   ;;  %s874_s29 = smov 79  }
  0x37   :  { %149 = vrot.lane.b32.xlu1 %v148_v24, %s849_s30  ;;  %v294_v47 = vld [vmem:[#allocation0] sm:$0x3]   ;;  %s875_s30 = smov 78  }
  0x38   :  { %v300_v48 = vld [vmem:[#allocation0] sm:$0x3]  }
  0x39   :  { %v306_v49 = vld [vmem:[#allocation0] sm:$0x3]  }
  0x3a   :  { %155 = vrot.lane.b32.xlu0 %v154_v25, %s850_s3  ;;  %v312_v50 = vld [vmem:[#allocation0] sm:$0x3]   ;;  %s877_s3 = smov 76  }
  0x3b   :  { %161 = vrot.lane.b32.xlu1 %v160_v26, %s851_s4  ;;  %v318_v51 = vld [vmem:[#allocation0] sm:$0x3]   ;;  %s878_s4 = smov 75  }
  0x3c   :  { %v324_v52 = vld [vmem:[#allocation0] sm:$0x3]  }
  0x3d   :  { %v330_v53 = vld [vmem:[#allocation0] sm:$0x3]  }
  0x3e   :  { %167 = vrot.lane.b32.xlu0 %v166_v27, %s852_s7  ;;  %v336_v54 = vld [vmem:[#allocation0] sm:$0x3]   ;;  %s881_s7 = smov 72  }
  0x3f   :  { %175 = vrot.lane.b32.xlu1 %v174_v28, %s853_s0  ;;  %v342_v55 = vld [vmem:[#allocation0] sm:$0x3]   ;;  %s373_s0 = smov 3 }
  0x40   :  { %v348_v56 = vld [vmem:[#allocation0] sm:$0x3]  }
  0x41   :  { %v354_v57 = vld [vmem:[#allocation0] sm:$0x3]  }
  0x42   :  { %183 = vrot.lane.b32.xlu0 %v182_v29, %s854_s9  ;;  %v360_v58 = vld [vmem:[#allocation0] sm:$0x3]   ;;  %s883_s9 = smov 70  }
  0x43   :  { %191 = vrot.lane.b32.xlu1 %v190_v30, %s855_s10  ;;  %v366_v59 = vld [vmem:[#allocation0] sm:$0x3]   ;;  %s381_s10 = smov 3 }
  0x44   :  { %v374_v60 = vld [vmem:[#allocation0 + $0x1] ss:$-1 sm:%s373_s0]  }
  0x45   :  { %v382_v63 = vld [vmem:[#allocation0 + $0x1] ss:$-1 sm:%s381_s10]  }
  0x46   :  { %199 = vrot.lane.b32.xlu0 %v198_v31, %s856_s11  ;;  %s389_s11 = smov 3  ;;  %v404_v4 = vld [vmem:[#allocation0] sm:$0x3]  }
  0x47   :  { %205 = vrot.lane.b32.xlu1 %v204_v32, %s857_s12  ;;  %v390_v0 = vld [vmem:[#allocation0 + $0x1] ss:$-1 sm:%s389_s11]   ;;  %s892_s11 = smov 61   ;;  %s893_s12 = smov 60  }
  0x48   :  { %v410_v7 = vld [vmem:[#allocation0] sm:$0x3]  }
  0x49   :  { %v416_v8 = vld [vmem:[#allocation0] sm:$0x3]  }
  0x4a   :  { %211 = vrot.lane.b32.xlu0 %v210_v33, %s858_s13  ;;  %v422_v11 = vld [vmem:[#allocation0] sm:$0x3]   ;;  %s573_s13 = smov 3 }
  0x4b   :  { %217 = vrot.lane.b32.xlu1 %v216_v34, %s859_s14  ;;  %v428_v12 = vld [vmem:[#allocation0] sm:$0x3]  }
  0x4c   :  { %v434_v15 = vld [vmem:[#allocation0] sm:$0x3]  }
  0x4d   :  { %v440_v16 = vld [vmem:[#allocation0] sm:$0x3]  }
  0x4e   :  { %223 = vrot.lane.b32.xlu0 %v222_v35, %s860_s15  ;;  %v446_v19 = vld [vmem:[#allocation0] sm:$0x3]  }
  0x4f   :  { %229 = vrot.lane.b32.xlu1 %v228_v36, %s861_s16  ;;  %s884_s16 = smov 69   ;;  %v452_v20 = vld [vmem:[#allocation0] sm:$0x3]  }
  0x50   :  { %v458_v23 = vld [vmem:[#allocation0] sm:$0x3]  }
  0x51   :  { %v464_v24 = vld [vmem:[#allocation0] sm:$0x3]  }
  0x52   :  { %235 = vrot.lane.b32.xlu0 %v234_v37, %s862_s17  ;;  %s885_s17 = smov 68   ;;  %v470_v27 = vld [vmem:[#allocation0] sm:$0x3]  }
  0x53   :  { %241 = vrot.lane.b32.xlu1 %v240_v38, %s863_s18  ;;  %s397_s18 = smov 3  ;;  %v476_v28 = vld [vmem:[#allocation0] sm:$0x3]  }
  0x54   :  { %v398_v3 = vld [vmem:[#allocation0 + $0x1] ss:$-1 sm:%s397_s18]   ;;  %s895_s18 = smov 58  }
  0x55   :  { %v482_v31 = vld [vmem:[#allocation0] sm:$0x3]  }
  0x56   :  { %247 = vrot.lane.b32.xlu0 %v246_v39, %s864_s19  ;;  %v488_v32 = vld [vmem:[#allocation0] sm:$0x3]   ;;  %s915_s19 = smov 38  }
  0x57   :  { %253 = vrot.lane.b32.xlu1 %v252_v40, %s865_s20  ;;  %v494_v35 = vld [vmem:[#allocation0] sm:$0x3]   ;;  %s581_s20 = smov 3 }
  0x58   :  { %v500_v36 = vld [vmem:[#allocation0] sm:$0x3]  }
  0x59   :  { %v506_v39 = vld [vmem:[#allocation0] sm:$0x3]  }
  0x5a   :  { %259 = vrot.lane.b32.xlu0 %v258_v41, %s866_s21  ;;  %v512_v40 = vld [vmem:[#allocation0] sm:$0x3]   ;;  %s589_s21 = smov 3 }
  0x5b   :  { %265 = vrot.lane.b32.xlu1 %v264_v42, %s867_s22 }
  0x5e   :  { %271 = vrot.lane.b32.xlu0 %v270_v43, %s868_s23  ;;  %s886_s23 = smov 67   ;;  %v518_v43 = vld [vmem:[#allocation0] sm:$0x3]  }
  0x5f   :  { %277 = vrot.lane.b32.xlu1 %v276_v44, %s869_s24  ;;  %s887_s24 = smov 66   ;;  %v524_v44 = vld [vmem:[#allocation0] sm:$0x3]  }
  0x62   :  { %283 = vrot.lane.b32.xlu0 %v282_v45, %s870_s25 }
  0x63   :  { %289 = vrot.lane.b32.xlu1 %v288_v46, %s871_s26  ;;  %s916_s26 = smov 37  }
  0x66   :  { %295 = vrot.lane.b32.xlu0 %v294_v47, %s872_s27  ;;  %v530_v47 = vld [vmem:[#allocation0] sm:$0x3]   ;;  %s917_s27 = smov 36  }
  0x67   :  { %301 = vrot.lane.b32.xlu1 %v300_v48, %s873_s28  ;;  %v536_v48 = vld [vmem:[#allocation0] sm:$0x3]   ;;  %s597_s28 = smov 3 }
  0x6a   :  { %307 = vrot.lane.b32.xlu0 %v306_v49, %s874_s29  ;;  %s888_s29 = smov 65  }
  0x6b   :  { %313 = vrot.lane.b32.xlu1 %v312_v50, %s875_s30  ;;  %s889_s30 = smov 64  }
  0x6e   :  { %319 = vrot.lane.b32.xlu0 %v318_v51, %s876_s2  ;;  %v542_v51 = vld [vmem:[#allocation0] sm:$0x3]  }
  0x6f   :  { %325 = vrot.lane.b32.xlu1 %v324_v52, %s877_s3  ;;  %v548_v52 = vld [vmem:[#allocation0] sm:$0x3]  }
  0x72   :  { %331 = vrot.lane.b32.xlu0 %v330_v53, %s878_s4 }
  0x73   :  { %337 = vrot.lane.b32.xlu1 %v336_v54, %s879_s5 }
  0x76   :  { %343 = vrot.lane.b32.xlu0 %v342_v55, %s880_s6  ;;  %s890_s6 = smov 63   ;;  %v554_v55 = vld [vmem:[#allocation0] sm:$0x3]  }
  0x77   :  { %349 = vrot.lane.b32.xlu1 %v348_v56, %s881_s7  ;;  %s891_s7 = smov 62   ;;  %v560_v56 = vld [vmem:[#allocation0] sm:$0x3]  }
  0x7a   :  { %355 = vrot.lane.b32.xlu0 %v354_v57, %s882_s8 }
  0x7b   :  { %361 = vrot.lane.b32.xlu1 %v360_v58, %s883_s9 }
  0x7c   :  { %v12_v61 = vpop.permute.xlu0 %11  }
  0x7d   :  { %v24_v62 = vpop.permute.xlu1 %23   ;;  %628 = vst.msk [vmem:[%s1339_s1 + $0x1] ss:$100 sm:$0x3] %vm8_vm0, %v12_v61  }
  0x7e   :  { %630 = vst.msk [vmem:[%s1339_s1 + $0x3] ss:$100 sm:$0x3] %vm8_vm0, %v24_v62   ;;  %367 = vrot.lane.b32.xlu0 %v366_v59, %s884_s16  ;;  %v566_v59 = vld [vmem:[#allocation0] sm:$0x3]  }
  0x7f   :  { %375 = vrot.lane.b32.xlu1 %v374_v60, %s885_s17  ;;  %s894_s17 = smov 59   ;;  %v574_v60 = vld [vmem:[#allocation0 + $0x1] ss:$-1 sm:%s573_s13]  }
  0x80   :  { %v18_v1 = vpop.permute.xlu0 %17  }
  0x81   :  { %v30_v2 = vpop.permute.xlu1 %29   ;;  %629 = vst.msk [vmem:[%s1339_s1 + $0x2] ss:$100 sm:$0x3] %vm8_vm0, %v18_v1  }
  0x82   :  { %631 = vst.msk [vmem:[%s1339_s1 + $0x4] ss:$100 sm:$0x3] %vm8_vm0, %v30_v2   ;;  %383 = vrot.lane.b32.xlu0 %v382_v63, %s886_s23  ;;  %s896_s23 = smov 57   ;;  %v582_v63 = vld [vmem:[#allocation0 + $0x1] ss:$-1 sm:%s581_s20]  }
  0x83   :  { %391 = vrot.lane.b32.xlu1 %v390_v0, %s887_s24  ;;  %s897_s24 = smov 56   ;;  %v590_v0 = vld [vmem:[#allocation0 + $0x1] ss:$-1 sm:%s589_s21]  }
  0x84   :  { %v36_v5 = vpop.permute.xlu0 %35  }
  0x85   :  { %v42_v6 = vpop.permute.xlu1 %41   ;;  %632 = vst.msk [vmem:[%s1339_s1 + $0x5] ss:$100 sm:$0x3] %vm8_vm0, %v36_v5   ;;  %v604_v5 = vld [vmem:[#allocation0] sm:$0x3]  }
  0x86   :  { %633 = vst.msk [vmem:[%s1339_s1 + $0x6] ss:$100 sm:$0x3] %vm8_vm0, %v42_v6   ;;  %399 = vrot.lane.b32.xlu0 %v398_v3, %s888_s29  ;;  %s898_s29 = smov 55   ;;  %v7_v3 = vld [vmem:[#allocation0] sm:$0x3]  }
  0x87   :  { %405 = vrot.lane.b32.xlu1 %v404_v4, %s889_s30  ;;  %s899_s30 = smov 54   ;;  %9 = vst.msk [vmem:[%s1339_s1] ss:$100 sm:$0x3] %vm8_vm0, %v7_v3   ;;  %v598_v4 = vld [vmem:[#allocation0 + $0x1] ss:$-1 sm:%s597_s28]  }
  0x88   :  { %v48_v9 = vpop.permute.xlu0 %47  }
  0x89   :  { %v54_v10 = vpop.permute.xlu1 %53   ;;  %634 = vst.msk [vmem:[%s1339_s1 + $0x7] ss:$100 sm:$0x3] %vm8_vm0, %v48_v9   ;;  %v616_v9 = vld [vmem:[#allocation0] sm:$0x3]  }
  0x8a   :  { %635 = vst.msk [vmem:[%s1339_s1 + $0x8] ss:$100 sm:$0x3] %vm8_vm0, %v54_v10   ;;  %411 = vrot.lane.b32.xlu0 %v410_v7, %s890_s6  ;;  %s900_s6 = smov 53  }
  0x8b   :  { %417 = vrot.lane.b32.xlu1 %v416_v8, %s891_s7  ;;  %s901_s7 = smov 52   ;;  %v610_v8 = vld [vmem:[#allocation0] sm:$0x3]  }
  0x8c   :  { %v60_v13 = vpop.permute.xlu0 %59  }
  0x8d   :  { %v66_v14 = vpop.permute.xlu1 %65   ;;  %636 = vst.msk [vmem:[%s1339_s1 + $0x9] ss:$100 sm:$0x3] %vm8_vm0, %v60_v13  }
  0x8e   :  { %637 = vst.msk [vmem:[%s1339_s1 + $0xa] ss:$100 sm:$0x3] %vm8_vm0, %v66_v14   ;;  %423 = vrot.lane.b32.xlu0 %v422_v11, %s892_s11  ;;  %s902_s11 = smov 51  }
  0x8f   :  { %429 = vrot.lane.b32.xlu1 %v428_v12, %s893_s12  ;;  %s903_s12 = smov 50   ;;  %v622_v12 = vld [vmem:[#allocation0] sm:$0x3]  }
  0x90   :  { %v72_v17 = vpop.permute.xlu0 %71  }
  0x91   :  { %v78_v18 = vpop.permute.xlu1 %77   ;;  %638 = vst.msk [vmem:[%s1339_s1 + $0xb] ss:$100 sm:$0x3] %vm8_vm0, %v72_v17  }
  0x92   :  { %639 = vst.msk [vmem:[%s1339_s1 + $0xc] ss:$100 sm:$0x3] %vm8_vm0, %v78_v18   ;;  %435 = vrot.lane.b32.xlu0 %v434_v15, %s894_s17  ;;  %s904_s17 = smov 49  }
  0x93   :  { %441 = vrot.lane.b32.xlu1 %v440_v16, %s895_s18  ;;  %s905_s18 = smov 48  }
  0x94   :  { %v84_v21 = vpop.permute.xlu0 %83  }
  0x95   :  { %v90_v22 = vpop.permute.xlu1 %89   ;;  %640 = vst.msk [vmem:[%s1339_s1 + $0xd] ss:$100 sm:$0x3] %vm8_vm0, %v84_v21  }
  0x96   :  { %641 = vst.msk [vmem:[%s1339_s1 + $0xe] ss:$100 sm:$0x3] %vm8_vm0, %v90_v22   ;;  %447 = vrot.lane.b32.xlu0 %v446_v19, %s896_s23  ;;  %s906_s23 = smov 47  }
  0x97   :  { %453 = vrot.lane.b32.xlu1 %v452_v20, %s897_s24  ;;  %s907_s24 = smov 46  }
  0x98   :  { %v96_v25 = vpop.permute.xlu0 %95  }
  0x99   :  { %v102_v26 = vpop.permute.xlu1 %101   ;;  %642 = vst.msk [vmem:[%s1339_s1 + $0xf] ss:$100 sm:$0x3] %vm8_vm0, %v96_v25  }
  0x9a   :  { %643 = vst.msk [vmem:[%s1339_s1 + $0x10] ss:$100 sm:$0x3] %vm8_vm0, %v102_v26   ;;  %459 = vrot.lane.b32.xlu0 %v458_v23, %s898_s29  ;;  %s908_s29 = smov 45  }
  0x9b   :  { %465 = vrot.lane.b32.xlu1 %v464_v24, %s899_s30  ;;  %s909_s30 = smov 44  }
  0x9c   :  { %v108_v29 = vpop.permute.xlu0 %107  }
  0x9d   :  { %v114_v30 = vpop.permute.xlu1 %113   ;;  %644 = vst.msk [vmem:[%s1339_s1 + $0x11] ss:$100 sm:$0x3] %vm8_vm0, %v108_v29  }
  0x9e   :  { %645 = vst.msk [vmem:[%s1339_s1 + $0x12] ss:$100 sm:$0x3] %vm8_vm0, %v114_v30   ;;  %471 = vrot.lane.b32.xlu0 %v470_v27, %s900_s6  ;;  %s910_s6 = smov 43  }
  0x9f   :  { %477 = vrot.lane.b32.xlu1 %v476_v28, %s901_s7  ;;  %s911_s7 = smov 42  }
  0xa0   :  { %v120_v33 = vpop.permute.xlu0 %119  }
  0xa1   :  { %v126_v34 = vpop.permute.xlu1 %125   ;;  %646 = vst.msk [vmem:[%s1339_s1 + $0x13] ss:$100 sm:$0x3] %vm8_vm0, %v120_v33  }
  0xa2   :  { %647 = vst.msk [vmem:[%s1339_s1 + $0x14] ss:$100 sm:$0x3] %vm8_vm0, %v126_v34   ;;  %483 = vrot.lane.b32.xlu0 %v482_v31, %s902_s11  ;;  %s912_s11 = smov 41  }
  0xa3   :  { %489 = vrot.lane.b32.xlu1 %v488_v32, %s903_s12  ;;  %s913_s12 = smov 40  }
  0xa4   :  { %v132_v37 = vpop.permute.xlu0 %131  }
  0xa5   :  { %v138_v38 = vpop.permute.xlu1 %137   ;;  %648 = vst.msk [vmem:[%s1339_s1 + $0x15] ss:$100 sm:$0x3] %vm8_vm0, %v132_v37  }
  0xa6   :  { %649 = vst.msk [vmem:[%s1339_s1 + $0x16] ss:$100 sm:$0x3] %vm8_vm0, %v138_v38   ;;  %495 = vrot.lane.b32.xlu0 %v494_v35, %s904_s17  ;;  %s922_s17 = smov 31  }
  0xa7   :  { %501 = vrot.lane.b32.xlu1 %v500_v36, %s905_s18  ;;  %s914_s18 = smov 39  }
  0xa8   :  { %v144_v41 = vpop.permute.xlu0 %143  }
  0xa9   :  { %v150_v42 = vpop.permute.xlu1 %149   ;;  %650 = vst.msk [vmem:[%s1339_s1 + $0x17] ss:$100 sm:$0x3] %vm8_vm0, %v144_v41  }
  0xaa   :  { %651 = vst.msk [vmem:[%s1339_s1 + $0x18] ss:$100 sm:$0x3] %vm8_vm0, %v150_v42   ;;  %507 = vrot.lane.b32.xlu0 %v506_v39, %s906_s23  ;;  %s924_s23 = smov 29  }
  0xab   :  { %513 = vrot.lane.b32.xlu1 %v512_v40, %s907_s24 }
  0xac   :  { %v156_v45 = vpop.permute.xlu0 %155  }
  0xad   :  { %v162_v46 = vpop.permute.xlu1 %161   ;;  %652 = vst.msk [vmem:[%s1339_s1 + $0x19] ss:$100 sm:$0x3] %vm8_vm0, %v156_v45  }
  0xae   :  { %653 = vst.msk [vmem:[%s1339_s1 + $0x1a] ss:$100 sm:$0x3] %vm8_vm0, %v162_v46   ;;  %519 = vrot.lane.b32.xlu0 %v518_v43, %s908_s29 }
  0xaf   :  { %525 = vrot.lane.b32.xlu1 %v524_v44, %s909_s30 }
  0xb0   :  { %v168_v49 = vpop.permute.xlu0 %167  }
  0xb1   :  { %v176_v50 = vpop.permute.xlu1 %175   ;;  %654 = vst.msk [vmem:[%s1339_s1 + $0x1b] ss:$100 sm:$0x3] %vm8_vm0, %v168_v49  }
  0xb2   :  { %655 = vst.msk [vmem:[%s1339_s1 + $0x80] ss:$-100 sm:$0x3] %vm8_vm0, %v176_v50   ;;  %531 = vrot.lane.b32.xlu0 %v530_v47, %s910_s6  ;;  %s918_s6 = smov 35  }
  0xb3   :  { %537 = vrot.lane.b32.xlu1 %v536_v48, %s911_s7  ;;  %s919_s7 = smov 34  }
  0xb4   :  { %v184_v53 = vpop.permute.xlu0 %183  }
  0xb5   :  { %v192_v54 = vpop.permute.xlu1 %191   ;;  %656 = vst.msk [vmem:[%s1339_s1 + $0x81] ss:$-100 sm:$0x3] %vm8_vm0, %v184_v53  }
  0xb6   :  { %657 = vst.msk [vmem:[%s1339_s1 + $0x82] ss:$-100 sm:$0x3] %vm8_vm0, %v192_v54   ;;  %543 = vrot.lane.b32.xlu0 %v542_v51, %s912_s11  ;;  %s920_s11 = smov 33  }
  0xb7   :  { %549 = vrot.lane.b32.xlu1 %v548_v52, %s913_s12  ;;  %s921_s12 = smov 32  }
  0xb8   :  { %v200_v57 = vpop.permute.xlu0 %199  }
  0xb9   :  { %v206_v58 = vpop.permute.xlu1 %205   ;;  %658 = vst.msk [vmem:[%s1339_s1 + $0x83] ss:$-100 sm:$0x3] %vm8_vm0, %v200_v57  }
  0xba   :  { %659 = vst.msk [vmem:[%s1339_s1 + $0x20] ss:$100 sm:$0x3] %vm8_vm0, %v206_v58   ;;  %555 = vrot.lane.b32.xlu0 %v554_v55, %s914_s18  ;;  %s923_s18 = smov 30  }
  0xbb   :  { %561 = vrot.lane.b32.xlu1 %v560_v56, %s915_s19 }
  0xbc   :  { %v212_v61 = vpop.permute.xlu0 %211  }
  0xbd   :  { %v218_v62 = vpop.permute.xlu1 %217   ;;  %660 = vst.msk [vmem:[%s1339_s1 + $0x21] ss:$100 sm:$0x3] %vm8_vm0, %v212_v61  }
  0xbe   :  { %661 = vst.msk [vmem:[%s1339_s1 + $0x22] ss:$100 sm:$0x3] %vm8_vm0, %v218_v62   ;;  %567 = vrot.lane.b32.xlu0 %v566_v59, %s916_s26 }
  0xbf   :  { %575 = vrot.lane.b32.xlu1 %v574_v60, %s917_s27 }
  0xc0   :  { %v224_v1 = vpop.permute.xlu0 %223  }
  0xc1   :  { %v230_v2 = vpop.permute.xlu1 %229   ;;  %662 = vst.msk [vmem:[%s1339_s1 + $0x23] ss:$100 sm:$0x3] %vm8_vm0, %v224_v1  }
  0xc2   :  { %663 = vst.msk [vmem:[%s1339_s1 + $0x24] ss:$100 sm:$0x3] %vm8_vm0, %v230_v2   ;;  %583 = vrot.lane.b32.xlu0 %v582_v63, %s918_s6 }
  0xc3   :  { %591 = vrot.lane.b32.xlu1 %v590_v0, %s919_s7 }
  0xc4   :  { %v236_v6 = vpop.permute.xlu0 %235  }
  0xc5   :  { %v242_v7 = vpop.permute.xlu1 %241   ;;  %664 = vst.msk [vmem:[%s1339_s1 + $0x25] ss:$100 sm:$0x3] %vm8_vm0, %v236_v6  }
  0xc6   :  { %665 = vst.msk [vmem:[%s1339_s1 + $0x26] ss:$100 sm:$0x3] %vm8_vm0, %v242_v7   ;;  %599 = vrot.lane.b32.xlu0 %v598_v4, %s920_s11 }
  0xc7   :  { %605 = vrot.lane.b32.xlu1 %v604_v5, %s921_s12 }
  0xc8   :  { %v248_v10 = vpop.permute.xlu0 %247  }
  0xc9   :  { %v254_v11 = vpop.permute.xlu1 %253   ;;  %666 = vst.msk [vmem:[%s1339_s1 + $0x27] ss:$100 sm:$0x3] %vm8_vm0, %v248_v10  }
  0xca   :  { %667 = vst.msk [vmem:[%s1339_s1 + $0x28] ss:$100 sm:$0x3] %vm8_vm0, %v254_v11   ;;  %611 = vrot.lane.b32.xlu0 %v610_v8, %s922_s17 }
  0xcb   :  { %617 = vrot.lane.b32.xlu1 %v616_v9, %s923_s18 }
  0xcc   :  { %v260_v13 = vpop.permute.xlu0 %259  }
  0xcd   :  { %v266_v14 = vpop.permute.xlu1 %265   ;;  %668 = vst.msk [vmem:[%s1339_s1 + $0x29] ss:$100 sm:$0x3] %vm8_vm0, %v260_v13  }
  0xce   :  { %669 = vst.msk [vmem:[%s1339_s1 + $0x2a] ss:$100 sm:$0x3] %vm8_vm0, %v266_v14   ;;  %623 = vrot.lane.b32.xlu0 %v622_v12, %s924_s23 }
  0xd0   :  { %v272_v15 = vpop.permute.xlu0 %271  }
  0xd1   :  { %v278_v16 = vpop.permute.xlu1 %277   ;;  %670 = vst.msk [vmem:[%s1339_s1 + $0x2b] ss:$100 sm:$0x3] %vm8_vm0, %v272_v15  }
  0xd2   :  { %671 = vst.msk [vmem:[%s1339_s1 + $0x2c] ss:$100 sm:$0x3] %vm8_vm0, %v278_v16  }
  0xd4   :  { %v284_v17 = vpop.permute.xlu0 %283  }
  0xd5   :  { %v290_v18 = vpop.permute.xlu1 %289   ;;  %672 = vst.msk [vmem:[%s1339_s1 + $0x2d] ss:$100 sm:$0x3] %vm8_vm0, %v284_v17  }
  0xd6   :  { %673 = vst.msk [vmem:[%s1339_s1 + $0x2e] ss:$100 sm:$0x3] %vm8_vm0, %v290_v18  }
  0xd8   :  { %v296_v19 = vpop.permute.xlu0 %295  }
  0xd9   :  { %v302_v20 = vpop.permute.xlu1 %301   ;;  %674 = vst.msk [vmem:[%s1339_s1 + $0x2f] ss:$100 sm:$0x3] %vm8_vm0, %v296_v19  }
  0xda   :  { %675 = vst.msk [vmem:[%s1339_s1 + $0x30] ss:$100 sm:$0x3] %vm8_vm0, %v302_v20  }
  0xdc   :  { %v308_v21 = vpop.permute.xlu0 %307  }
  0xdd   :  { %v314_v22 = vpop.permute.xlu1 %313   ;;  %676 = vst.msk [vmem:[%s1339_s1 + $0x31] ss:$100 sm:$0x3] %vm8_vm0, %v308_v21  }
  0xde   :  { %677 = vst.msk [vmem:[%s1339_s1 + $0x32] ss:$100 sm:$0x3] %vm8_vm0, %v314_v22  }
  0xe0   :  { %v320_v23 = vpop.permute.xlu0 %319  }
  0xe1   :  { %v326_v24 = vpop.permute.xlu1 %325   ;;  %678 = vst.msk [vmem:[%s1339_s1 + $0x33] ss:$100 sm:$0x3] %vm8_vm0, %v320_v23  }
  0xe2   :  { %679 = vst.msk [vmem:[%s1339_s1 + $0x34] ss:$100 sm:$0x3] %vm8_vm0, %v326_v24  }
  0xe4   :  { %v332_v25 = vpop.permute.xlu0 %331  }
  0xe5   :  { %v338_v26 = vpop.permute.xlu1 %337   ;;  %680 = vst.msk [vmem:[%s1339_s1 + $0x35] ss:$100 sm:$0x3] %vm8_vm0, %v332_v25  }
  0xe6   :  { %681 = vst.msk [vmem:[%s1339_s1 + $0x36] ss:$100 sm:$0x3] %vm8_vm0, %v338_v26  }
  0xe8   :  { %v344_v27 = vpop.permute.xlu0 %343  }
  0xe9   :  { %v350_v28 = vpop.permute.xlu1 %349   ;;  %682 = vst.msk [vmem:[%s1339_s1 + $0x37] ss:$100 sm:$0x3] %vm8_vm0, %v344_v27  }
  0xea   :  { %683 = vst.msk [vmem:[%s1339_s1 + $0x38] ss:$100 sm:$0x3] %vm8_vm0, %v350_v28  }
  0xec   :  { %v356_v29 = vpop.permute.xlu0 %355  }
  0xed   :  { %v362_v30 = vpop.permute.xlu1 %361   ;;  %684 = vst.msk [vmem:[%s1339_s1 + $0x39] ss:$100 sm:$0x3] %vm8_vm0, %v356_v29  }
  0xee   :  { %685 = vst.msk [vmem:[%s1339_s1 + $0x3a] ss:$100 sm:$0x3] %vm8_vm0, %v362_v30  }
  0xf0   :  { %v368_v31 = vpop.permute.xlu0 %367  }
  0xf1   :  { %v376_v32 = vpop.permute.xlu1 %375   ;;  %686 = vst.msk [vmem:[%s1339_s1 + $0x3b] ss:$100 sm:$0x3] %vm8_vm0, %v368_v31  }
  0xf2   :  { %687 = vst.msk [vmem:[%s1339_s1 + $0xa0] ss:$-100 sm:$0x3] %vm8_vm0, %v376_v32  }
  0xf4   :  { %v384_v33 = vpop.permute.xlu0 %383  }
  0xf5   :  { %v392_v34 = vpop.permute.xlu1 %391   ;;  %688 = vst.msk [vmem:[%s1339_s1 + $0xa1] ss:$-100 sm:$0x3] %vm8_vm0, %v384_v33  }
  0xf6   :  { %689 = vst.msk [vmem:[%s1339_s1 + $0xa2] ss:$-100 sm:$0x3] %vm8_vm0, %v392_v34  }
  0xf8   :  { %v400_v35 = vpop.permute.xlu0 %399  }
  0xf9   :  { %v406_v36 = vpop.permute.xlu1 %405   ;;  %690 = vst.msk [vmem:[%s1339_s1 + $0xa3] ss:$-100 sm:$0x3] %vm8_vm0, %v400_v35  }
  0xfa   :  { %691 = vst.msk [vmem:[%s1339_s1 + $0x40] ss:$100 sm:$0x3] %vm8_vm0, %v406_v36  }
  0xfc   :  { %v412_v37 = vpop.permute.xlu0 %411  }
  0xfd   :  { %v418_v38 = vpop.permute.xlu1 %417   ;;  %692 = vst.msk [vmem:[%s1339_s1 + $0x41] ss:$100 sm:$0x3] %vm8_vm0, %v412_v37  }
  0xfe   :  { %693 = vst.msk [vmem:[%s1339_s1 + $0x42] ss:$100 sm:$0x3] %vm8_vm0, %v418_v38  }
 0x100   :  { %v424_v39 = vpop.permute.xlu0 %423  }
 0x101   :  { %v430_v40 = vpop.permute.xlu1 %429   ;;  %694 = vst.msk [vmem:[%s1339_s1 + $0x43] ss:$100 sm:$0x3] %vm8_vm0, %v424_v39  }
 0x102   :  { %695 = vst.msk [vmem:[%s1339_s1 + $0x44] ss:$100 sm:$0x3] %vm8_vm0, %v430_v40  }
 0x104   :  { %v436_v41 = vpop.permute.xlu0 %435  }
 0x105   :  { %v442_v42 = vpop.permute.xlu1 %441   ;;  %696 = vst.msk [vmem:[%s1339_s1 + $0x45] ss:$100 sm:$0x3] %vm8_vm0, %v436_v41  }
 0x106   :  { %697 = vst.msk [vmem:[%s1339_s1 + $0x46] ss:$100 sm:$0x3] %vm8_vm0, %v442_v42  }
 0x108   :  { %v448_v43 = vpop.permute.xlu0 %447  }
 0x109   :  { %v454_v44 = vpop.permute.xlu1 %453   ;;  %698 = vst.msk [vmem:[%s1339_s1 + $0x47] ss:$100 sm:$0x3] %vm8_vm0, %v448_v43  }
 0x10a   :  { %699 = vst.msk [vmem:[%s1339_s1 + $0x48] ss:$100 sm:$0x3] %vm8_vm0, %v454_v44  }
 0x10c   :  { %v460_v45 = vpop.permute.xlu0 %459  }
 0x10d   :  { %v466_v46 = vpop.permute.xlu1 %465   ;;  %700 = vst.msk [vmem:[%s1339_s1 + $0x49] ss:$100 sm:$0x3] %vm8_vm0, %v460_v45  }
 0x10e   :  { %701 = vst.msk [vmem:[%s1339_s1 + $0x4a] ss:$100 sm:$0x3] %vm8_vm0, %v466_v46  }
 0x110   :  { %v472_v47 = vpop.permute.xlu0 %471  }
 0x111   :  { %v478_v48 = vpop.permute.xlu1 %477   ;;  %702 = vst.msk [vmem:[%s1339_s1 + $0x4b] ss:$100 sm:$0x3] %vm8_vm0, %v472_v47  }
 0x112   :  { %703 = vst.msk [vmem:[%s1339_s1 + $0x4c] ss:$100 sm:$0x3] %vm8_vm0, %v478_v48  }
 0x114   :  { %v484_v49 = vpop.permute.xlu0 %483  }
 0x115   :  { %v490_v50 = vpop.permute.xlu1 %489   ;;  %704 = vst.msk [vmem:[%s1339_s1 + $0x4d] ss:$100 sm:$0x3] %vm8_vm0, %v484_v49  }
 0x116   :  { %705 = vst.msk [vmem:[%s1339_s1 + $0x4e] ss:$100 sm:$0x3] %vm8_vm0, %v490_v50  }
 0x118   :  { %v496_v51 = vpop.permute.xlu0 %495  }
 0x119   :  { %v502_v52 = vpop.permute.xlu1 %501   ;;  %706 = vst.msk [vmem:[%s1339_s1 + $0x4f] ss:$100 sm:$0x3] %vm8_vm0, %v496_v51  }
 0x11a   :  { %707 = vst.msk [vmem:[%s1339_s1 + $0x50] ss:$100 sm:$0x3] %vm8_vm0, %v502_v52  }
 0x11c   :  { %v508_v53 = vpop.permute.xlu0 %507  }
 0x11d   :  { %v514_v54 = vpop.permute.xlu1 %513   ;;  %708 = vst.msk [vmem:[%s1339_s1 + $0x51] ss:$100 sm:$0x3] %vm8_vm0, %v508_v53  }
 0x11e   :  { %709 = vst.msk [vmem:[%s1339_s1 + $0x52] ss:$100 sm:$0x3] %vm8_vm0, %v514_v54  }
 0x120   :  { %v520_v55 = vpop.permute.xlu0 %519  }
 0x121   :  { %v526_v56 = vpop.permute.xlu1 %525   ;;  %710 = vst.msk [vmem:[%s1339_s1 + $0x53] ss:$100 sm:$0x3] %vm8_vm0, %v520_v55  }
 0x122   :  { %711 = vst.msk [vmem:[%s1339_s1 + $0x54] ss:$100 sm:$0x3] %vm8_vm0, %v526_v56  }
 0x124   :  { %v532_v57 = vpop.permute.xlu0 %531  }
 0x125   :  { %v538_v58 = vpop.permute.xlu1 %537   ;;  %712 = vst.msk [vmem:[%s1339_s1 + $0x55] ss:$100 sm:$0x3] %vm8_vm0, %v532_v57  }
 0x126   :  { %713 = vst.msk [vmem:[%s1339_s1 + $0x56] ss:$100 sm:$0x3] %vm8_vm0, %v538_v58  }
 0x128   :  { %v544_v59 = vpop.permute.xlu0 %543  }
 0x129   :  { %v550_v60 = vpop.permute.xlu1 %549   ;;  %714 = vst.msk [vmem:[%s1339_s1 + $0x57] ss:$100 sm:$0x3] %vm8_vm0, %v544_v59  }
 0x12a   :  { %715 = vst.msk [vmem:[%s1339_s1 + $0x58] ss:$100 sm:$0x3] %vm8_vm0, %v550_v60  }
 0x12c   :  { %v556_v61 = vpop.permute.xlu0 %555  }
 0x12d   :  { %v562_v62 = vpop.permute.xlu1 %561   ;;  %716 = vst.msk [vmem:[%s1339_s1 + $0x59] ss:$100 sm:$0x3] %vm8_vm0, %v556_v61  }
 0x12e   :  { %717 = vst.msk [vmem:[%s1339_s1 + $0x5a] ss:$100 sm:$0x3] %vm8_vm0, %v562_v62  }
 0x130   :  { %v568_v63 = vpop.permute.xlu0 %567  }
 0x131   :  { %v576_v0 = vpop.permute.xlu1 %575   ;;  %718 = vst.msk [vmem:[%s1339_s1 + $0x5b] ss:$100 sm:$0x3] %vm8_vm0, %v568_v63  }
 0x132   :  { %719 = vst.msk [vmem:[%s1339_s1 + $0xc0] ss:$-100 sm:$0x3] %vm8_vm0, %v576_v0  }
 0x134   :  { %v584_v1 = vpop.permute.xlu0 %583  }
 0x135   :  { %v592_v2 = vpop.permute.xlu1 %591   ;;  %720 = vst.msk [vmem:[%s1339_s1 + $0xc1] ss:$-100 sm:$0x3] %vm8_vm0, %v584_v1  }
 0x136   :  { %721 = vst.msk [vmem:[%s1339_s1 + $0xc2] ss:$-100 sm:$0x3] %vm8_vm0, %v592_v2  }
 0x138   :  { %v600_v3 = vpop.permute.xlu0 %599  }
 0x139   :  { %v606_v4 = vpop.permute.xlu1 %605   ;;  %722 = vst.msk [vmem:[%s1339_s1 + $0xc3] ss:$-100 sm:$0x3] %vm8_vm0, %v600_v3  }
 0x13a   :  { %723 = vst.msk [vmem:[%s1339_s1 + $0x60] ss:$100 sm:$0x3] %vm8_vm0, %v606_v4  }
 0x13c   :  { %v612_v5 = vpop.permute.xlu0 %611  }
 0x13d   :  { %v618_v6 = vpop.permute.xlu1 %617   ;;  %724 = vst.msk [vmem:[%s1339_s1 + $0x61] ss:$100 sm:$0x3] %vm8_vm0, %v612_v5  }
 0x13e   :  { %725 = vst.msk [vmem:[%s1339_s1 + $0x62] ss:$100 sm:$0x3] %vm8_vm0, %v618_v6  }
 0x140   :  { %v624_v7 = vpop.permute.xlu0 %623  }
 0x141   :  { %726 = vst.msk [vmem:[%s1339_s1 + $0x63] ss:$100 sm:$0x3] %vm8_vm0, %v624_v7  }

// kernel: model_sl2_forward.1
= control target key start
LH: loop header
LB: loop body
LE: loop exit
PB: predicated region body
PF: predicated region fallthrough
CT: control target
= control target key end

     0   :  { %17 = vsyncpa [#allocation11], 0  ;;  %s5560_s27 = smov 2   ;;  %vm243_vm0 = vcmask 15360   ;;  %s7782_s0 = inlined_call_operand.vmem [shape: f32[232,2], index: 0, kind: input, shape index: {}]   ;;  %s7783_s1 = inlined_call_operand.vmem [shape: f32[200,1], index: 1, kind: input, shape index: {}]   ;;  %s7784_s2 = inlined_call_operand.vmem [shape: bf16[18,32], index: 2, kind: input, shape index: {}]   ;;  %s7785_s3 = inlined_call_operand.vmem [shape: f32[1,32], index: 3, kind: input, shape index: {}]   ;;  %s7786_s4 = inlined_call_operand.vmem [shape: bf16[288,64], index: 4, kind: input, shape index: {}]   ;;  %s7787_s5 = inlined_call_operand.vmem [shape: f32[1,64], index: 5, kind: input, shape index: {}]   ;;  %s7788_s6 = inlined_call_operand.vmem [shape: bf16[1024,128], index: 6, kind: input, shape index: {}]   ;;  %s7789_s7 = inlined_call_operand.vmem [shape: f32[1,128], index: 7, kind: input, shape index: {}]   ;;  %s7790_s8 = inlined_call_operand.vmem [shape: bf16[128,64], index: 8, kind: input, shape index: {}]   ;;  %s7791_s9 = inlined_call_operand.vmem [shape: f32[1,64], index: 9, kind: input, shape index: {}]   ;;  %s7792_s10 = inlined_call_operand.vmem [shape: bf16[64,64], index: 10, kind: input, shape index: {}]   ;;  %s7793_s11 = inlined_call_operand.vmem [shape: f32[1,64], index: 11, kind: input, shape index: {}]   ;;  %s7794_s12 = inlined_call_operand.hbm [shape: f32[2,64], index: 12, kind: output, shape index: {}]  }
   0x1   :  { %v74_v0 = vld [vmem:[%s7788_s6] sm:$0xff]  ;;  %v76_v1 = vld [vmem:[%s7788_s6 + $0x8] sm:$0xff]  ;;  %v78_v2 = vld [vmem:[%s7788_s6 + $0x10] sm:$0xff] }
   0x2   :  { %75 = vst [vmem:[#allocation8] sm:$0xff] %v74_v0  ;;  %77 = vst [vmem:[#allocation8 + $0x8] sm:$0xff] %v76_v1  ;;  %v80_v3 = vld [vmem:[%s7788_s6 + $0x18] sm:$0xff]  ;;  %v82_v4 = vld [vmem:[%s7788_s6 + $0x20] sm:$0xff] }
   0x3   :  { %79 = vst [vmem:[#allocation8 + $0x10] sm:$0xff] %v78_v2  ;;  %81 = vst [vmem:[#allocation8 + $0x18] sm:$0xff] %v80_v3  ;;  %v84_v5 = vld [vmem:[%s7788_s6 + $0x28] sm:$0xff]  ;;  %v86_v6 = vld [vmem:[%s7788_s6 + $0x30] sm:$0xff] }
   0x4   :  { %83 = vst [vmem:[#allocation8 + $0x20] sm:$0xff] %v82_v4  ;;  %v88_v7 = vld [vmem:[%s7788_s6 + $0x38] sm:$0xff]  ;;  %85 = vst [vmem:[#allocation8 + $0x28] sm:$0xff] %v84_v5  ;;  %v90_v8 = vld [vmem:[%s7788_s6 + $0x40] sm:$0xff] }
   0x5   :  { %87 = vst [vmem:[#allocation8 + $0x30] sm:$0xff] %v86_v6  ;;  %89 = vst [vmem:[#allocation8 + $0x38] sm:$0xff] %v88_v7  ;;  %v92_v9 = vld [vmem:[%s7788_s6 + $0x48] sm:$0xff]  ;;  %v94_v10 = vld [vmem:[%s7788_s6 + $0x50] sm:$0xff] }
   0x6   :  { %91 = vst [vmem:[#allocation8 + $0x40] sm:$0xff] %v90_v8  ;;  %93 = vst [vmem:[#allocation8 + $0x48] sm:$0xff] %v92_v9  ;;  %v96_v11 = vld [vmem:[%s7788_s6 + $0x58] sm:$0xff]  ;;  %v98_v12 = vld [vmem:[%s7788_s6 + $0x60] sm:$0xff] }
   0x7   :  { %95 = vst [vmem:[#allocation8 + $0x50] sm:$0xff] %v94_v10  ;;  %v100_v13 = vld [vmem:[%s7788_s6 + $0x68] sm:$0xff]  ;;  %97 = vst [vmem:[#allocation8 + $0x58] sm:$0xff] %v96_v11  ;;  %v102_v14 = vld [vmem:[%s7788_s6 + $0x70] sm:$0xff] }
   0x8   :  { %99 = vst [vmem:[#allocation8 + $0x60] sm:$0xff] %v98_v12  ;;  %101 = vst [vmem:[#allocation8 + $0x68] sm:$0xff] %v100_v13  ;;  %v104_v15 = vld [vmem:[%s7788_s6 + $0x78] sm:$0xff]  ;;  %v106_v16 = vld [vmem:[%s7788_s6 + $0x80] sm:$0xff] }
   0x9   :  { %103 = vst [vmem:[#allocation8 + $0x70] sm:$0xff] %v102_v14  ;;  %105 = vst [vmem:[#allocation8 + $0x78] sm:$0xff] %v104_v15  ;;  %v108_v17 = vld [vmem:[%s7788_s6 + $0x88] sm:$0xff]  ;;  %v110_v18 = vld [vmem:[%s7788_s6 + $0x90] sm:$0xff] }
   0xa   :  { %107 = vst [vmem:[#allocation8 + $0x80] sm:$0xff] %v106_v16  ;;  %v112_v19 = vld [vmem:[%s7788_s6 + $0x98] sm:$0xff]  ;;  %109 = vst [vmem:[#allocation8 + $0x88] sm:$0xff] %v108_v17  ;;  %v114_v20 = vld [vmem:[%s7788_s6 + $0xa0] sm:$0xff] }
   0xb   :  { %111 = vst [vmem:[#allocation8 + $0x90] sm:$0xff] %v110_v18  ;;  %113 = vst [vmem:[#allocation8 + $0x98] sm:$0xff] %v112_v19  ;;  %v116_v21 = vld [vmem:[%s7788_s6 + $0xa8] sm:$0xff]  ;;  %v118_v22 = vld [vmem:[%s7788_s6 + $0xb0] sm:$0xff] }
   0xc   :  { %115 = vst [vmem:[#allocation8 + $0xa0] sm:$0xff] %v114_v20  ;;  %117 = vst [vmem:[#allocation8 + $0xa8] sm:$0xff] %v116_v21  ;;  %v120_v23 = vld [vmem:[%s7788_s6 + $0xb8] sm:$0xff]  ;;  %v122_v24 = vld [vmem:[%s7788_s6 + $0xc0] sm:$0xff] }
   0xd   :  { %119 = vst [vmem:[#allocation8 + $0xb0] sm:$0xff] %v118_v22  ;;  %v124_v25 = vld [vmem:[%s7788_s6 + $0xc8] sm:$0xff]  ;;  %121 = vst [vmem:[#allocation8 + $0xb8] sm:$0xff] %v120_v23  ;;  %v126_v26 = vld [vmem:[%s7788_s6 + $0xd0] sm:$0xff] }
   0xe   :  { %123 = vst [vmem:[#allocation8 + $0xc0] sm:$0xff] %v122_v24  ;;  %125 = vst [vmem:[#allocation8 + $0xc8] sm:$0xff] %v124_v25  ;;  %v128_v27 = vld [vmem:[%s7788_s6 + $0xd8] sm:$0xff]  ;;  %v130_v28 = vld [vmem:[%s7788_s6 + $0xe0] sm:$0xff] }
   0xf   :  { %127 = vst [vmem:[#allocation8 + $0xd0] sm:$0xff] %v126_v26  ;;  %129 = vst [vmem:[#allocation8 + $0xd8] sm:$0xff] %v128_v27  ;;  %v132_v29 = vld [vmem:[%s7788_s6 + $0xe8] sm:$0xff]  ;;  %v134_v30 = vld [vmem:[%s7788_s6 + $0xf0] sm:$0xff] }
  0x10   :  { %131 = vst [vmem:[#allocation8 + $0xe0] sm:$0xff] %v130_v28  ;;  %v136_v31 = vld [vmem:[%s7788_s6 + $0xf8] sm:$0xff]  ;;  %133 = vst [vmem:[#allocation8 + $0xe8] sm:$0xff] %v132_v29  ;;  %v138_v32 = vld [vmem:[%s7788_s6 + $0x100] sm:$0xff] }
  0x11   :  { %135 = vst [vmem:[#allocation8 + $0xf0] sm:$0xff] %v134_v30  ;;  %137 = vst [vmem:[#allocation8 + $0xf8] sm:$0xff] %v136_v31  ;;  %v140_v33 = vld [vmem:[%s7788_s6 + $0x108] sm:$0xff]  ;;  %v142_v34 = vld [vmem:[%s7788_s6 + $0x110] sm:$0xff] }
  0x12   :  { %139 = vst [vmem:[#allocation8 + $0x100] sm:$0xff] %v138_v32  ;;  %141 = vst [vmem:[#allocation8 + $0x108] sm:$0xff] %v140_v33  ;;  %v144_v35 = vld [vmem:[%s7788_s6 + $0x118] sm:$0xff]  ;;  %v146_v36 = vld [vmem:[%s7788_s6 + $0x120] sm:$0xff] }
  0x13   :  { %143 = vst [vmem:[#allocation8 + $0x110] sm:$0xff] %v142_v34  ;;  %v148_v37 = vld [vmem:[%s7788_s6 + $0x128] sm:$0xff]  ;;  %145 = vst [vmem:[#allocation8 + $0x118] sm:$0xff] %v144_v35  ;;  %v150_v38 = vld [vmem:[%s7788_s6 + $0x130] sm:$0xff] }
  0x14   :  { %147 = vst [vmem:[#allocation8 + $0x120] sm:$0xff] %v146_v36  ;;  %149 = vst [vmem:[#allocation8 + $0x128] sm:$0xff] %v148_v37  ;;  %v152_v39 = vld [vmem:[%s7788_s6 + $0x138] sm:$0xff]  ;;  %v154_v40 = vld [vmem:[%s7788_s6 + $0x140] sm:$0xff] }
  0x15   :  { %151 = vst [vmem:[#allocation8 + $0x130] sm:$0xff] %v150_v38  ;;  %153 = vst [vmem:[#allocation8 + $0x138] sm:$0xff] %v152_v39  ;;  %v156_v41 = vld [vmem:[%s7788_s6 + $0x148] sm:$0xff]  ;;  %v158_v42 = vld [vmem:[%s7788_s6 + $0x150] sm:$0xff] }
  0x16   :  { %155 = vst [vmem:[#allocation8 + $0x140] sm:$0xff] %v154_v40  ;;  %v160_v43 = vld [vmem:[%s7788_s6 + $0x158] sm:$0xff]  ;;  %157 = vst [vmem:[#allocation8 + $0x148] sm:$0xff] %v156_v41  ;;  %v162_v44 = vld [vmem:[%s7788_s6 + $0x160] sm:$0xff] }
  0x17   :  { %159 = vst [vmem:[#allocation8 + $0x150] sm:$0xff] %v158_v42  ;;  %161 = vst [vmem:[#allocation8 + $0x158] sm:$0xff] %v160_v43  ;;  %v164_v45 = vld [vmem:[%s7788_s6 + $0x168] sm:$0xff]  ;;  %v166_v46 = vld [vmem:[%s7788_s6 + $0x170] sm:$0xff] }
  0x18   :  { %163 = vst [vmem:[#allocation8 + $0x160] sm:$0xff] %v162_v44  ;;  %165 = vst [vmem:[#allocation8 + $0x168] sm:$0xff] %v164_v45  ;;  %v168_v47 = vld [vmem:[%s7788_s6 + $0x178] sm:$0xff]  ;;  %v170_v48 = vld [vmem:[%s7788_s6 + $0x180] sm:$0xff] }
  0x19   :  { %167 = vst [vmem:[#allocation8 + $0x170] sm:$0xff] %v166_v46  ;;  %v172_v49 = vld [vmem:[%s7788_s6 + $0x188] sm:$0xff]  ;;  %169 = vst [vmem:[#allocation8 + $0x178] sm:$0xff] %v168_v47  ;;  %v174_v50 = vld [vmem:[%s7788_s6 + $0x190] sm:$0xff] }
  0x1a   :  { %171 = vst [vmem:[#allocation8 + $0x180] sm:$0xff] %v170_v48  ;;  %173 = vst [vmem:[#allocation8 + $0x188] sm:$0xff] %v172_v49  ;;  %v176_v51 = vld [vmem:[%s7788_s6 + $0x198] sm:$0xff]  ;;  %v178_v52 = vld [vmem:[%s7788_s6 + $0x1a0] sm:$0xff] }
  0x1b   :  { %175 = vst [vmem:[#allocation8 + $0x190] sm:$0xff] %v174_v50  ;;  %177 = vst [vmem:[#allocation8 + $0x198] sm:$0xff] %v176_v51  ;;  %v180_v53 = vld [vmem:[%s7788_s6 + $0x1a8] sm:$0xff]  ;;  %v182_v54 = vld [vmem:[%s7788_s6 + $0x1b0] sm:$0xff] }
  0x1c   :  { %179 = vst [vmem:[#allocation8 + $0x1a0] sm:$0xff] %v178_v52  ;;  %v184_v55 = vld [vmem:[%s7788_s6 + $0x1b8] sm:$0xff]  ;;  %181 = vst [vmem:[#allocation8 + $0x1a8] sm:$0xff] %v180_v53  ;;  %v186_v56 = vld [vmem:[%s7788_s6 + $0x1c0] sm:$0xff] }
  0x1d   :  { %183 = vst [vmem:[#allocation8 + $0x1b0] sm:$0xff] %v182_v54  ;;  %185 = vst [vmem:[#allocation8 + $0x1b8] sm:$0xff] %v184_v55  ;;  %v188_v57 = vld [vmem:[%s7788_s6 + $0x1c8] sm:$0xff]  ;;  %v190_v58 = vld [vmem:[%s7788_s6 + $0x1d0] sm:$0xff] }
  0x1e   :  { %187 = vst [vmem:[#allocation8 + $0x1c0] sm:$0xff] %v186_v56  ;;  %189 = vst [vmem:[#allocation8 + $0x1c8] sm:$0xff] %v188_v57  ;;  %v192_v59 = vld [vmem:[%s7788_s6 + $0x1d8] sm:$0xff]  ;;  %v194_v60 = vld [vmem:[%s7788_s6 + $0x1e0] sm:$0xff] }
  0x1f   :  { %191 = vst [vmem:[#allocation8 + $0x1d0] sm:$0xff] %v190_v58  ;;  %v196_v61 = vld [vmem:[%s7788_s6 + $0x1e8] sm:$0xff]  ;;  %193 = vst [vmem:[#allocation8 + $0x1d8] sm:$0xff] %v192_v59  ;;  %v198_v62 = vld [vmem:[%s7788_s6 + $0x1f0] sm:$0xff] }
  0x20   :  { %195 = vst [vmem:[#allocation8 + $0x1e0] sm:$0xff] %v194_v60  ;;  %197 = vst [vmem:[#allocation8 + $0x1e8] sm:$0xff] %v196_v61  ;;  %v200_v63 = vld [vmem:[%s7788_s6 + $0x1f8] sm:$0xff]  ;;  %v269_v1 = vld [vmem:[%s7782_s0 + $0x6] sm:$0xff] }
  0x21   :  { %199 = vst [vmem:[#allocation8 + $0x1f0] sm:$0xff] %v198_v62  ;;  %201 = vst [vmem:[#allocation8 + $0x1f8] sm:$0xff] %v200_v63  ;;  %v271_v0 = vld [vmem:[%s7782_s0 + $0x16] sm:$0xff]  ;;  %319 = vrot.lane.b32.xlu0 %v269_v1, %s5560_s27  ;;  %v272_v2 = vld [vmem:[%s7782_s0 + $0x1e] sm:$0xff] }
  0x22   :  { %323 = vrot.lane.b32.xlu1 %v271_v0, %s5560_s27  ;;  %v270_v3 = vld [vmem:[%s7782_s0 + $0xe] sm:$0xff]  ;;  %v273_v5 = vld [vmem:[%s7782_s0 + $0x26] sm:$0xff]  ;;  %v276_v6 = vld [vmem:[%s7782_s0 + $0x3e] sm:$0xff] }
  0x23   :  { %v274_v4 = vld [vmem:[%s7782_s0 + $0x2e] sm:$0xff]  ;;  %v275_v7 = vld [vmem:[%s7782_s0 + $0x36] sm:$0xff]  ;;  %v277_v9 = vld [vmem:[%s7782_s0 + $0x46] sm:$0xff] }
  0x24   :  { %v278_v8 = vld [vmem:[%s7782_s0 + $0x4e] sm:$0xff]  ;;  %v280_v10 = vld [vmem:[%s7782_s0 + $0x5e] sm:$0xff]  ;;  %v279_v11 = vld [vmem:[%s7782_s0 + $0x56] sm:$0xff] }
  0x25   :  { %321 = vrot.lane.b32.xlu0 %v270_v3, %s5560_s27  ;;  %v220_v12 = vld [vmem:[%s7782_s0 + $0x15] sm:$0xff]  ;;  %v218_v13 = vld [vmem:[%s7782_s0 + $0x5] sm:$0xff]  ;;  %v221_v15 = vld [vmem:[%s7782_s0 + $0x1d] sm:$0xff] }
  0x26   :  { %325 = vrot.lane.b32.xlu1 %v272_v2, %s5560_s27  ;;  %246 = vst.msk [vmem:[#allocation2 + $0x10] sm:$0xff] %vm243_vm0, %v220_v12  ;;  %v282_v14 = vld [vmem:[%s7782_s0 + $0x6e] sm:$0xff]  ;;  %244 = vst.msk [vmem:[#allocation2] sm:$0xff] %vm243_vm0, %v218_v13  ;;  %v281_v17 = vld [vmem:[%s7782_s0 + $0x66] sm:$0xff] }
  0x27   :  { %v219_v16 = vld [vmem:[%s7782_s0 + $0xd] sm:$0xff]  ;;  %247 = vst.msk [vmem:[#allocation2 + $0x18] sm:$0xff] %vm243_vm0, %v221_v15  ;;  %v222_v19 = vld [vmem:[%s7782_s0 + $0x25] sm:$0xff]  ;;  %v225_v20 = vld [vmem:[%s7782_s0 + $0x3d] sm:$0xff] }
  0x28   :  { %245 = vst.msk [vmem:[#allocation2 + $0x8] sm:$0xff] %vm243_vm0, %v219_v16  ;;  %v223_v18 = vld [vmem:[%s7782_s0 + $0x2d] sm:$0xff]  ;;  %v224_v21 = vld [vmem:[%s7782_s0 + $0x35] sm:$0xff]  ;;  %248 = vst.msk [vmem:[#allocation2 + $0x20] sm:$0xff] %vm243_vm0, %v222_v19 }
  0x29   :  { %327 = vrot.lane.b32.xlu0 %v273_v5, %s5560_s27  ;;  %249 = vst.msk [vmem:[#allocation2 + $0x28] sm:$0xff] %vm243_vm0, %v223_v18  ;;  %251 = vst.msk [vmem:[#allocation2 + $0x38] sm:$0xff] %vm243_vm0, %v225_v20  ;;  %v227_v22 = vld [vmem:[%s7782_s0 + $0x4d] sm:$0xff]  ;;  %v226_v23 = vld [vmem:[%s7782_s0 + $0x45] sm:$0xff] }
  0x2a   :  { %329 = vrot.lane.b32.xlu1 %v274_v4, %s5560_s27  ;;  %250 = vst.msk [vmem:[#allocation2 + $0x30] sm:$0xff] %vm243_vm0, %v224_v21  ;;  %253 = vst.msk [vmem:[#allocation2 + $0x48] sm:$0xff] %vm243_vm0, %v227_v22  ;;  %v229_v24 = vld [vmem:[%s7782_s0 + $0x5d] sm:$0xff]  ;;  %v228_v26 = vld [vmem:[%s7782_s0 + $0x55] sm:$0xff] }
  0x2b   :  { %v284_v25 = vld [vmem:[%s7782_s0 + $0x7e] sm:$0xff]  ;;  %252 = vst.msk [vmem:[#allocation2 + $0x40] sm:$0xff] %vm243_vm0, %v226_v23  ;;  %255 = vst.msk [vmem:[#allocation2 + $0x58] sm:$0xff] %vm243_vm0, %v229_v24  ;;  %v283_v27 = vld [vmem:[%s7782_s0 + $0x76] sm:$0xff] }
  0x2c   :  { %254 = vst.msk [vmem:[#allocation2 + $0x50] sm:$0xff] %vm243_vm0, %v228_v26  ;;  %v231_v28 = vld [vmem:[%s7782_s0 + $0x6d] sm:$0xff]  ;;  %v230_v29 = vld [vmem:[%s7782_s0 + $0x65] sm:$0xff]  ;;  %v233_v30 = vld [vmem:[%s7782_s0 + $0x7d] sm:$0xff] }
  0x2d   :  { %331 = vrot.lane.b32.xlu0 %v275_v7, %s5560_s27  ;;  %257 = vst.msk [vmem:[#allocation2 + $0x68] sm:$0xff] %vm243_vm0, %v231_v28  ;;  %256 = vst.msk [vmem:[#allocation2 + $0x60] sm:$0xff] %vm243_vm0, %v230_v29  ;;  %v232_v31 = vld [vmem:[%s7782_s0 + $0x75] sm:$0xff]  ;;  %v235_v32 = vld [vmem:[%s7782_s0 + $0x8d] sm:$0xff] }
  0x2e   :  { %333 = vrot.lane.b32.xlu1 %v276_v6, %s5560_s27  ;;  %259 = vst.msk [vmem:[#allocation2 + $0x78] sm:$0xff] %vm243_vm0, %v233_v30  ;;  %258 = vst.msk [vmem:[#allocation2 + $0x70] sm:$0xff] %vm243_vm0, %v232_v31  ;;  %v234_v33 = vld [vmem:[%s7782_s0 + $0x85] sm:$0xff]  ;;  %v237_v34 = vld [vmem:[%s7782_s0 + $0x9d] sm:$0xff] }
  0x2f   :  { %261 = vst.msk [vmem:[#allocation2 + $0x88] sm:$0xff] %vm243_vm0, %v235_v32  ;;  %v286_v35 = vld [vmem:[%s7782_s0 + $0x8e] sm:$0xff]  ;;  %v285_v36 = vld [vmem:[%s7782_s0 + $0x86] sm:$0xff]  ;;  %260 = vst.msk [vmem:[#allocation2 + $0x80] sm:$0xff] %vm243_vm0, %v234_v33 }
  0x30   :  { %263 = vst.msk [vmem:[#allocation2 + $0x98] sm:$0xff] %vm243_vm0, %v237_v34  ;;  %v236_v37 = vld [vmem:[%s7782_s0 + $0x95] sm:$0xff]  ;;  %v239_v38 = vld [vmem:[%s7782_s0 + $0xad] sm:$0xff]  ;;  %v238_v39 = vld [vmem:[%s7782_s0 + $0xa5] sm:$0xff] }
  0x31   :  { %335 = vrot.lane.b32.xlu0 %v277_v9, %s5560_s27  ;;  %262 = vst.msk [vmem:[#allocation2 + $0x90] sm:$0xff] %vm243_vm0, %v236_v37  ;;  %v288_v40 = vld [vmem:[%s7782_s0 + $0x9e] sm:$0xff]  ;;  %v287_v41 = vld [vmem:[%s7782_s0 + $0x96] sm:$0xff]  ;;  %265 = vst.msk [vmem:[#allocation2 + $0xa8] sm:$0xff] %vm243_vm0, %v239_v38 }
  0x32   :  { %337 = vrot.lane.b32.xlu1 %v278_v8, %s5560_s27  ;;  %264 = vst.msk [vmem:[#allocation2 + $0xa0] sm:$0xff] %vm243_vm0, %v238_v39  ;;  %v241_v42 = vld [vmem:[%s7782_s0 + $0xbd] sm:$0xff]  ;;  %v240_v43 = vld [vmem:[%s7782_s0 + $0xb5] sm:$0xff] }
  0x33   :  { %267 = vst.msk [vmem:[#allocation2 + $0xb8] sm:$0xff] %vm243_vm0, %v241_v42  ;;  %266 = vst.msk [vmem:[#allocation2 + $0xb0] sm:$0xff] %vm243_vm0, %v240_v43 }
  0x35   :  { %339 = vrot.lane.b32.xlu0 %v279_v11, %s5560_s27 }
  0x36   :  { %341 = vrot.lane.b32.xlu1 %v280_v10, %s5560_s27 }
  0x39   :  { %343 = vrot.lane.b32.xlu0 %v281_v17, %s5560_s27 }
  0x3a   :  { %345 = vrot.lane.b32.xlu1 %v282_v14, %s5560_s27 }
  0x3d   :  { %347 = vrot.lane.b32.xlu0 %v283_v27, %s5560_s27 }
  0x3e   :  { %349 = vrot.lane.b32.xlu1 %v284_v25, %s5560_s27 }
  0x41   :  { %351 = vrot.lane.b32.xlu0 %v285_v36, %s5560_s27 }
  0x42   :  { %353 = vrot.lane.b32.xlu1 %v286_v35, %s5560_s27 }
  0x43   :  { %209 = vsyncadd [#allocation9], 8192  ;;  %v242_v44 = vld [vmem:[%s7782_s0 + $0xc5] sm:$0xff]  ;;  %v290_v45 = vld [vmem:[%s7782_s0 + $0xae] sm:$0xff]  ;;  %s5561_s17 = smov 4   ;;  %s5562_s24 = smov 6  }
  0x44   :  { %v289_v46 = vld [vmem:[%s7782_s0 + $0xa6] sm:$0xff]  ;;  %268 = vst.msk [vmem:[#allocation2 + $0xc0] sm:$0xff] %vm243_vm0, %v242_v44  ;;  %v292_v47 = vld [vmem:[%s7782_s0 + $0xbe] sm:$0xff]  ;;  %v291_v48 = vld [vmem:[%s7782_s0 + $0xb6] sm:$0xff]  ;;  %s5563_s29 = smov 8   ;;  %s5564_s18 = smov 10  }
  0x45   :  { %355 = vrot.lane.b32.xlu0 %v287_v41, %s5560_s27  ;;  %v420_v49 = vld [vmem:[%s7782_s0 + $0x7] sm:$0xff]  ;;  %v422_v51 = vld [vmem:[%s7782_s0 + $0x17] sm:$0xff]  ;;  %v421_v52 = vld [vmem:[%s7782_s0 + $0xf] sm:$0xff]  ;;  %vm1574_vm1 = vcmask 1040384   ;;  %v5565_v5 = vmov 0.0   ;;  %s5566_s21 = smov 12  }
  0x46   :  { %357 = vrot.lane.b32.xlu1 %v288_v40, %s5560_s27  ;;  %v293_v50 = vld [vmem:[%s7782_s0 + $0xc6] sm:$0xff]  ;;  %v6056_v55 = vld [vmem:[%s7782_s0 + $0x37] sm:$0xff]  ;;  %v6061_v56 = vld [vmem:[%s7782_s0 + $0x2f] sm:$0xff]  ;;  %5274 = vmatprep.subr.bf16.mxu0 %v5565_v5  ;;  %s5567_s6 = smov 14   ;;  %vm5568_vm2 = vmmov 0   ;;  %s5569_s15 = smov 16  }
  0x47   :  { %v424_v53 = vld [vmem:[%s7782_s0 + $0x27] sm:$0xff]  ;;  %v423_v54 = vld [vmem:[%s7782_s0 + $0x1f] sm:$0xff]  ;;  %v6084_v59 = vld [vmem:[%s7782_s0 + $0x57] sm:$0xff]  ;;  %5278 = vmatprep.mubr.msk.bf16.mxu0 %vm5568_vm2, %v5565_v5  ;;  %vm394_vm3 = vcmask 31760   ;;  %vm545_vm4 = vcmask 48160   ;;  %vm696_vm5 = vcmask 64560  }
  0x48   :  { %v6070_v57 = vld [vmem:[%s7782_s0 + $0x47] sm:$0xff]  ;;  %v6075_v58 = vld [vmem:[%s7782_s0 + $0x3f] sm:$0xff]  ;;  %v6089_v60 = vld [vmem:[%s7782_s0 + $0x4f] sm:$0xff]  ;;  %vm847_vm6 = vcmask 80960   ;;  %vm998_vm7 = vcmask 97360   ;;  %vm1149_vm8 = vcmask 113760  }
  0x49   :  { %359 = vrot.lane.b32.xlu0 %v289_v46, %s5560_s27  ;;  %v6098_v61 = vld [vmem:[%s7782_s0 + $0x67] sm:$0xff]  ;;  %v6103_v62 = vld [vmem:[%s7782_s0 + $0x5f] sm:$0xff]  ;;  %v722_v0 = vld [vmem:[%s7782_s0 + $0x10] sm:$0xff]  ;;  %vm1300_vm9 = vcmask 130160   ;;  %vm1451_vm10 = vcmask 146560   ;;  %vm1534_vm11 = vcmask 146432  }
  0x4a   :  { %361 = vrot.lane.b32.xlu1 %v290_v45, %s5560_s27  ;;  %v723_v63 = vld [vmem:[%s7782_s0 + $0x18] sm:$0xff]  ;;  %v5436_v3 = vld [vmem:[%s7784_s2 + $0x8] ss:$0 sps:$4 sm:$0x11]   ;;  %v5437_v7 = vld [vmem:[%s7784_s2] sm:$0xff]   ;;  %vm210_vm12 = vcmask 261120  }
  0x4b   :  { %v874_v1 = vld [vmem:[%s7782_s0 + $0x19] sm:$0xff]  ;;  %v873_v2 = vld [vmem:[%s7782_s0 + $0x11] sm:$0xff]  ;;  %v1025_v4 = vld [vmem:[%s7782_s0 + $0x21] sm:$0xff]  ;;  %v1576_v6 = vsel %vm1574_vm1, %v5436_v3, 0  ;;  %211 = vst.msk [vmem:[#allocation3] sm:$0xff] %vm210_vm12, %v5565_v5  ;;  %s5571_s2 = smov 32  }
  0x4c   :  { %5275 = vmatpush3.bf16.msra.mxu0 %v1576_v6  ;;  %v1176_v8 = vld [vmem:[%s7782_s0 + $0x22] sm:$0xff]  ;;  %v1175_v9 = vld [vmem:[%s7782_s0 + $0x1a] sm:$0xff]  ;;  %v1027_v15 = vld [vmem:[%s7782_s0 + $0x31] sm:$0xff]  ;;  %212 = vst.msk [vmem:[#allocation3 + $0x8] sm:$0xff] %vm210_vm12, %v5565_v5  ;;  %s5572_s20 = smov 64   ;;  %s5573_s26 = smov 96  }
  0x4d   :  { %363 = vrot.lane.b32.xlu0 %v291_v48, %s5560_s27  ;;  %5276 = vmatprep.subr.bf16.mxu0 %v5565_v5  ;;  %v1327_v10 = vld [vmem:[%s7782_s0 + $0x23] sm:$0xff]  ;;  %v1326_v11 = vld [vmem:[%s7782_s0 + $0x1b] sm:$0xff]  ;;  %v1178_v16 = vld [vmem:[%s7782_s0 + $0x32] sm:$0xff]  ;;  %213 = vst.msk [vmem:[#allocation3 + $0xd8] sm:$0xff] %vm210_vm12, %v5565_v5  ;;  %vm2114_vm13 = vcmask 523520   ;;  %vm2265_vm14 = vcmask 785920  }
  0x4e   :  { %365 = vrot.lane.b32.xlu1 %v292_v47, %s5560_s27  ;;  %v725_v12 = vld [vmem:[%s7782_s0 + $0x28] sm:$0xff]  ;;  %v724_v13 = vld [vmem:[%s7782_s0 + $0x20] sm:$0xff]  ;;  %v1329_v20 = vld [vmem:[%s7782_s0 + $0x33] sm:$0xff]  ;;  %214 = vst.msk [vmem:[#allocation3 + $0xe0] sm:$0xff] %vm210_vm12, %v5565_v5  ;;  %vm2416_vm15 = vcmask 1048320   ;;  %vm215_vm0 = vcmask 523264  }
  0x4f   :  { %v876_v14 = vld [vmem:[%s7782_s0 + $0x29] sm:$0xff]  ;;  %v727_v26 = vld [vmem:[%s7782_s0 + $0x38] sm:$0xff]  ;;  %v1029_v33 = vld [vmem:[%s7782_s0 + $0x41] sm:$0xff]  ;;  %216 = vst.msk [vmem:[#allocation5 + $0xc8] sm:$0xff] %vm215_vm0, %v5565_v5  ;;  %vm3820_vm1 = vcmask 517120  }
  0x50   :  { %5277 = vmatpush3.bf16.msra.mxu0 %v5437_v7  ;;  %v1177_v17 = vld [vmem:[%s7782_s0 + $0x2a] sm:$0xff]  ;;  %v878_v30 = vld [vmem:[%s7782_s0 + $0x39] sm:$0xff]  ;;  %v1180_v36 = vld [vmem:[%s7782_s0 + $0x42] sm:$0xff]  ;;  %217 = vst.msk [vmem:[#allocation5 + $0xd0] sm:$0xff] %vm215_vm0, %v5565_v5 }
  0x51   :  { %367 = vrot.lane.b32.xlu0 %v293_v50, %s5560_s27  ;;  %5330 = vmatprep.subr.bf16.mxu0 %v5565_v5  ;;  %v1328_v21 = vld [vmem:[%s7782_s0 + $0x2b] sm:$0xff]  ;;  %v1179_v37 = vld [vmem:[%s7782_s0 + $0x3a] sm:$0xff]  ;;  %v1331_v40 = vld [vmem:[%s7782_s0 + $0x43] sm:$0xff] }
  0x52   :  { %470 = vrot.lane.b32.xlu1 %v420_v49, %s5561_s17  ;;  %v726_v27 = vld [vmem:[%s7782_s0 + $0x30] sm:$0xff]  ;;  %v1330_v41 = vld [vmem:[%s7782_s0 + $0x3b] sm:$0xff]  ;;  %v729_v46 = vld [vmem:[%s7782_s0 + $0x48] sm:$0xff] }
  0x53   :  { %v728_v47 = vld [vmem:[%s7782_s0 + $0x40] sm:$0xff]  ;;  %v880_v50 = vld [vmem:[%s7782_s0 + $0x49] sm:$0xff]  ;;  %v731_v7 = vld [vmem:[%s7782_s0 + $0x58] sm:$0xff] }
  0x55   :  { %472 = vrot.lane.b32.xlu0 %v421_v52, %s5561_s17 }
  0x56   :  { %474 = vrot.lane.b32.xlu1 %v422_v51, %s5561_s17 }
  0x59   :  { %476 = vrot.lane.b32.xlu0 %v423_v54, %s5561_s17 }
  0x5a   :  { %478 = vrot.lane.b32.xlu1 %v424_v53, %s5561_s17 }
  0x5d   :  { %480 = vrot.lane.b32.xlu0 %v6061_v56, %s5561_s17 }
  0x5e   :  { %482 = vrot.lane.b32.xlu1 %v6056_v55, %s5561_s17 }
  0x61   :  { %484 = vrot.lane.b32.xlu0 %v6075_v58, %s5561_s17 }
  0x62   :  { %486 = vrot.lane.b32.xlu1 %v6070_v57, %s5561_s17 }
  0x65   :  { %488 = vrot.lane.b32.xlu0 %v6089_v60, %s5561_s17 }
  0x66   :  { %490 = vrot.lane.b32.xlu1 %v6084_v59, %s5561_s17 }
  0x69   :  { %492 = vrot.lane.b32.xlu0 %v6103_v62, %s5561_s17 }
  0x6a   :  { %494 = vrot.lane.b32.xlu1 %v6098_v61, %s5561_s17 }
  0x6d   :  { %621 = vrot.lane.b32.xlu0 %v421_v52, %s5562_s24 }
  0x6e   :  { %623 = vrot.lane.b32.xlu1 %v422_v51, %s5562_s24 }
  0x71   :  { %772 = vrot.lane.b32.xlu0 %v722_v0, %s5563_s29  ;;  %v1333_v0 = vld [vmem:[%s7782_s0 + $0x53] sm:$0xff] }
  0x72   :  { %774 = vrot.lane.b32.xlu1 %v723_v63, %s5563_s29 }
  0x75   :  { %923 = vrot.lane.b32.xlu0 %v873_v2, %s5564_s18 }
  0x76   :  { %925 = vrot.lane.b32.xlu1 %v874_v1, %s5564_s18 }
  0x79   :  { %1074 = vrot.lane.b32.xlu0 %v874_v1, %s5566_s21  ;;  %v1332_v1 = vld [vmem:[%s7782_s0 + $0x4b] sm:$0xff] }
  0x7a   :  { %1076 = vrot.lane.b32.xlu1 %v1025_v4, %s5566_s21 }
  0x7d   :  { %1225 = vrot.lane.b32.xlu0 %v1175_v9, %s5567_s6 }
  0x7e   :  { %1227 = vrot.lane.b32.xlu1 %v1176_v8, %s5567_s6  ;;  %v730_v8 = vld [vmem:[%s7782_s0 + $0x50] sm:$0xff] }
  0x81   :  { %1376 = vrot.lane.b32.xlu0 %v1326_v11, %s5569_s15 }
  0x82   :  { %1378 = vrot.lane.b32.xlu1 %v1327_v10, %s5569_s15 }
  0x85   :  { %625 = vrot.lane.b32.xlu0 %v423_v54, %s5562_s24 }
  0x86   :  { %627 = vrot.lane.b32.xlu1 %v424_v53, %s5562_s24  ;;  %v1031_v53 = vld [vmem:[%s7782_s0 + $0x51] sm:$0xff] }
  0x89   :  { %776 = vrot.lane.b32.xlu0 %v724_v13, %s5563_s29 }
  0x8a   :  { %778 = vrot.lane.b32.xlu1 %v725_v12, %s5563_s29  ;;  %v1033_v12 = vld [vmem:[%s7782_s0 + $0x61] sm:$0xff] }
  0x8d   :  { %927 = vrot.lane.b32.xlu0 %v1025_v4, %s5564_s18 }
  0x8e   :  { %929 = vrot.lane.b32.xlu1 %v876_v14, %s5564_s18 }
  0x91   :  { %1078 = vrot.lane.b32.xlu0 %v876_v14, %s5566_s21 }
  0x92   :  { %1080 = vrot.lane.b32.xlu1 %v1027_v15, %s5566_s21 }
  0x93   :  { %v320_v19 = vpop.permute.xlu0 %319 }
  0x94   :  { %v324_v18 = vpop.permute.xlu1 %323  ;;  %395 = vst.msk [vmem:[#allocation2] sm:$0xff] %vm394_vm3, %v320_v19  ;;  %v1335_v19 = vld [vmem:[%s7782_s0 + $0x63] sm:$0xff] }
  0x95   :  { %397 = vst.msk [vmem:[#allocation2 + $0x10] sm:$0xff] %vm394_vm3, %v324_v18  ;;  %1229 = vrot.lane.b32.xlu0 %v1177_v17, %s5567_s6 }
  0x96   :  { %1231 = vrot.lane.b32.xlu1 %v1178_v16, %s5567_s6  ;;  %v1183_v16 = vld [vmem:[%s7782_s0 + $0x5a] sm:$0xff] }
  0x97   :  { %v322_v23 = vpop.permute.xlu0 %321 }
  0x98   :  { %v326_v22 = vpop.permute.xlu1 %325  ;;  %396 = vst.msk [vmem:[#allocation2 + $0x8] sm:$0xff] %vm394_vm3, %v322_v23 }
  0x99   :  { %398 = vst.msk [vmem:[#allocation2 + $0x18] sm:$0xff] %vm394_vm3, %v326_v22  ;;  %1380 = vrot.lane.b32.xlu0 %v1328_v21, %s5569_s15 }
  0x9a   :  { %1382 = vrot.lane.b32.xlu1 %v1329_v20, %s5569_s15  ;;  %v1334_v20 = vld [vmem:[%s7782_s0 + $0x5b] sm:$0xff] }
  0x9b   :  { %v328_v25 = vpop.permute.xlu0 %327 }
  0x9c   :  { %v330_v24 = vpop.permute.xlu1 %329  ;;  %399 = vst.msk [vmem:[#allocation2 + $0x20] sm:$0xff] %vm394_vm3, %v328_v25  ;;  %v733_v25 = vld [vmem:[%s7782_s0 + $0x68] sm:$0xff] }
  0x9d   :  { %400 = vst.msk [vmem:[#allocation2 + $0x28] sm:$0xff] %vm394_vm3, %v330_v24  ;;  %629 = vrot.lane.b32.xlu0 %v6061_v56, %s5562_s24  ;;  %v1182_v56 = vld [vmem:[%s7782_s0 + $0x52] sm:$0xff] }
  0x9e   :  { %631 = vrot.lane.b32.xlu1 %v6056_v55, %s5562_s24 }
  0x9f   :  { %v332_v29 = vpop.permute.xlu0 %331 }
  0xa0   :  { %v334_v28 = vpop.permute.xlu1 %333  ;;  %401 = vst.msk [vmem:[#allocation2 + $0x30] sm:$0xff] %vm394_vm3, %v332_v29 }
  0xa1   :  { %402 = vst.msk [vmem:[#allocation2 + $0x38] sm:$0xff] %vm394_vm3, %v334_v28  ;;  %780 = vrot.lane.b32.xlu0 %v726_v27, %s5563_s29 }
  0xa2   :  { %782 = vrot.lane.b32.xlu1 %v727_v26, %s5563_s29  ;;  %v732_v26 = vld [vmem:[%s7782_s0 + $0x60] sm:$0xff] }
  0xa3   :  { %v336_v32 = vpop.permute.xlu0 %335 }
  0xa4   :  { %v338_v31 = vpop.permute.xlu1 %337  ;;  %403 = vst.msk [vmem:[#allocation2 + $0x40] sm:$0xff] %vm394_vm3, %v336_v32 }
  0xa5   :  { %404 = vst.msk [vmem:[#allocation2 + $0x48] sm:$0xff] %vm394_vm3, %v338_v31  ;;  %931 = vrot.lane.b32.xlu0 %v1027_v15, %s5564_s18  ;;  %v1184_v15 = vld [vmem:[%s7782_s0 + $0x62] sm:$0xff] }
  0xa6   :  { %933 = vrot.lane.b32.xlu1 %v878_v30, %s5564_s18 }
  0xa7   :  { %v340_v35 = vpop.permute.xlu0 %339 }
  0xa8   :  { %v342_v34 = vpop.permute.xlu1 %341  ;;  %405 = vst.msk [vmem:[#allocation2 + $0x50] sm:$0xff] %vm394_vm3, %v340_v35 }
  0xa9   :  { %406 = vst.msk [vmem:[#allocation2 + $0x58] sm:$0xff] %vm394_vm3, %v342_v34  ;;  %1082 = vrot.lane.b32.xlu0 %v878_v30, %s5566_s21  ;;  %v1035_v30 = vld [vmem:[%s7782_s0 + $0x71] sm:$0xff] }
  0xaa   :  { %1084 = vrot.lane.b32.xlu1 %v1029_v33, %s5566_s21  ;;  %v1185_v34 = vld [vmem:[%s7782_s0 + $0x6a] sm:$0xff] }
  0xab   :  { %v344_v39 = vpop.permute.xlu0 %343 }
  0xac   :  { %v346_v38 = vpop.permute.xlu1 %345  ;;  %407 = vst.msk [vmem:[#allocation2 + $0x60] sm:$0xff] %vm394_vm3, %v344_v39 }
  0xad   :  { %408 = vst.msk [vmem:[#allocation2 + $0x68] sm:$0xff] %vm394_vm3, %v346_v38  ;;  %1233 = vrot.lane.b32.xlu0 %v1179_v37, %s5567_s6  ;;  %v1337_v37 = vld [vmem:[%s7782_s0 + $0x73] sm:$0xff]  ;;  %v1336_v38 = vld [vmem:[%s7782_s0 + $0x6b] sm:$0xff] }
  0xae   :  { %1235 = vrot.lane.b32.xlu1 %v1180_v36, %s5567_s6 }
  0xaf   :  { %v348_v43 = vpop.permute.xlu0 %347 }
  0xb0   :  { %v350_v42 = vpop.permute.xlu1 %349  ;;  %409 = vst.msk [vmem:[#allocation2 + $0x70] sm:$0xff] %vm394_vm3, %v348_v43 }
  0xb1   :  { %410 = vst.msk [vmem:[#allocation2 + $0x78] sm:$0xff] %vm394_vm3, %v350_v42  ;;  %1384 = vrot.lane.b32.xlu0 %v1330_v41, %s5569_s15  ;;  %v583_v41 = vld [vmem:[%s7782_s0 + $0x6f] sm:$0xff] }
  0xb2   :  { %1386 = vrot.lane.b32.xlu1 %v1331_v40, %s5569_s15 }
  0xb3   :  { %v352_v45 = vpop.permute.xlu0 %351 }
  0xb4   :  { %v354_v44 = vpop.permute.xlu1 %353  ;;  %411 = vst.msk [vmem:[#allocation2 + $0x80] sm:$0xff] %vm394_vm3, %v352_v45 }
  0xb5   :  { %412 = vst.msk [vmem:[#allocation2 + $0x88] sm:$0xff] %vm394_vm3, %v354_v44  ;;  %633 = vrot.lane.b32.xlu0 %v6075_v58, %s5562_s24 }
  0xb6   :  { %635 = vrot.lane.b32.xlu1 %v6070_v57, %s5562_s24  ;;  %v1181_v57 = vld [vmem:[%s7782_s0 + $0x4a] sm:$0xff] }
  0xb7   :  { %v356_v49 = vpop.permute.xlu0 %355 }
  0xb8   :  { %v358_v48 = vpop.permute.xlu1 %357  ;;  %413 = vst.msk [vmem:[#allocation2 + $0x90] sm:$0xff] %vm394_vm3, %v356_v49 }
  0xb9   :  { %414 = vst.msk [vmem:[#allocation2 + $0x98] sm:$0xff] %vm394_vm3, %v358_v48  ;;  %784 = vrot.lane.b32.xlu0 %v728_v47, %s5563_s29  ;;  %v734_v47 = vld [vmem:[%s7782_s0 + $0x70] sm:$0xff] }
  0xba   :  { %786 = vrot.lane.b32.xlu1 %v729_v46, %s5563_s29  ;;  %v584_v48 = vld [vmem:[%s7782_s0 + $0x77] sm:$0xff] }
  0xbb   :  { %v360_v52 = vpop.permute.xlu0 %359 }
  0xbc   :  { %v362_v51 = vpop.permute.xlu1 %361  ;;  %415 = vst.msk [vmem:[#allocation2 + $0xa0] sm:$0xff] %vm394_vm3, %v360_v52 }
  0xbd   :  { %416 = vst.msk [vmem:[#allocation2 + $0xa8] sm:$0xff] %vm394_vm3, %v362_v51  ;;  %935 = vrot.lane.b32.xlu0 %v1029_v33, %s5564_s18  ;;  %v1186_v33 = vld [vmem:[%s7782_s0 + $0x72] sm:$0xff] }
  0xbe   :  { %937 = vrot.lane.b32.xlu1 %v880_v50, %s5564_s18  ;;  %v735_v51 = vld [vmem:[%s7782_s0 + $0x78] sm:$0xff] }
  0xbf   :  { %v364_v55 = vpop.permute.xlu0 %363 }
  0xc0   :  { %v366_v54 = vpop.permute.xlu1 %365  ;;  %417 = vst.msk [vmem:[#allocation2 + $0xb0] sm:$0xff] %vm394_vm3, %v364_v55 }
  0xc1   :  { %418 = vst.msk [vmem:[#allocation2 + $0xb8] sm:$0xff] %vm394_vm3, %v366_v54  ;;  %1086 = vrot.lane.b32.xlu0 %v880_v50, %s5566_s21  ;;  %v1036_v54 = vld [vmem:[%s7782_s0 + $0x79] sm:$0xff] }
  0xc2   :  { %1088 = vrot.lane.b32.xlu1 %v1031_v53, %s5566_s21 }
  0xc3   :  { %v368_v63 = vpop.permute.xlu0 %367 }
  0xc4   :  { %v471_v58 = vpop.permute.xlu1 %470  ;;  %419 = vst.msk [vmem:[#allocation2 + $0xc0] sm:$0xff] %vm394_vm3, %v368_v63  ;;  %vm3835_vm3 = vcmask 1041920  }
  0xc5   :  { %546 = vst.msk [vmem:[#allocation2] sm:$0xff] %vm545_vm4, %v471_v58  ;;  %1237 = vrot.lane.b32.xlu0 %v1181_v57, %s5567_s6  ;;  %v1187_v57 = vld [vmem:[%s7782_s0 + $0x7a] sm:$0xff] }
  0xc6   :  { %1239 = vrot.lane.b32.xlu1 %v1182_v56, %s5567_s6  ;;  %v1037_v58 = vld [vmem:[%s7782_s0 + $0x81] sm:$0xff] }
  0xc7   :  { %v473_v3 = vpop.permute.xlu0 %472 }
  0xc8   :  { %v475_v2 = vpop.permute.xlu1 %474  ;;  %547 = vst.msk [vmem:[#allocation2 + $0x8] sm:$0xff] %vm545_vm4, %v473_v3 }
  0xc9   :  { %548 = vst.msk [vmem:[#allocation2 + $0x10] sm:$0xff] %vm545_vm4, %v475_v2  ;;  %1388 = vrot.lane.b32.xlu0 %v1332_v1, %s5569_s15  ;;  %v1338_v1 = vld [vmem:[%s7782_s0 + $0x7b] sm:$0xff] }
  0xca   :  { %1390 = vrot.lane.b32.xlu1 %v1333_v0, %s5569_s15  ;;  %v1188_v2 = vld [vmem:[%s7782_s0 + $0x82] sm:$0xff] }
  0xcb   :  { %v477_v6 = vpop.permute.xlu0 %476 }
  0xcc   :  { %v479_v4 = vpop.permute.xlu1 %478  ;;  %549 = vst.msk [vmem:[#allocation2 + $0x18] sm:$0xff] %vm545_vm4, %v477_v6  ;;  %v1339_v6 = vld [vmem:[%s7782_s0 + $0x83] sm:$0xff] }
  0xcd   :  { %550 = vst.msk [vmem:[#allocation2 + $0x20] sm:$0xff] %vm545_vm4, %v479_v4  ;;  %637 = vrot.lane.b32.xlu0 %v6089_v60, %s5562_s24 }
  0xce   :  { %639 = vrot.lane.b32.xlu1 %v6084_v59, %s5562_s24  ;;  %v882_v59 = vld [vmem:[%s7782_s0 + $0x59] sm:$0xff] }
  0xcf   :  { %v481_v10 = vpop.permute.xlu0 %480 }
  0xd0   :  { %v483_v9 = vpop.permute.xlu1 %482  ;;  %551 = vst.msk [vmem:[#allocation2 + $0x28] sm:$0xff] %vm545_vm4, %v481_v10 }
  0xd1   :  { %552 = vst.msk [vmem:[#allocation2 + $0x30] sm:$0xff] %vm545_vm4, %v483_v9  ;;  %788 = vrot.lane.b32.xlu0 %v730_v8, %s5563_s29 }
  0xd2   :  { %790 = vrot.lane.b32.xlu1 %v731_v7, %s5563_s29 }
  0xd3   :  { %v485_v11 = vpop.permute.xlu0 %484 }
  0xd4   :  { %v487_v60 = vpop.permute.xlu1 %486  ;;  %553 = vst.msk [vmem:[#allocation2 + $0x38] sm:$0xff] %vm545_vm4, %v485_v11 }
  0xd5   :  { %554 = vst.msk [vmem:[#allocation2 + $0x40] sm:$0xff] %vm545_vm4, %v487_v60  ;;  %939 = vrot.lane.b32.xlu0 %v1031_v53, %s5564_s18  ;;  %v585_v60 = vld [vmem:[%s7782_s0 + $0x7f] sm:$0xff] }
  0xd6   :  { %941 = vrot.lane.b32.xlu1 %v882_v59, %s5564_s18 }
  0xd7   :  { %v489_v14 = vpop.permute.xlu0 %488 }
  0xd8   :  { %v491_v13 = vpop.permute.xlu1 %490  ;;  %555 = vst.msk [vmem:[#allocation2 + $0x48] sm:$0xff] %vm545_vm4, %v489_v14  ;;  %v586_v14 = vld [vmem:[%s7782_s0 + $0x87] sm:$0xff] }
  0xd9   :  { %556 = vst.msk [vmem:[#allocation2 + $0x50] sm:$0xff] %vm545_vm4, %v491_v13  ;;  %1090 = vrot.lane.b32.xlu0 %v882_v59, %s5566_s21  ;;  %v736_v13 = vld [vmem:[%s7782_s0 + $0x80] sm:$0xff] }
  0xda   :  { %1092 = vrot.lane.b32.xlu1 %v1033_v12, %s5566_s21 }
  0xdb   :  { %v493_v18 = vpop.permute.xlu0 %492 }
  0xdc   :  { %v495_v17 = vpop.permute.xlu1 %494  ;;  %557 = vst.msk [vmem:[#allocation2 + $0x58] sm:$0xff] %vm545_vm4, %v493_v18 }
  0xdd   :  { %558 = vst.msk [vmem:[#allocation2 + $0x60] sm:$0xff] %vm545_vm4, %v495_v17  ;;  %1241 = vrot.lane.b32.xlu0 %v1183_v16, %s5567_s6  ;;  %v737_v17 = vld [vmem:[%s7782_s0 + $0x88] sm:$0xff] }
  0xde   :  { %1243 = vrot.lane.b32.xlu1 %v1184_v15, %s5567_s6 }
  0xdf   :  { %v622_v22 = vpop.permute.xlu0 %621 }
  0xe0   :  { %v624_v21 = vpop.permute.xlu1 %623  ;;  %697 = vst.msk [vmem:[#allocation2] sm:$0xff] %vm696_vm5, %v622_v22 }
  0xe1   :  { %698 = vst.msk [vmem:[#allocation2 + $0x8] sm:$0xff] %vm696_vm5, %v624_v21  ;;  %1392 = vrot.lane.b32.xlu0 %v1334_v20, %s5569_s15  ;;  %v1038_v20 = vld [vmem:[%s7782_s0 + $0x89] sm:$0xff] }
  0xe2   :  { %1394 = vrot.lane.b32.xlu1 %v1335_v19, %s5569_s15 }
  0xe3   :  { %v773_v24 = vpop.permute.xlu0 %772 }
  0xe4   :  { %v775_v23 = vpop.permute.xlu1 %774  ;;  %848 = vst.msk [vmem:[#allocation2] sm:$0xff] %vm847_vm6, %v773_v24  ;;  %v1039_v24 = vld [vmem:[%s7782_s0 + $0x91] sm:$0xff] }
  0xe5   :  { %849 = vst.msk [vmem:[#allocation2 + $0x8] sm:$0xff] %vm847_vm6, %v775_v23  ;;  %641 = vrot.lane.b32.xlu0 %v6103_v62, %s5562_s24  ;;  %v1189_v23 = vld [vmem:[%s7782_s0 + $0x8a] sm:$0xff] }
  0xe6   :  { %643 = vrot.lane.b32.xlu1 %v6098_v61, %s5562_s24  ;;  %v884_v61 = vld [vmem:[%s7782_s0 + $0x69] sm:$0xff] }
  0xe7   :  { %v924_v28 = vpop.permute.xlu0 %923 }
  0xe8   :  { %v926_v27 = vpop.permute.xlu1 %925  ;;  %999 = vst.msk [vmem:[#allocation2] sm:$0xff] %vm998_vm7, %v924_v28  ;;  %v1190_v28 = vld [vmem:[%s7782_s0 + $0x92] sm:$0xff] }
  0xe9   :  { %1000 = vst.msk [vmem:[#allocation2 + $0x8] sm:$0xff] %vm998_vm7, %v926_v27  ;;  %792 = vrot.lane.b32.xlu0 %v732_v26, %s5563_s29  ;;  %v1340_v27 = vld [vmem:[%s7782_s0 + $0x8b] sm:$0xff] }
  0xea   :  { %794 = vrot.lane.b32.xlu1 %v733_v25, %s5563_s29 }
  0xeb   :  { %v1075_v29 = vpop.permute.xlu0 %1074 }
  0xec   :  { %v1077_v62 = vpop.permute.xlu1 %1076  ;;  %1150 = vst.msk [vmem:[#allocation2] sm:$0xff] %vm1149_vm8, %v1075_v29 }
  0xed   :  { %1151 = vst.msk [vmem:[#allocation2 + $0x8] sm:$0xff] %vm1149_vm8, %v1077_v62  ;;  %943 = vrot.lane.b32.xlu0 %v1033_v12, %s5564_s18 }
  0xee   :  { %945 = vrot.lane.b32.xlu1 %v884_v61, %s5564_s18 }
  0xef   :  { %v1226_v32 = vpop.permute.xlu0 %1225 }
  0xf0   :  { %v1228_v31 = vpop.permute.xlu1 %1227  ;;  %1301 = vst.msk [vmem:[#allocation2] sm:$0xff] %vm1300_vm9, %v1226_v32  ;;  %v1341_v32 = vld [vmem:[%s7782_s0 + $0x93] sm:$0xff] }
  0xf1   :  { %1302 = vst.msk [vmem:[#allocation2 + $0x8] sm:$0xff] %vm1300_vm9, %v1228_v31  ;;  %1094 = vrot.lane.b32.xlu0 %v884_v61, %s5566_s21 }
  0xf2   :  { %1096 = vrot.lane.b32.xlu1 %v1035_v30, %s5566_s21 }
  0xf3   :  { %v1377_v36 = vpop.permute.xlu0 %1376 }
  0xf4   :  { %v1379_v35 = vpop.permute.xlu1 %1378  ;;  %1452 = vst.msk [vmem:[#allocation2] sm:$0xff] %vm1451_vm10, %v1377_v36  ;;  %v587_v36 = vld [vmem:[%s7782_s0 + $0x8f] sm:$0xff] }
  0xf5   :  { %1453 = vst.msk [vmem:[#allocation2 + $0x8] sm:$0xff] %vm1451_vm10, %v1379_v35  ;;  %1245 = vrot.lane.b32.xlu0 %v1185_v34, %s5567_s6  ;;  %v5570_v35 = vmov 0  }
  0xf6   :  { %1247 = vrot.lane.b32.xlu1 %v1186_v33, %s5567_s6  ;;  %5434 = vset.pattern.permute.xlu0 %v5570_v35 }
  0xf7   :  { %v626_v40 = vpop.permute.xlu0 %625  ;;  %5435 = vset.pattern.permute.xlu1 %v5570_v35 }
  0xf8   :  { %v628_v39 = vpop.permute.xlu1 %627  ;;  %699 = vst.msk [vmem:[#allocation2 + $0x10] sm:$0xff] %vm696_vm5, %v626_v40  ;;  %v588_v40 = vld [vmem:[%s7782_s0 + $0x97] sm:$0xff] }
  0xf9   :  { %700 = vst.msk [vmem:[#allocation2 + $0x18] sm:$0xff] %vm696_vm5, %v628_v39  ;;  %1396 = vrot.lane.b32.xlu0 %v1336_v38, %s5569_s15  ;;  %v738_v39 = vld [vmem:[%s7782_s0 + $0x90] sm:$0xff] }
  0xfa   :  { %1398 = vrot.lane.b32.xlu1 %v1337_v37, %s5569_s15 }
  0xfb   :  { %v777_v43 = vpop.permute.xlu0 %776  ;;  %v1477_v44 = vld [vmem:[#allocation2] sm:$0xff] }
  0xfc   :  { %v779_v42 = vpop.permute.xlu1 %778  ;;  %v1478_v45 = vld [vmem:[#allocation2 + $0x8] sm:$0xff]  ;;  %850 = vst.msk [vmem:[#allocation2 + $0x10] sm:$0xff] %vm847_vm6, %v777_v43  ;;  %v739_v43 = vld [vmem:[%s7782_s0 + $0x98] sm:$0xff] }
  0xfd   :  { %851 = vst.msk [vmem:[#allocation2 + $0x18] sm:$0xff] %vm847_vm6, %v779_v42  ;;  %v1502_v46 = vpack.c.bf16 %v1478_v45, %v1477_v44  ;;  %496 = vrot.lane.b32.xlu0 %v583_v41, %s5561_s17 }
  0xfe   :  { %645 = vrot.lane.b32.xlu1 %v583_v41, %s5562_s24 }
  0xff   :  { %5279 = vmatmul.mubr.msk.bf16.vlgmr.msra.gmra.mxu0 %vm1534_vm11, %v1502_v46  ;;  %v928_v50 = vpop.permute.xlu0 %927  ;;  %v1040_v46 = vld [vmem:[%s7782_s0 + $0x99] sm:$0xff] }
 0x100   :  { %v930_v49 = vpop.permute.xlu1 %929  ;;  %5282 = vmatprep.mubr.msk.bf16.mxu0 %vm5568_vm2, %v5565_v5  ;;  %1001 = vst.msk [vmem:[#allocation2 + $0x10] sm:$0xff] %vm998_vm7, %v928_v50  ;;  %v1041_v50 = vld [vmem:[%s7782_s0 + $0xa1] sm:$0xff] }
 0x101   :  { %1002 = vst.msk [vmem:[#allocation2 + $0x18] sm:$0xff] %vm998_vm7, %v930_v49  ;;  %647 = vrot.lane.b32.xlu0 %v584_v48, %s5562_s24  ;;  %v1191_v49 = vld [vmem:[%s7782_s0 + $0x9a] sm:$0xff] }
 0x102   :  { %796 = vrot.lane.b32.xlu1 %v734_v47, %s5563_s29 }
 0x103   :  { %v1079_v53 = vpop.permute.xlu0 %1078 }
 0x104   :  { %v1081_v52 = vpop.permute.xlu1 %1080  ;;  %1152 = vst.msk [vmem:[#allocation2 + $0x10] sm:$0xff] %vm1149_vm8, %v1079_v53 }
 0x105   :  { %1153 = vst.msk [vmem:[#allocation2 + $0x18] sm:$0xff] %vm1149_vm8, %v1081_v52  ;;  %798 = vrot.lane.b32.xlu0 %v735_v51, %s5563_s29 }
 0x106   :  { %947 = vrot.lane.b32.xlu1 %v1035_v30, %s5564_s18 }
 0x107   :  { %v1230_v56 = vpop.permute.xlu0 %1229 }
 0x108   :  { %v1232_v55 = vpop.permute.xlu1 %1231  ;;  %1303 = vst.msk [vmem:[#allocation2 + $0x10] sm:$0xff] %vm1300_vm9, %v1230_v56  ;;  %v1342_v56 = vld [vmem:[%s7782_s0 + $0x9b] sm:$0xff] }
 0x109   :  { %1304 = vst.msk [vmem:[#allocation2 + $0x18] sm:$0xff] %vm1300_vm9, %v1232_v55  ;;  %949 = vrot.lane.b32.xlu0 %v1036_v54, %s5564_s18 }
 0x10a   :  { %1098 = vrot.lane.b32.xlu1 %v1036_v54, %s5566_s21 }
 0x10b   :  { %v1381_v0 = vpop.permute.xlu0 %1380 }
 0x10c   :  { %v1383_v63 = vpop.permute.xlu1 %1382  ;;  %1454 = vst.msk [vmem:[#allocation2 + $0x10] sm:$0xff] %vm1451_vm10, %v1381_v0  ;;  %v1343_v0 = vld [vmem:[%s7782_s0 + $0xa3] sm:$0xff] }
 0x10d   :  { %1455 = vst.msk [vmem:[#allocation2 + $0x18] sm:$0xff] %vm1451_vm10, %v1383_v63  ;;  %1100 = vrot.lane.b32.xlu0 %v1037_v58, %s5566_s21 }
 0x10e   :  { %1249 = vrot.lane.b32.xlu1 %v1187_v57, %s5567_s6  ;;  %v1192_v57 = vld [vmem:[%s7782_s0 + $0xa2] sm:$0xff] }
 0x10f   :  { %v630_v4 = vpop.permute.xlu0 %629 }
 0x110   :  { %v632_v3 = vpop.permute.xlu1 %631  ;;  %701 = vst.msk [vmem:[#allocation2 + $0x20] sm:$0xff] %vm696_vm5, %v630_v4 }
 0x111   :  { %702 = vst.msk [vmem:[#allocation2 + $0x28] sm:$0xff] %vm696_vm5, %v632_v3  ;;  %1251 = vrot.lane.b32.xlu0 %v1188_v2, %s5567_s6  ;;  %v589_v3 = vld [vmem:[%s7782_s0 + $0x9f] sm:$0xff] }
 0x112   :  { %1400 = vrot.lane.b32.xlu1 %v1338_v1, %s5569_s15 }
 0x113   :  { %v781_v8 = vpop.permute.xlu0 %780  ;;  %v1479_v9 = vld [vmem:[#allocation2 + $0x10] sm:$0xff] }
 0x114   :  { %v783_v7 = vpop.permute.xlu1 %782  ;;  %v1480_v10 = vld [vmem:[#allocation2 + $0x18] sm:$0xff]  ;;  %852 = vst.msk [vmem:[#allocation2 + $0x20] sm:$0xff] %vm847_vm6, %v781_v8  ;;  %v590_v8 = vld [vmem:[%s7782_s0 + $0xa7] sm:$0xff] }
 0x115   :  { %853 = vst.msk [vmem:[#allocation2 + $0x28] sm:$0xff] %vm847_vm6, %v783_v7  ;;  %v1503_v59 = vpack.c.bf16 %v1480_v10, %v1479_v9  ;;  %1402 = vrot.lane.b32.xlu0 %v1339_v6, %s5569_s15  ;;  %v740_v7 = vld [vmem:[%s7782_s0 + $0xa0] sm:$0xff] }
 0x116   :  { %498 = vrot.lane.b32.xlu1 %v584_v48, %s5561_s17 }
 0x117   :  { %5283 = vmatmul.mubr.msk.bf16.gmra.mxu0 %vm1534_vm11, %v1503_v59  ;;  %v932_v12 = vpop.permute.xlu0 %931  ;;  %v741_v59 = vld [vmem:[%s7782_s0 + $0xa8] sm:$0xff] }
 0x118   :  { %v934_v11 = vpop.permute.xlu1 %933  ;;  %5286 = vmatprep.mubr.msk.bf16.mxu0 %vm5568_vm2, %v5565_v5  ;;  %1003 = vst.msk [vmem:[#allocation2 + $0x20] sm:$0xff] %vm998_vm7, %v932_v12  ;;  %v1042_v12 = vld [vmem:[%s7782_s0 + $0xa9] sm:$0xff] }
 0x119   :  { %1004 = vst.msk [vmem:[#allocation2 + $0x28] sm:$0xff] %vm998_vm7, %v934_v11  ;;  %500 = vrot.lane.b32.xlu0 %v585_v60, %s5561_s17 }
 0x11a   :  { %649 = vrot.lane.b32.xlu1 %v585_v60, %s5562_s24 }
 0x11b   :  { %v1083_v16 = vpop.permute.xlu0 %1082 }
 0x11c   :  { %v1085_v15 = vpop.permute.xlu1 %1084  ;;  %1154 = vst.msk [vmem:[#allocation2 + $0x20] sm:$0xff] %vm1149_vm8, %v1083_v16 }
 0x11d   :  { %1155 = vst.msk [vmem:[#allocation2 + $0x28] sm:$0xff] %vm1149_vm8, %v1085_v15  ;;  %651 = vrot.lane.b32.xlu0 %v586_v14, %s5562_s24 }
 0x11e   :  { %800 = vrot.lane.b32.xlu1 %v736_v13, %s5563_s29 }
 0x11f   :  { %v1234_v19 = vpop.permute.xlu0 %1233 }
 0x120   :  { %v1236_v18 = vpop.permute.xlu1 %1235  ;;  %1305 = vst.msk [vmem:[#allocation2 + $0x20] sm:$0xff] %vm1300_vm9, %v1234_v19  ;;  %v1043_v19 = vld [vmem:[%s7782_s0 + $0xb1] sm:$0xff] }
 0x121   :  { %1306 = vst.msk [vmem:[#allocation2 + $0x28] sm:$0xff] %vm1300_vm9, %v1236_v18  ;;  %802 = vrot.lane.b32.xlu0 %v737_v17, %s5563_s29  ;;  %v1193_v18 = vld [vmem:[%s7782_s0 + $0xaa] sm:$0xff] }
 0x122   :  { %951 = vrot.lane.b32.xlu1 %v1037_v58, %s5564_s18 }
 0x123   :  { %v1385_v22 = vpop.permute.xlu0 %1384 }
 0x124   :  { %v1387_v21 = vpop.permute.xlu1 %1386  ;;  %1456 = vst.msk [vmem:[#allocation2 + $0x20] sm:$0xff] %vm1451_vm10, %v1385_v22  ;;  %v1344_v22 = vld [vmem:[%s7782_s0 + $0xab] sm:$0xff] }
 0x125   :  { %1457 = vst.msk [vmem:[#allocation2 + $0x28] sm:$0xff] %vm1451_vm10, %v1387_v21  ;;  %953 = vrot.lane.b32.xlu0 %v1038_v20, %s5564_s18 }
 0x126   :  { %1102 = vrot.lane.b32.xlu1 %v1038_v20, %s5566_s21 }
 0x127   :  { %v634_v26 = vpop.permute.xlu0 %633 }
 0x128   :  { %v636_v25 = vpop.permute.xlu1 %635  ;;  %703 = vst.msk [vmem:[#allocation2 + $0x30] sm:$0xff] %vm696_vm5, %v634_v26  ;;  %v1345_v26 = vld [vmem:[%s7782_s0 + $0xb3] sm:$0xff] }
 0x129   :  { %704 = vst.msk [vmem:[#allocation2 + $0x38] sm:$0xff] %vm696_vm5, %v636_v25  ;;  %1104 = vrot.lane.b32.xlu0 %v1039_v24, %s5566_s21 }
 0x12a   :  { %1253 = vrot.lane.b32.xlu1 %v1189_v23, %s5567_s6  ;;  %v1194_v23 = vld [vmem:[%s7782_s0 + $0xb2] sm:$0xff] }
 0x12b   :  { %v785_v62 = vpop.permute.xlu0 %784  ;;  %v1481_v29 = vld [vmem:[#allocation2 + $0x20] sm:$0xff] }
 0x12c   :  { %v787_v61 = vpop.permute.xlu1 %786  ;;  %v1482_v30 = vld [vmem:[#allocation2 + $0x28] sm:$0xff]  ;;  %854 = vst.msk [vmem:[#allocation2 + $0x30] sm:$0xff] %vm847_vm6, %v785_v62 }
 0x12d   :  { %855 = vst.msk [vmem:[#allocation2 + $0x38] sm:$0xff] %vm847_vm6, %v787_v61  ;;  %v1504_v31 = vpack.c.bf16 %v1482_v30, %v1481_v29  ;;  %1255 = vrot.lane.b32.xlu0 %v1190_v28, %s5567_s6  ;;  %v591_v61 = vld [vmem:[%s7782_s0 + $0xaf] sm:$0xff] }
 0x12e   :  { %1404 = vrot.lane.b32.xlu1 %v1340_v27, %s5569_s15  ;;  %v742_v30 = vld [vmem:[%s7782_s0 + $0xb0] sm:$0xff] }
 0x12f   :  { %5287 = vmatmul.mubr.msk.bf16.gmra.mxu0 %vm1534_vm11, %v1504_v31  ;;  %v936_v34 = vpop.permute.xlu0 %935  ;;  %v592_v31 = vld [vmem:[%s7782_s0 + $0xb7] sm:$0xff] }
 0x130   :  { %v938_v33 = vpop.permute.xlu1 %937  ;;  %5290 = vmatprep.mubr.msk.bf16.mxu0 %vm5568_vm2, %v5565_v5  ;;  %1005 = vst.msk [vmem:[#allocation2 + $0x30] sm:$0xff] %vm998_vm7, %v936_v34  ;;  %v743_v34 = vld [vmem:[%s7782_s0 + $0xb8] sm:$0xff] }
 0x131   :  { %1006 = vst.msk [vmem:[#allocation2 + $0x38] sm:$0xff] %vm998_vm7, %v938_v33  ;;  %1406 = vrot.lane.b32.xlu0 %v1341_v32, %s5569_s15 }
 0x132   :  { %502 = vrot.lane.b32.xlu1 %v586_v14, %s5561_s17 }
 0x133   :  { %v1087_v38 = vpop.permute.xlu0 %1086 }
 0x134   :  { %v1089_v37 = vpop.permute.xlu1 %1088  ;;  %1156 = vst.msk [vmem:[#allocation2 + $0x30] sm:$0xff] %vm1149_vm8, %v1087_v38 }
 0x135   :  { %1157 = vst.msk [vmem:[#allocation2 + $0x38] sm:$0xff] %vm1149_vm8, %v1089_v37  ;;  %504 = vrot.lane.b32.xlu0 %v587_v36, %s5561_s17 }
 0x136   :  { %653 = vrot.lane.b32.xlu1 %v587_v36, %s5562_s24 }
 0x137   :  { %v1238_v42 = vpop.permute.xlu0 %1237 }
 0x138   :  { %v1240_v41 = vpop.permute.xlu1 %1239  ;;  %1307 = vst.msk [vmem:[#allocation2 + $0x30] sm:$0xff] %vm1300_vm9, %v1238_v42 }
 0x139   :  { %1308 = vst.msk [vmem:[#allocation2 + $0x38] sm:$0xff] %vm1300_vm9, %v1240_v41  ;;  %655 = vrot.lane.b32.xlu0 %v588_v40, %s5562_s24 }
 0x13a   :  { %804 = vrot.lane.b32.xlu1 %v738_v39, %s5563_s29 }
 0x13b   :  { %v1389_v45 = vpop.permute.xlu0 %1388 }
 0x13c   :  { %v1391_v44 = vpop.permute.xlu1 %1390  ;;  %1458 = vst.msk [vmem:[#allocation2 + $0x30] sm:$0xff] %vm1451_vm10, %v1389_v45 }
 0x13d   :  { %1459 = vst.msk [vmem:[#allocation2 + $0x38] sm:$0xff] %vm1451_vm10, %v1391_v44  ;;  %806 = vrot.lane.b32.xlu0 %v739_v43, %s5563_s29  ;;  %v1195_v43 = vld [vmem:[%s7782_s0 + $0xba] sm:$0xff] }
 0x13e   :  { %955 = vrot.lane.b32.xlu1 %v1039_v24, %s5564_s18  ;;  %v1045_v44 = vld [vmem:[%s7782_s0 + $0xc1] sm:$0xff] }
 0x13f   :  { %v638_v48 = vpop.permute.xlu0 %637 }
 0x140   :  { %v640_v47 = vpop.permute.xlu1 %639  ;;  %705 = vst.msk [vmem:[#allocation2 + $0x40] sm:$0xff] %vm696_vm5, %v638_v48  ;;  %v1196_v48 = vld [vmem:[%s7782_s0 + $0xc2] sm:$0xff] }
 0x141   :  { %706 = vst.msk [vmem:[#allocation2 + $0x48] sm:$0xff] %vm696_vm5, %v640_v47  ;;  %957 = vrot.lane.b32.xlu0 %v1040_v46, %s5564_s18  ;;  %v1346_v47 = vld [vmem:[%s7782_s0 + $0xbb] sm:$0xff] }
 0x142   :  { %1106 = vrot.lane.b32.xlu1 %v1040_v46, %s5566_s21 }
 0x143   :  { %v789_v52 = vpop.permute.xlu0 %788  ;;  %v1483_v53 = vld [vmem:[#allocation2 + $0x30] sm:$0xff] }
 0x144   :  { %v791_v51 = vpop.permute.xlu1 %790  ;;  %v1484_v54 = vld [vmem:[#allocation2 + $0x38] sm:$0xff]  ;;  %856 = vst.msk [vmem:[#allocation2 + $0x40] sm:$0xff] %vm847_vm6, %v789_v52 }
 0x145   :  { %857 = vst.msk [vmem:[#allocation2 + $0x48] sm:$0xff] %vm847_vm6, %v791_v51  ;;  %v1505_v55 = vpack.c.bf16 %v1484_v54, %v1483_v53  ;;  %1108 = vrot.lane.b32.xlu0 %v1041_v50, %s5566_s21  ;;  %v1347_v51 = vld [vmem:[%s7782_s0 + $0xc3] sm:$0xff] }
 0x146   :  { %1257 = vrot.lane.b32.xlu1 %v1191_v49, %s5567_s6  ;;  %v593_v54 = vld [vmem:[%s7782_s0 + $0xbf] sm:$0xff] }
 0x147   :  { %5291 = vmatmul.mubr.msk.bf16.gmra.mxu0 %vm1534_vm11, %v1505_v55  ;;  %v940_v63 = vpop.permute.xlu0 %939 }
 0x148   :  { %v942_v58 = vpop.permute.xlu1 %941  ;;  %5294 = vmatprep.mubr.msk.bf16.mxu0 %vm5568_vm2, %v5565_v5  ;;  %1007 = vst.msk [vmem:[#allocation2 + $0x40] sm:$0xff] %vm998_vm7, %v940_v63 }
 0x149   :  { %1008 = vst.msk [vmem:[#allocation2 + $0x48] sm:$0xff] %vm998_vm7, %v942_v58  ;;  %1259 = vrot.lane.b32.xlu0 %v1192_v57, %s5567_s6  ;;  %v744_v57 = vld [vmem:[%s7782_s0 + $0xc0] sm:$0xff] }
 0x14a   :  { %1408 = vrot.lane.b32.xlu1 %v1342_v56, %s5569_s15  ;;  %v594_v58 = vld [vmem:[%s7782_s0 + $0xc7] sm:$0xff] }
 0x14b   :  { %v1091_v2 = vpop.permute.xlu0 %1090 }
 0x14c   :  { %v1093_v1 = vpop.permute.xlu1 %1092  ;;  %1158 = vst.msk [vmem:[#allocation2 + $0x40] sm:$0xff] %vm1149_vm8, %v1091_v2 }
 0x14d   :  { %1159 = vst.msk [vmem:[#allocation2 + $0x48] sm:$0xff] %vm1149_vm8, %v1093_v1  ;;  %1410 = vrot.lane.b32.xlu0 %v1343_v0, %s5569_s15  ;;  %v745_v1 = vld [vmem:[%s7782_s0 + $0xc8] sm:$0xff] }
 0x14e   :  { %506 = vrot.lane.b32.xlu1 %v588_v40, %s5561_s17  ;;  %v1044_v40 = vld [vmem:[%s7782_s0 + $0xb9] sm:$0xff] }
 0x14f   :  { %v1242_v6 = vpop.permute.xlu0 %1241 }
 0x150   :  { %v1244_v4 = vpop.permute.xlu1 %1243  ;;  %1309 = vst.msk [vmem:[#allocation2 + $0x40] sm:$0xff] %vm1300_vm9, %v1242_v6 }
 0x151   :  { %1310 = vst.msk [vmem:[#allocation2 + $0x48] sm:$0xff] %vm1300_vm9, %v1244_v4  ;;  %508 = vrot.lane.b32.xlu0 %v589_v3, %s5561_s17 }
 0x152   :  { %657 = vrot.lane.b32.xlu1 %v589_v3, %s5562_s24 }
 0x153   :  { %v1393_v10 = vpop.permute.xlu0 %1392 }
 0x154   :  { %v1395_v9 = vpop.permute.xlu1 %1394  ;;  %1460 = vst.msk [vmem:[#allocation2 + $0x40] sm:$0xff] %vm1451_vm10, %v1393_v10 }
 0x155   :  { %1461 = vst.msk [vmem:[#allocation2 + $0x48] sm:$0xff] %vm1451_vm10, %v1395_v9  ;;  %659 = vrot.lane.b32.xlu0 %v590_v8, %s5562_s24 }
 0x156   :  { %808 = vrot.lane.b32.xlu1 %v740_v7, %s5563_s29 }
 0x157   :  { %v642_v11 = vpop.permute.xlu0 %641 }
 0x158   :  { %v644_v60 = vpop.permute.xlu1 %643  ;;  %707 = vst.msk [vmem:[#allocation2 + $0x50] sm:$0xff] %vm696_vm5, %v642_v11 }
 0x159   :  { %708 = vst.msk [vmem:[#allocation2 + $0x58] sm:$0xff] %vm696_vm5, %v644_v60  ;;  %810 = vrot.lane.b32.xlu0 %v741_v59, %s5563_s29  ;;  %v1197_v59 = vld [vmem:[%s7782_s0 + $0xca] sm:$0xff] }
 0x15a   :  { %959 = vrot.lane.b32.xlu1 %v1041_v50, %s5564_s18  ;;  %v1047_v60 = vld [vmem:[%s7782_s0 + $0xd1] sm:$0xff] }
 0x15b   :  { %v793_v14 = vpop.permute.xlu0 %792  ;;  %v1485_v15 = vld [vmem:[#allocation2 + $0x40] sm:$0xff] }
 0x15c   :  { %v795_v13 = vpop.permute.xlu1 %794  ;;  %v1486_v16 = vld [vmem:[#allocation2 + $0x48] sm:$0xff]  ;;  %858 = vst.msk [vmem:[#allocation2 + $0x50] sm:$0xff] %vm847_vm6, %v793_v14  ;;  %v1198_v14 = vld [vmem:[%s7782_s0 + $0xd2] sm:$0xff] }
 0x15d   :  { %859 = vst.msk [vmem:[#allocation2 + $0x58] sm:$0xff] %vm847_vm6, %v795_v13  ;;  %v1506_v17 = vpack.c.bf16 %v1486_v16, %v1485_v15  ;;  %961 = vrot.lane.b32.xlu0 %v1042_v12, %s5564_s18  ;;  %v1348_v13 = vld [vmem:[%s7782_s0 + $0xcb] sm:$0xff] }
 0x15e   :  { %1110 = vrot.lane.b32.xlu1 %v1042_v12, %s5566_s21 }
 0x15f   :  { %5295 = vmatmul.mubr.msk.bf16.gmra.mxu0 %vm1534_vm11, %v1506_v17  ;;  %v944_v21 = vpop.permute.xlu0 %943  ;;  %v1349_v17 = vld [vmem:[%s7782_s0 + $0xd3] sm:$0xff] }
 0x160   :  { %v946_v20 = vpop.permute.xlu1 %945  ;;  %5298 = vmatprep.mubr.msk.bf16.mxu0 %vm5568_vm2, %v5565_v5  ;;  %1009 = vst.msk [vmem:[#allocation2 + $0x50] sm:$0xff] %vm998_vm7, %v944_v21  ;;  %v595_v21 = vld [vmem:[%s7782_s0 + $0xcf] sm:$0xff] }
 0x161   :  { %1010 = vst.msk [vmem:[#allocation2 + $0x58] sm:$0xff] %vm998_vm7, %v946_v20  ;;  %1112 = vrot.lane.b32.xlu0 %v1043_v19, %s5566_s21  ;;  %v746_v20 = vld [vmem:[%s7782_s0 + $0xd0] sm:$0xff] }
 0x162   :  { %1261 = vrot.lane.b32.xlu1 %v1193_v18, %s5567_s6 }
 0x163   :  { %v1095_v25 = vpop.permute.xlu0 %1094 }
 0x164   :  { %v1097_v24 = vpop.permute.xlu1 %1096  ;;  %1160 = vst.msk [vmem:[#allocation2 + $0x50] sm:$0xff] %vm1149_vm8, %v1095_v25 }
 0x165   :  { %1161 = vst.msk [vmem:[#allocation2 + $0x58] sm:$0xff] %vm1149_vm8, %v1097_v24  ;;  %1263 = vrot.lane.b32.xlu0 %v1194_v23, %s5567_s6  ;;  %v1048_v24 = vld [vmem:[%s7782_s0 + $0xd9] sm:$0xff] }
 0x166   :  { %1412 = vrot.lane.b32.xlu1 %v1344_v22, %s5569_s15 }
 0x167   :  { %v1246_v28 = vpop.permute.xlu0 %1245 }
 0x168   :  { %v1248_v27 = vpop.permute.xlu1 %1247  ;;  %1311 = vst.msk [vmem:[#allocation2 + $0x50] sm:$0xff] %vm1300_vm9, %v1246_v28  ;;  %v1199_v28 = vld [vmem:[%s7782_s0 + $0xda] sm:$0xff] }
 0x169   :  { %1312 = vst.msk [vmem:[#allocation2 + $0x58] sm:$0xff] %vm1300_vm9, %v1248_v27  ;;  %1414 = vrot.lane.b32.xlu0 %v1345_v26, %s5569_s15  ;;  %v1350_v27 = vld [vmem:[%s7782_s0 + $0xdb] sm:$0xff] }
 0x16a   :  { %510 = vrot.lane.b32.xlu1 %v590_v8, %s5561_s17  ;;  %v1046_v8 = vld [vmem:[%s7782_s0 + $0xc9] sm:$0xff] }
 0x16b   :  { %v1397_v29 = vpop.permute.xlu0 %1396 }
 0x16c   :  { %v1399_v62 = vpop.permute.xlu1 %1398  ;;  %1462 = vst.msk [vmem:[#allocation2 + $0x50] sm:$0xff] %vm1451_vm10, %v1397_v29 }
 0x16d   :  { %1463 = vst.msk [vmem:[#allocation2 + $0x58] sm:$0xff] %vm1451_vm10, %v1399_v62  ;;  %512 = vrot.lane.b32.xlu0 %v591_v61, %s5561_s17 }
 0x16e   :  { %661 = vrot.lane.b32.xlu1 %v591_v61, %s5562_s24 }
 0x16f   :  { %v497_v33 = vpop.permute.xlu0 %496 }
 0x170   :  { %v646_v32 = vpop.permute.xlu1 %645  ;;  %559 = vst.msk [vmem:[#allocation2 + $0x68] sm:$0xff] %vm545_vm4, %v497_v33  ;;  %v1739_v33 = vld [vmem:[%s7783_s1] sm:$0xff] }
 0x171   :  { %709 = vst.msk [vmem:[#allocation2 + $0x60] sm:$0xff] %vm696_vm5, %v646_v32  ;;  %663 = vrot.lane.b32.xlu0 %v592_v31, %s5562_s24  ;;  %v1740_v32 = vld [vmem:[%s7783_s1 + $0x8] sm:$0xff] }
 0x172   :  { %812 = vrot.lane.b32.xlu1 %v742_v30, %s5563_s29 }
 0x173   :  { %v648_v36 = vpop.permute.xlu0 %647  ;;  %v1487_v37 = vld [vmem:[#allocation2 + $0x50] sm:$0xff] }
 0x174   :  { %v797_v35 = vpop.permute.xlu1 %796  ;;  %v1488_v38 = vld [vmem:[#allocation2 + $0x58] sm:$0xff]  ;;  %710 = vst.msk [vmem:[#allocation2 + $0x68] sm:$0xff] %vm696_vm5, %v648_v36  ;;  %v1741_v36 = vld [vmem:[%s7783_s1 + $0x10] sm:$0xff] }
 0x175   :  { %860 = vst.msk [vmem:[#allocation2 + $0x60] sm:$0xff] %vm847_vm6, %v797_v35  ;;  %v1507_v39 = vpack.c.bf16 %v1488_v38, %v1487_v37  ;;  %814 = vrot.lane.b32.xlu0 %v743_v34, %s5563_s29  ;;  %v1742_v37 = vld [vmem:[%s7783_s1 + $0x18] sm:$0xff] }
 0x176   :  { %963 = vrot.lane.b32.xlu1 %v1043_v19, %s5564_s18 }
 0x177   :  { %5299 = vmatmul.mubr.msk.bf16.gmra.mxu0 %vm1534_vm11, %v1507_v39  ;;  %v799_v42 = vpop.permute.xlu0 %798 }
 0x178   :  { %v948_v41 = vpop.permute.xlu1 %947  ;;  %5302 = vmatprep.mubr.msk.bf16.mxu0 %vm5568_vm2, %v5565_v5  ;;  %861 = vst.msk [vmem:[#allocation2 + $0x68] sm:$0xff] %vm847_vm6, %v799_v42 }
 0x179   :  { %1011 = vst.msk [vmem:[#allocation2 + $0x60] sm:$0xff] %vm998_vm7, %v948_v41  ;;  %965 = vrot.lane.b32.xlu0 %v1044_v40, %s5564_s18  ;;  %v1744_v41 = vld [vmem:[%s7783_s1 + $0x28] sm:$0xff] }
 0x17a   :  { %1114 = vrot.lane.b32.xlu1 %v1044_v40, %s5566_s21  ;;  %v1743_v40 = vld [vmem:[%s7783_s1 + $0x20] sm:$0xff] }
 0x17b   :  { %v950_v46 = vpop.permute.xlu0 %949 }
 0x17c   :  { %v1099_v45 = vpop.permute.xlu1 %1098  ;;  %1012 = vst.msk [vmem:[#allocation2 + $0x68] sm:$0xff] %vm998_vm7, %v950_v46 }
 0x17d   :  { %1162 = vst.msk [vmem:[#allocation2 + $0x60] sm:$0xff] %vm1149_vm8, %v1099_v45  ;;  %1116 = vrot.lane.b32.xlu0 %v1045_v44, %s5566_s21  ;;  %v1746_v45 = vld [vmem:[%s7783_s1 + $0x38] sm:$0xff] }
 0x17e   :  { %1265 = vrot.lane.b32.xlu1 %v1195_v43, %s5567_s6 }
 0x17f   :  { %v1101_v50 = vpop.permute.xlu0 %1100 }
 0x180   :  { %v1250_v49 = vpop.permute.xlu1 %1249  ;;  %1163 = vst.msk [vmem:[#allocation2 + $0x68] sm:$0xff] %vm1149_vm8, %v1101_v50  ;;  %v1747_v50 = vld [vmem:[%s7783_s1 + $0x40] sm:$0xff] }
 0x181   :  { %1313 = vst.msk [vmem:[#allocation2 + $0x60] sm:$0xff] %vm1300_vm9, %v1250_v49  ;;  %1267 = vrot.lane.b32.xlu0 %v1196_v48, %s5567_s6  ;;  %v5438_v48 = vld [vmem:[%s7786_s4 + $0x88] sm:$0xff]  }
 0x182   :  { %1416 = vrot.lane.b32.xlu1 %v1346_v47, %s5569_s15  ;;  %5331 = vmatpush3.bf16.msra.mxu0 %v5438_v48 }
 0x183   :  { %v1252_v53 = vpop.permute.xlu0 %1251  ;;  %5332 = vmatprep.subr.bf16.mxu0 %v5565_v5 }
 0x184   :  { %v1401_v52 = vpop.permute.xlu1 %1400  ;;  %1314 = vst.msk [vmem:[#allocation2 + $0x68] sm:$0xff] %vm1300_vm9, %v1252_v53 }
 0x185   :  { %1464 = vst.msk [vmem:[#allocation2 + $0x60] sm:$0xff] %vm1451_vm10, %v1401_v52  ;;  %1418 = vrot.lane.b32.xlu0 %v1347_v51, %s5569_s15  ;;  %v1748_v51 = vld [vmem:[%s7783_s1 + $0x48] sm:$0xff] }
 0x186   :  { %514 = vrot.lane.b32.xlu1 %v592_v31, %s5561_s17 }
 0x187   :  { %v1403_v56 = vpop.permute.xlu0 %1402 }
 0x188   :  { %v499_v55 = vpop.permute.xlu1 %498  ;;  %1465 = vst.msk [vmem:[#allocation2 + $0x68] sm:$0xff] %vm1451_vm10, %v1403_v56 }
 0x189   :  { %560 = vst.msk [vmem:[#allocation2 + $0x70] sm:$0xff] %vm545_vm4, %v499_v55  ;;  %516 = vrot.lane.b32.xlu0 %v593_v54, %s5561_s17  ;;  %v5439_v55 = vld [vmem:[%s7786_s4 + $0x80] sm:$0xff]  }
 0x18a   :  { %665 = vrot.lane.b32.xlu1 %v593_v54, %s5562_s24  ;;  %5333 = vmatpush3.bf16.msra.mxu0 %v5439_v55 }
 0x18b   :  { %v501_v0 = vpop.permute.xlu0 %500 }
 0x18c   :  { %v650_v63 = vpop.permute.xlu1 %649  ;;  %561 = vst.msk [vmem:[#allocation2 + $0x78] sm:$0xff] %vm545_vm4, %v501_v0  ;;  %v1489_v4 = vld [vmem:[#allocation2 + $0x60] sm:$0xff] }
 0x18d   :  { %711 = vst.msk [vmem:[#allocation2 + $0x70] sm:$0xff] %vm696_vm5, %v650_v63  ;;  %667 = vrot.lane.b32.xlu0 %v594_v58, %s5562_s24 }
 0x18e   :  { %816 = vrot.lane.b32.xlu1 %v744_v57, %s5563_s29  ;;  %v1749_v57 = vld [vmem:[%s7783_s1 + $0x50] sm:$0xff] }
 0x18f   :  { %v652_v3 = vpop.permute.xlu0 %651  ;;  %v1490_v6 = vld [vmem:[#allocation2 + $0x68] sm:$0xff] }
 0x190   :  { %v801_v2 = vpop.permute.xlu1 %800  ;;  %712 = vst.msk [vmem:[#allocation2 + $0x78] sm:$0xff] %vm696_vm5, %v652_v3  ;;  %v1508_v7 = vpack.c.bf16 %v1490_v6, %v1489_v4  ;;  %v1752_v3 = vld [vmem:[%s7783_s1 + $0x68] sm:$0xff] }
 0x191   :  { %862 = vst.msk [vmem:[#allocation2 + $0x70] sm:$0xff] %vm847_vm6, %v801_v2  ;;  %818 = vrot.lane.b32.xlu0 %v745_v1, %s5563_s29  ;;  %v1751_v2 = vld [vmem:[%s7783_s1 + $0x60] sm:$0xff] }
 0x192   :  { %967 = vrot.lane.b32.xlu1 %v1045_v44, %s5564_s18  ;;  %5303 = vmatmul.mubr.msk.bf16.gmra.mxu0 %vm1534_vm11, %v1508_v7  ;;  %v1745_v44 = vld [vmem:[%s7783_s1 + $0x30] sm:$0xff] }
 0x193   :  { %v803_v10 = vpop.permute.xlu0 %802  ;;  %5306 = vmatprep.mubr.msk.bf16.mxu0 %vm5568_vm2, %v5565_v5 }
 0x194   :  { %v952_v9 = vpop.permute.xlu1 %951  ;;  %863 = vst.msk [vmem:[#allocation2 + $0x78] sm:$0xff] %vm847_vm6, %v803_v10  ;;  %v1753_v10 = vld [vmem:[%s7783_s1 + $0x70] sm:$0xff] }
 0x195   :  { %1013 = vst.msk [vmem:[#allocation2 + $0x70] sm:$0xff] %vm998_vm7, %v952_v9  ;;  %969 = vrot.lane.b32.xlu0 %v1046_v8, %s5564_s18 }
 0x196   :  { %1118 = vrot.lane.b32.xlu1 %v1046_v8, %s5566_s21 }
 0x197   :  { %v954_v12 = vpop.permute.xlu0 %953 }
 0x198   :  { %v1103_v11 = vpop.permute.xlu1 %1102  ;;  %1014 = vst.msk [vmem:[#allocation2 + $0x78] sm:$0xff] %vm998_vm7, %v954_v12  ;;  %v1755_v12 = vld [vmem:[%s7783_s1 + $0x80] sm:$0xff] }
 0x199   :  { %1164 = vst.msk [vmem:[#allocation2 + $0x70] sm:$0xff] %vm1149_vm8, %v1103_v11  ;;  %1120 = vrot.lane.b32.xlu0 %v1047_v60, %s5566_s21 }
 0x19a   :  { %1269 = vrot.lane.b32.xlu1 %v1197_v59, %s5567_s6  ;;  %v1754_v59 = vld [vmem:[%s7783_s1 + $0x78] sm:$0xff] }
 0x19b   :  { %v1105_v16 = vpop.permute.xlu0 %1104 }
 0x19c   :  { %v1254_v15 = vpop.permute.xlu1 %1253  ;;  %1165 = vst.msk [vmem:[#allocation2 + $0x78] sm:$0xff] %vm1149_vm8, %v1105_v16  ;;  %v1757_v16 = vld [vmem:[%s7783_s1 + $0x90] sm:$0xff] }
 0x19d   :  { %1315 = vst.msk [vmem:[#allocation2 + $0x70] sm:$0xff] %vm1300_vm9, %v1254_v15  ;;  %1271 = vrot.lane.b32.xlu0 %v1198_v14, %s5567_s6 }
 0x19e   :  { %1420 = vrot.lane.b32.xlu1 %v1348_v13, %s5569_s15  ;;  %v1756_v13 = vld [vmem:[%s7783_s1 + $0x88] sm:$0xff] }
 0x19f   :  { %v1256_v19 = vpop.permute.xlu0 %1255 }
 0x1a0   :  { %v1405_v18 = vpop.permute.xlu1 %1404  ;;  %1316 = vst.msk [vmem:[#allocation2 + $0x78] sm:$0xff] %vm1300_vm9, %v1256_v19 }
 0x1a1   :  { %1466 = vst.msk [vmem:[#allocation2 + $0x70] sm:$0xff] %vm1451_vm10, %v1405_v18  ;;  %1422 = vrot.lane.b32.xlu0 %v1349_v17, %s5569_s15  ;;  %v1758_v17 = vld [vmem:[%s7783_s1 + $0x98] sm:$0xff] }
 0x1a2   :  { %518 = vrot.lane.b32.xlu1 %v594_v58, %s5561_s17  ;;  %v1750_v58 = vld [vmem:[%s7783_s1 + $0x58] sm:$0xff] }
 0x1a3   :  { %v1407_v23 = vpop.permute.xlu0 %1406 }
 0x1a4   :  { %v503_v22 = vpop.permute.xlu1 %502  ;;  %1467 = vst.msk [vmem:[#allocation2 + $0x78] sm:$0xff] %vm1451_vm10, %v1407_v23 }
 0x1a5   :  { %562 = vst.msk [vmem:[#allocation2 + $0x80] sm:$0xff] %vm545_vm4, %v503_v22  ;;  %669 = vrot.lane.b32.xlu0 %v595_v21, %s5562_s24  ;;  %v1759_v21 = vld [vmem:[%s7783_s1 + $0xa0] sm:$0xff]  ;;  %v1760_v22 = vld [vmem:[%s7783_s1 + $0xa8] sm:$0xff] }
 0x1a6   :  { %820 = vrot.lane.b32.xlu1 %v746_v20, %s5563_s29 }
 0x1a7   :  { %v505_v26 = vpop.permute.xlu0 %504 }
 0x1a8   :  { %v654_v25 = vpop.permute.xlu1 %653  ;;  %563 = vst.msk [vmem:[#allocation2 + $0x88] sm:$0xff] %vm545_vm4, %v505_v26  ;;  %v1491_v29 = vld [vmem:[#allocation2 + $0x70] sm:$0xff] }
 0x1a9   :  { %713 = vst.msk [vmem:[#allocation2 + $0x80] sm:$0xff] %vm696_vm5, %v654_v25  ;;  %971 = vrot.lane.b32.xlu0 %v1047_v60, %s5564_s18 }
 0x1aa   :  { %1122 = vrot.lane.b32.xlu1 %v1048_v24, %s5566_s21 }
 0x1ab   :  { %v656_v62 = vpop.permute.xlu0 %655  ;;  %v1492_v30 = vld [vmem:[#allocation2 + $0x78] sm:$0xff] }
 0x1ac   :  { %v805_v61 = vpop.permute.xlu1 %804  ;;  %714 = vst.msk [vmem:[#allocation2 + $0x88] sm:$0xff] %vm696_vm5, %v656_v62  ;;  %v1509_v31 = vpack.c.bf16 %v1492_v30, %v1491_v29 }
 0x1ad   :  { %864 = vst.msk [vmem:[#allocation2 + $0x80] sm:$0xff] %vm847_vm6, %v805_v61  ;;  %1273 = vrot.lane.b32.xlu0 %v1199_v28, %s5567_s6 }
 0x1ae   :  { %1424 = vrot.lane.b32.xlu1 %v1350_v27, %s5569_s15  ;;  %5307 = vmatmul.mubr.msk.bf16.gmra.mxu0 %vm1534_vm11, %v1509_v31 }
 0x1af   :  { %v807_v35 = vpop.permute.xlu0 %806  ;;  %5310 = vmatprep.mubr.msk.bf16.mxu0 %vm5568_vm2, %v5565_v5 }
 0x1b0   :  { %v956_v34 = vpop.permute.xlu1 %955  ;;  %865 = vst.msk [vmem:[#allocation2 + $0x88] sm:$0xff] %vm847_vm6, %v807_v35 }
 0x1b1   :  { %1015 = vst.msk [vmem:[#allocation2 + $0x80] sm:$0xff] %vm998_vm7, %v956_v34  ;;  %1766 = vperm.xlu0 %5434, %v1739_v33  }
 0x1b2   :  { %1771 = vperm.xlu1 %5435, %v1740_v32  }
 0x1b3   :  { %v958_v39 = vpop.permute.xlu0 %957 }
 0x1b4   :  { %v1107_v38 = vpop.permute.xlu1 %1106  ;;  %1016 = vst.msk [vmem:[#allocation2 + $0x88] sm:$0xff] %vm998_vm7, %v958_v39 }
 0x1b5   :  { %1166 = vst.msk [vmem:[#allocation2 + $0x80] sm:$0xff] %vm1149_vm8, %v1107_v38  ;;  %1781 = vperm.xlu0 %5434, %v1742_v37  }
 0x1b6   :  { %1776 = vperm.xlu1 %5435, %v1741_v36  }
 0x1b7   :  { %v1109_v43 = vpop.permute.xlu0 %1108 }
 0x1b8   :  { %v1258_v42 = vpop.permute.xlu1 %1257  ;;  %1167 = vst.msk [vmem:[#allocation2 + $0x88] sm:$0xff] %vm1149_vm8, %v1109_v43 }
 0x1b9   :  { %1317 = vst.msk [vmem:[#allocation2 + $0x80] sm:$0xff] %vm1300_vm9, %v1258_v42  ;;  %1791 = vperm.xlu0 %5434, %v1744_v41  }
 0x1ba   :  { %1786 = vperm.xlu1 %5435, %v1743_v40  }
 0x1bb   :  { %v1260_v47 = vpop.permute.xlu0 %1259 }
 0x1bc   :  { %v1409_v46 = vpop.permute.xlu1 %1408  ;;  %1318 = vst.msk [vmem:[#allocation2 + $0x88] sm:$0xff] %vm1300_vm9, %v1260_v47 }
 0x1bd   :  { %1468 = vst.msk [vmem:[#allocation2 + $0x80] sm:$0xff] %vm1451_vm10, %v1409_v46  ;;  %1801 = vperm.xlu0 %5434, %v1746_v45  }
 0x1be   :  { %1796 = vperm.xlu1 %5435, %v1745_v44  }
 0x1bf   :  { %v6841_v49 = vpop.f32.mrf.mxu0  ;;  %v1411_v53 = vpop.permute.xlu0 %1410 }
 0x1c0   :  { %v507_v52 = vpop.permute.xlu1 %506  ;;  %1469 = vst.msk [vmem:[#allocation2 + $0x88] sm:$0xff] %vm1451_vm10, %v1411_v53 }
 0x1c1   :  { %564 = vst.msk [vmem:[#allocation2 + $0x90] sm:$0xff] %vm545_vm4, %v507_v52  ;;  %v5280_v54 = vpop.f32.mrf.mxu0  ;;  %1811 = vperm.xlu0 %5434, %v1748_v51  }
 0x1c2   :  { %1806 = vperm.xlu1 %5435, %v1747_v50  }
 0x1c3   :  { %v6855_v56 = vpop.f32.mrf.mxu0  ;;  %v509_v0 = vpop.permute.xlu0 %508 }
 0x1c4   :  { %v658_v63 = vpop.permute.xlu1 %657  ;;  %565 = vst.msk [vmem:[#allocation2 + $0x98] sm:$0xff] %vm545_vm4, %v509_v0  ;;  %v1493_v7 = vld [vmem:[#allocation2 + $0x80] sm:$0xff] }
 0x1c5   :  { %715 = vst.msk [vmem:[#allocation2 + $0x90] sm:$0xff] %vm696_vm5, %v658_v63  ;;  %v5281_v1 = vpop.f32.mrf.mxu0  ;;  %1821 = vperm.xlu0 %5434, %v1750_v58  }
 0x1c6   :  { %1816 = vperm.xlu1 %5435, %v1749_v57  }
 0x1c7   :  { %v660_v6 = vpop.permute.xlu0 %659  ;;  %v1494_v8 = vld [vmem:[#allocation2 + $0x88] sm:$0xff] }
 0x1c8   :  { %v809_v4 = vpop.permute.xlu1 %808  ;;  %716 = vst.msk [vmem:[#allocation2 + $0x98] sm:$0xff] %vm696_vm5, %v660_v6  ;;  %v1510_v9 = vpack.c.bf16 %v1494_v8, %v1493_v7 }
 0x1c9   :  { %866 = vst.msk [vmem:[#allocation2 + $0x90] sm:$0xff] %vm847_vm6, %v809_v4  ;;  %1831 = vperm.xlu0 %5434, %v1752_v3  }
 0x1ca   :  { %1826 = vperm.xlu1 %5435, %v1751_v2   ;;  %5311 = vmatmul.mubr.msk.bf16.gmra.mxu0 %vm1534_vm11, %v1510_v9 }
 0x1cb   :  { %v811_v11 = vpop.permute.xlu0 %810  ;;  %5314 = vmatprep.mubr.msk.bf16.mxu0 %vm5568_vm2, %v5565_v5 }
 0x1cc   :  { %v960_v60 = vpop.permute.xlu1 %959  ;;  %867 = vst.msk [vmem:[#allocation2 + $0x98] sm:$0xff] %vm847_vm6, %v811_v11 }
 0x1cd   :  { %1017 = vst.msk [vmem:[#allocation2 + $0x90] sm:$0xff] %vm998_vm7, %v960_v60  ;;  %1841 = vperm.xlu0 %5434, %v1754_v59  }
 0x1ce   :  { %1836 = vperm.xlu1 %5435, %v1753_v10  }
 0x1cf   :  { %v962_v15 = vpop.permute.xlu0 %961 }
 0x1d0   :  { %v1111_v14 = vpop.permute.xlu1 %1110  ;;  %1018 = vst.msk [vmem:[#allocation2 + $0x98] sm:$0xff] %vm998_vm7, %v962_v15 }
 0x1d1   :  { %1168 = vst.msk [vmem:[#allocation2 + $0x90] sm:$0xff] %vm1149_vm8, %v1111_v14  ;;  %1851 = vperm.xlu0 %5434, %v1756_v13  }
 0x1d2   :  { %1846 = vperm.xlu1 %5435, %v1755_v12  }
 0x1d3   :  { %v1113_v19 = vpop.permute.xlu0 %1112 }
 0x1d4   :  { %v1262_v18 = vpop.permute.xlu1 %1261  ;;  %1169 = vst.msk [vmem:[#allocation2 + $0x98] sm:$0xff] %vm1149_vm8, %v1113_v19 }
 0x1d5   :  { %1319 = vst.msk [vmem:[#allocation2 + $0x90] sm:$0xff] %vm1300_vm9, %v1262_v18  ;;  %1861 = vperm.xlu0 %5434, %v1758_v17  }
 0x1d6   :  { %1856 = vperm.xlu1 %5435, %v1757_v16  }
 0x1d7   :  { %v6900_v20 = vpop.f32.mrf.mxu0  ;;  %v1264_v24 = vpop.permute.xlu0 %1263 }
 0x1d8   :  { %v1413_v23 = vpop.permute.xlu1 %1412  ;;  %1320 = vst.msk [vmem:[#allocation2 + $0x98] sm:$0xff] %vm1300_vm9, %v1264_v24  ;;  %v6968_v24 = vld [vmem:[%s7785_s3] ss:$0 sm:$0xff] }
 0x1d9   :  { %1470 = vst.msk [vmem:[#allocation2 + $0x90] sm:$0xff] %vm1451_vm10, %v1413_v23  ;;  %v5284_v25 = vpop.f32.mrf.mxu0  ;;  %1871 = vperm.xlu0 %5434, %v1760_v22  }
 0x1da   :  { %1866 = vperm.xlu1 %5435, %v1759_v21  }
 0x1db   :  { %v6910_v26 = vpop.f32.mrf.mxu0  ;;  %v1415_v28 = vpop.permute.xlu0 %1414 }
 0x1dc   :  { %v511_v27 = vpop.permute.xlu1 %510  ;;  %1471 = vst.msk [vmem:[#allocation2 + $0x98] sm:$0xff] %vm1451_vm10, %v1415_v28  ;;  %v1616_v28 = vadd.f32 %v6968_v24, %v6855_v56  ;;  %v5440_v56 = vld [vmem:[%s7786_s4 + $0x78] sm:$0xff]  }
 0x1dd   :  { %566 = vst.msk [vmem:[#allocation2 + $0xa0] sm:$0xff] %vm545_vm4, %v511_v27  ;;  %v5285_v61 = vpop.f32.mrf.mxu0  ;;  %v1613_v27 = vadd.f32 %v6968_v24, %v6841_v49  ;;  %5063 = vmatprep.subr.bf16.mxu1 %v5440_v56 }
 0x1df   :  { %v513_v29 = vpop.permute.xlu0 %512 }
 0x1e0   :  { %v662_v62 = vpop.permute.xlu1 %661  ;;  %567 = vst.msk [vmem:[#allocation2 + $0xa8] sm:$0xff] %vm545_vm4, %v513_v29  ;;  %v1495_v32 = vld [vmem:[#allocation2 + $0x90] sm:$0xff]  ;;  %v1714_v29 = vmax.f32 %v1613_v27, 0.0 }
 0x1e1   :  { %717 = vst.msk [vmem:[#allocation2 + $0xa0] sm:$0xff] %vm696_vm5, %v662_v62 }
 0x1e3   :  { %v664_v31 = vpop.permute.xlu0 %663  ;;  %v1496_v33 = vld [vmem:[#allocation2 + $0x98] sm:$0xff] }
 0x1e4   :  { %v813_v30 = vpop.permute.xlu1 %812  ;;  %718 = vst.msk [vmem:[#allocation2 + $0xa8] sm:$0xff] %vm696_vm5, %v664_v31  ;;  %v1511_v34 = vpack.c.bf16 %v1496_v33, %v1495_v32  ;;  %v1621_v31 = vadd.f32 %v6968_v24, %v6900_v20  ;;  %v1624_v32 = vadd.f32 %v6968_v24, %v6910_v26  ;;  %v5441_v20 = vld [vmem:[%s7786_s4 + $0x38] sm:$0xff]  }
 0x1e5   :  { %868 = vst.msk [vmem:[#allocation2 + $0xa0] sm:$0xff] %vm847_vm6, %v813_v30  ;;  %v1715_v30 = vmax.f32 %v1616_v28, 0.0  ;;  %5064 = vmatpush3.bf16.msra.mxu1 %v5441_v20  ;;  %v2140_v20 = vld [vmem:[#allocation3 + $0x7] sm:$0xff] }
 0x1e6   :  { %5315 = vmatmul.mubr.msk.bf16.gmra.mxu0 %vm1534_vm11, %v1511_v34 }
 0x1e7   :  { %v815_v36 = vpop.permute.xlu0 %814  ;;  %5318 = vmatprep.mubr.msk.bf16.mxu0 %vm5568_vm2, %v5565_v5 }
 0x1e8   :  { %v964_v35 = vpop.permute.xlu1 %963  ;;  %869 = vst.msk [vmem:[#allocation2 + $0xa8] sm:$0xff] %vm847_vm6, %v815_v36  ;;  %v1716_v36 = vmax.f32 %v1621_v31, 0.0 }
 0x1e9   :  { %1019 = vst.msk [vmem:[#allocation2 + $0xa0] sm:$0xff] %vm998_vm7, %v964_v35 }
 0x1eb   :  { %v966_v38 = vpop.permute.xlu0 %965 }
 0x1ec   :  { %v1115_v37 = vpop.permute.xlu1 %1114  ;;  %1020 = vst.msk [vmem:[#allocation2 + $0xa8] sm:$0xff] %vm998_vm7, %v966_v38 }
 0x1ed   :  { %1170 = vst.msk [vmem:[#allocation2 + $0xa0] sm:$0xff] %vm1149_vm8, %v1115_v37  ;;  %v1717_v37 = vmax.f32 %v1624_v32, 0.0 }
 0x1ef   :  { %v6925_v39 = vpop.f32.mrf.mxu0  ;;  %v1117_v41 = vpop.permute.xlu0 %1116 }
 0x1f0   :  { %v1266_v40 = vpop.permute.xlu1 %1265  ;;  %1171 = vst.msk [vmem:[#allocation2 + $0xa8] sm:$0xff] %vm1149_vm8, %v1117_v41  ;;  %v1629_v26 = vadd.f32 %v6968_v24, %v6925_v39  ;;  %v5442_v39 = vld [vmem:[%s7786_s4 + $0x70] sm:$0xff]  }
 0x1f1   :  { %1321 = vst.msk [vmem:[#allocation2 + $0xa0] sm:$0xff] %vm1300_vm9, %v1266_v40  ;;  %v5288_v42 = vpop.f32.mrf.mxu0  ;;  %5065 = vmatprep.subr.bf16.mxu1 %v5442_v39 }
 0x1f2   :  { %v1939_v42 = vld [vmem:[#allocation3 + $0x5] sm:$0xff] }
 0x1f3   :  { %v6929_v43 = vpop.f32.mrf.mxu0  ;;  %v1268_v45 = vpop.permute.xlu0 %1267  ;;  %1964 = vst.msk [vmem:[#allocation4] sm:$0xff] %vm210_vm12, %v1939_v42 }
 0x1f4   :  { %v1417_v44 = vpop.permute.xlu1 %1416  ;;  %1322 = vst.msk [vmem:[#allocation2 + $0xa8] sm:$0xff] %vm1300_vm9, %v1268_v45  ;;  %v1632_v38 = vadd.f32 %v6968_v24, %v6929_v43  ;;  %v5443_v43 = vld [vmem:[%s7786_s4 + $0x30] sm:$0xff]  }
 0x1f5   :  { %1472 = vst.msk [vmem:[#allocation2 + $0xa0] sm:$0xff] %vm1451_vm10, %v1417_v44  ;;  %v5289_v46 = vpop.f32.mrf.mxu0  ;;  %5066 = vmatpush3.bf16.msra.mxu1 %v5443_v43 }
 0x1f6   :  { %v1718_v46 = vmax.f32 %v1629_v26, 0.0 }
 0x1f7   :  { %v1419_v48 = vpop.permute.xlu0 %1418 }
 0x1f8   :  { %v515_v47 = vpop.permute.xlu1 %514  ;;  %1473 = vst.msk [vmem:[#allocation2 + $0xa8] sm:$0xff] %vm1451_vm10, %v1419_v48 }
 0x1f9   :  { %568 = vst.msk [vmem:[#allocation2 + $0xb0] sm:$0xff] %vm545_vm4, %v515_v47  ;;  %v1719_v47 = vmax.f32 %v1632_v38, 0.0  ;;  %v5450_v38 = vld [vmem:[%s7786_s4 + $0x50] sm:$0xff]  }
 0x1fb   :  { %v517_v51 = vpop.permute.xlu0 %516 }
 0x1fc   :  { %v666_v50 = vpop.permute.xlu1 %665  ;;  %569 = vst.msk [vmem:[#allocation2 + $0xb8] sm:$0xff] %vm545_vm4, %v517_v51  ;;  %v1497_v54 = vld [vmem:[#allocation2 + $0xa0] sm:$0xff] }
 0x1fd   :  { %719 = vst.msk [vmem:[#allocation2 + $0xb0] sm:$0xff] %vm696_vm5, %v666_v50 }
 0x1ff   :  { %v668_v53 = vpop.permute.xlu0 %667  ;;  %v1498_v55 = vld [vmem:[#allocation2 + $0xa8] sm:$0xff] }
 0x200   :  { %v817_v52 = vpop.permute.xlu1 %816  ;;  %720 = vst.msk [vmem:[#allocation2 + $0xb8] sm:$0xff] %vm696_vm5, %v668_v53  ;;  %v1512_v57 = vpack.c.bf16 %v1498_v55, %v1497_v54  ;;  %v5444_v55 = vld [vmem:[%s7786_s4 + $0x68] sm:$0xff]  }
 0x201   :  { %870 = vst.msk [vmem:[#allocation2 + $0xb0] sm:$0xff] %vm847_vm6, %v817_v52  ;;  %5067 = vmatprep.subr.bf16.mxu1 %v5444_v55 }
 0x202   :  { %5319 = vmatmul.mubr.msk.bf16.gmra.mxu0 %vm1534_vm11, %v1512_v57 }
 0x203   :  { %v819_v63 = vpop.permute.xlu0 %818  ;;  %5322 = vmatprep.mubr.msk.bf16.mxu0 %vm5568_vm2, %v5565_v5 }
 0x204   :  { %v968_v58 = vpop.permute.xlu1 %967  ;;  %871 = vst.msk [vmem:[#allocation2 + $0xb8] sm:$0xff] %vm847_vm6, %v819_v63 }
 0x205   :  { %1021 = vst.msk [vmem:[#allocation2 + $0xb0] sm:$0xff] %vm998_vm7, %v968_v58 }
 0x207   :  { %v6944_v0 = vpop.f32.mrf.mxu0  ;;  %v970_v2 = vpop.permute.xlu0 %969 }
 0x208   :  { %v1119_v1 = vpop.permute.xlu1 %1118  ;;  %1022 = vst.msk [vmem:[#allocation2 + $0xb8] sm:$0xff] %vm998_vm7, %v970_v2  ;;  %v1637_v48 = vadd.f32 %v6968_v24, %v6944_v0 }
 0x209   :  { %1172 = vst.msk [vmem:[#allocation2 + $0xb0] sm:$0xff] %vm1149_vm8, %v1119_v1  ;;  %v5292_v3 = vpop.f32.mrf.mxu0 }
 0x20a   :  { %v1720_v63 = vmax.f32 %v1637_v48, 0.0  ;;  %v1989_v3 = vld [vmem:[#allocation3 + $0x6] sm:$0xff] }
 0x20b   :  { %v6948_v4 = vpop.f32.mrf.mxu0  ;;  %v1121_v7 = vpop.permute.xlu0 %1120 }
 0x20c   :  { %v1270_v6 = vpop.permute.xlu1 %1269  ;;  %1173 = vst.msk [vmem:[#allocation2 + $0xb8] sm:$0xff] %vm1149_vm8, %v1121_v7  ;;  %v1640_v50 = vadd.f32 %v6968_v24, %v6948_v4 }
 0x20d   :  { %1323 = vst.msk [vmem:[#allocation2 + $0xb0] sm:$0xff] %vm1300_vm9, %v1270_v6  ;;  %v5293_v8 = vpop.f32.mrf.mxu0 }
 0x20e   :  { %v1721_v0 = vmax.f32 %v1640_v50, 0.0 }
 0x20f   :  { %v1272_v10 = vpop.permute.xlu0 %1271 }
 0x210   :  { %v1421_v9 = vpop.permute.xlu1 %1420  ;;  %1324 = vst.msk [vmem:[#allocation2 + $0xb8] sm:$0xff] %vm1300_vm9, %v1272_v10  ;;  %v5445_v10 = vld [vmem:[%s7786_s4 + $0x28] sm:$0xff]  }
 0x211   :  { %1474 = vst.msk [vmem:[#allocation2 + $0xb0] sm:$0xff] %vm1451_vm10, %v1421_v9  ;;  %5068 = vmatpush3.bf16.msra.mxu1 %v5445_v10 }
 0x213   :  { %v1423_v60 = vpop.permute.xlu0 %1422 }
 0x214   :  { %v519_v59 = vpop.permute.xlu1 %518  ;;  %1475 = vst.msk [vmem:[#allocation2 + $0xb8] sm:$0xff] %vm1451_vm10, %v1423_v60 }
 0x215   :  { %570 = vst.msk [vmem:[#allocation2 + $0xc0] sm:$0xff] %vm545_vm4, %v519_v59 }
 0x217   :  { %v670_v12 = vpop.permute.xlu0 %669 }
 0x218   :  { %v821_v11 = vpop.permute.xlu1 %820  ;;  %721 = vst.msk [vmem:[#allocation2 + $0xc0] sm:$0xff] %vm696_vm5, %v670_v12  ;;  %v1499_v15 = vld [vmem:[#allocation2 + $0xb0] sm:$0xff]  ;;  %v5446_v12 = vld [vmem:[%s7786_s4 + $0x60] sm:$0xff]  }
 0x219   :  { %872 = vst.msk [vmem:[#allocation2 + $0xc0] sm:$0xff] %vm847_vm6, %v821_v11  ;;  %5069 = vmatprep.subr.bf16.mxu1 %v5446_v12 }
 0x21b   :  { %v972_v14 = vpop.permute.xlu0 %971  ;;  %v1500_v16 = vld [vmem:[#allocation2 + $0xb8] sm:$0xff] }
 0x21c   :  { %v1123_v13 = vpop.permute.xlu1 %1122  ;;  %1023 = vst.msk [vmem:[#allocation2 + $0xc0] sm:$0xff] %vm998_vm7, %v972_v14  ;;  %v1513_v17 = vpack.c.bf16 %v1500_v16, %v1499_v15 }
 0x21d   :  { %1174 = vst.msk [vmem:[#allocation2 + $0xc0] sm:$0xff] %vm1149_vm8, %v1123_v13  ;;  %v5447_v13 = vld [vmem:[%s7786_s4 + $0x20] sm:$0xff]  }
 0x21e   :  { %5323 = vmatmul.mubr.msk.bf16.gmra.mxu0 %vm1534_vm11, %v1513_v17  ;;  %5070 = vmatpush3.bf16.msra.mxu1 %v5447_v13 }
 0x21f   :  { %v1644_v18 = vpop.f32.mrf.mxu0  ;;  %v1274_v21 = vpop.permute.xlu0 %1273  ;;  %5326 = vmatprep.mubr.msk.bf16.mxu0 %vm5568_vm2, %v5565_v5 }
 0x220   :  { %v1425_v19 = vpop.permute.xlu1 %1424  ;;  %1325 = vst.msk [vmem:[#allocation2 + $0xc0] sm:$0xff] %vm1300_vm9, %v1274_v21  ;;  %v1645_v1 = vadd.f32 %v6968_v24, %v1644_v18 }
 0x221   :  { %v5296_v22 = vpop.f32.mrf.mxu0  ;;  %1476 = vst.msk [vmem:[#allocation2 + $0xc0] sm:$0xff] %vm1451_vm10, %v1425_v19 }
 0x222   :  { %v1722_v18 = vmax.f32 %v1645_v1, 0.0  ;;  %v1762_v1 = vld [vmem:[%s7783_s1 + $0xb8] sm:$0xff] }
 0x223   :  { %v1647_v23 = vpop.f32.mrf.mxu0 }
 0x224   :  { %v1648_v2 = vadd.f32 %v6968_v24, %v1647_v23 }
 0x225   :  { %v5297_v25 = vpop.f32.mrf.mxu0 }
 0x226   :  { %v1723_v19 = vmax.f32 %v1648_v2, 0.0  ;;  %v5454_v2 = vld [vmem:[%s7786_s4 + $0x40] sm:$0xff]  }
 0x228   :  { %v1501_v61 = vld [vmem:[#allocation2 + $0xc0] sm:$0xff] }
 0x229   :  { %v1514_v62 = vpack.c.bf16 %v1501_v61, %v1501_v61 }
 0x22b   :  { %5327 = vmatmul.mubr.msk.bf16.gmra.mxu0 %vm1534_vm11, %v1514_v62 }
 0x22c   :  { %v1767_v34 = vpop.permute.xlu0 %1766  ;;  %5334 = vmatprep.mubr.msk.bf16.mxu0 %vm5568_vm2, %v5565_v5 }
 0x22d   :  { %v1772_v33 = vpop.permute.xlu1 %1771  ;;  %v1889_v35 = vmul.f32 %v1767_v34, %v1714_v29 }
 0x22e   :  { %v1890_v49 = vmul.f32 %v1772_v33, %v1715_v30  ;;  %v5448_v30 = vld [vmem:[%s7786_s4 + $0x58] sm:$0xff]  }
 0x22f   :  { %1914 = vst.msk [vmem:[#allocation3 + $0x10] sm:$0xff] %vm210_vm12, %v1889_v35  ;;  %v5449_v33 = vld [vmem:[%s7786_s4 + $0x18] sm:$0xff]   ;;  %5071 = vmatprep.subr.bf16.mxu1 %v5448_v30 }
 0x230   :  { %1915 = vst.msk [vmem:[#allocation3 + $0x18] sm:$0xff] %vm210_vm12, %v1890_v49  ;;  %v1782_v41 = vpop.permute.xlu0 %1781  ;;  %5072 = vmatpush3.bf16.msra.mxu1 %v5449_v33 }
 0x231   :  { %v1777_v40 = vpop.permute.xlu1 %1776  ;;  %v1892_v45 = vmul.f32 %v1782_v41, %v1717_v37  ;;  %5073 = vmatprep.subr.bf16.mxu1 %v5450_v38 }
 0x232   :  { %v1891_v44 = vmul.f32 %v1777_v40, %v1716_v36  ;;  %v5451_v40 = vld [vmem:[%s7786_s4 + $0x10] sm:$0xff]  }
 0x233   :  { %1917 = vst.msk [vmem:[#allocation3 + $0x28] sm:$0xff] %vm210_vm12, %v1892_v45 }
 0x234   :  { %1916 = vst.msk [vmem:[#allocation3 + $0x20] sm:$0xff] %vm210_vm12, %v1891_v44  ;;  %v1792_v52 = vpop.permute.xlu0 %1791  ;;  %5074 = vmatpush3.bf16.msra.mxu1 %v5451_v40 }
 0x235   :  { %v1787_v51 = vpop.permute.xlu1 %1786  ;;  %v1894_v54 = vmul.f32 %v1792_v52, %v1719_v47 }
 0x236   :  { %v1893_v53 = vmul.f32 %v1787_v51, %v1718_v46  ;;  %v2442_v4 = vld [vmem:[#allocation3 + $0x10] sm:$0xff] }
 0x237   :  { %v1652_v57 = vpop.f32.mrf.mxu0  ;;  %v2492_v58 = vld [vmem:[#allocation3 + $0x11] sm:$0xff]  ;;  %1919 = vst.msk [vmem:[#allocation3 + $0x38] sm:$0xff] %vm210_vm12, %v1894_v54  ;;  %2467 = vst.msk [vmem:[#allocation4 + $0x8] sm:$0xff] %vm210_vm12, %v2442_v4 }
 0x238   :  { %1918 = vst.msk [vmem:[#allocation3 + $0x30] sm:$0xff] %vm210_vm12, %v1893_v53  ;;  %2542 = vrot.lane.b32.xlu1 %v2492_v58, %s5571_s2  ;;  %v1802_v7 = vpop.permute.xlu0 %1801  ;;  %v2443_v8 = vld [vmem:[#allocation3 + $0x18] sm:$0xff]  ;;  %v1940_v9 = vld [vmem:[#allocation3 + $0xd] sm:$0xff]  ;;  %v1653_v21 = vadd.f32 %v6968_v24, %v1652_v57  ;;  %v5452_v58 = vld [vmem:[%s7786_s4 + $0x48] sm:$0xff]  }
 0x239   :  { %v1797_v6 = vpop.permute.xlu1 %1796  ;;  %v1896_v60 = vmul.f32 %v1802_v7, %v1721_v0  ;;  %v5300_v11 = vpop.f32.mrf.mxu0  ;;  %2468 = vst.msk [vmem:[#allocation4 + $0x20] sm:$0xff] %vm210_vm12, %v2443_v8  ;;  %1965 = vst.msk [vmem:[#allocation4 + $0x18] sm:$0xff] %vm210_vm12, %v1940_v9  ;;  %v1941_v14 = vld [vmem:[#allocation3 + $0x15] sm:$0xff]  ;;  %v1761_v57 = vld [vmem:[%s7783_s1 + $0xb0] sm:$0xff]  ;;  %5075 = vmatprep.subr.bf16.mxu1 %v5452_v58 }
 0x23a   :  { %v1895_v59 = vmul.f32 %v1797_v6, %v1720_v63  ;;  %1966 = vst.msk [vmem:[#allocation4 + $0x30] sm:$0xff] %vm210_vm12, %v1941_v14  ;;  %v1990_v29 = vld [vmem:[#allocation3 + $0xe] sm:$0xff]  ;;  %v1724_v34 = vmax.f32 %v1653_v21, 0.0  ;;  %v5453_v63 = vld [vmem:[%s7786_s4 + $0x8] sm:$0xff]   ;;  %v7083_v0 = vld [vmem:[#allocation3 + $0x17] sm:$0xff] }
 0x23b   :  { %v2942_v15 = vld [vmem:[#allocation3 + $0x1b] sm:$0xff]  ;;  %v2943_v16 = vld [vmem:[#allocation3 + $0x23] sm:$0xff]  ;;  %1921 = vst.msk [vmem:[#allocation3 + $0x48] sm:$0xff] %vm210_vm12, %v1896_v60  ;;  %v1655_v22 = vpop.f32.mrf.mxu0  ;;  %v2141_v43 = vld [vmem:[#allocation3 + $0xf] sm:$0xff]  ;;  %5076 = vmatpush3.bf16.msra.mxu1 %v5453_v63 }
 0x23c   :  { %v2493_v17 = vld [vmem:[#allocation3 + $0x19] sm:$0xff]  ;;  %2967 = vst.msk [vmem:[#allocation4 + $0x10] sm:$0xff] %vm210_vm12, %v2942_v15  ;;  %2968 = vst.msk [vmem:[#allocation4 + $0x28] sm:$0xff] %vm210_vm12, %v2943_v16  ;;  %2039 = vrot.lane.b32.xlu1 %v1989_v3, %s5571_s2  ;;  %v1656_v23 = vadd.f32 %v6968_v24, %v1655_v22  ;;  %v1812_v27 = vpop.permute.xlu0 %1811  ;;  %v7047_v26 = vld [vmem:[#allocation3 + $0x21] sm:$0xff]  ;;  %5077 = vmatprep.subr.bf16.mxu1 %v5454_v2 }
 0x23d   :  { %1920 = vst.msk [vmem:[#allocation3 + $0x40] sm:$0xff] %vm210_vm12, %v1895_v59  ;;  %2544 = vrot.lane.b32.xlu0 %v2493_v17, %s5571_s2  ;;  %v1807_v25 = vpop.permute.xlu1 %1806  ;;  %v1898_v61 = vmul.f32 %v1812_v27, %v1723_v19  ;;  %v5301_v62 = vpop.f32.mrf.mxu0  ;;  %v2792_v48 = vld [vmem:[#allocation3 + $0x1a] sm:$0xff]  ;;  %v2793_v54 = vld [vmem:[#allocation3 + $0x22] sm:$0xff] }
 0x23e   :  { %v1897_v28 = vmul.f32 %v1807_v25, %v1722_v18  ;;  %v1725_v49 = vmax.f32 %v1656_v23, 0.0  ;;  %v2444_v6 = vld [vmem:[#allocation3 + $0x20] sm:$0xff]  ;;  %v5455_v7 = vld [vmem:[%s7786_s4] sm:$0xff]   ;;  %v2445_v8 = vld [vmem:[#allocation3 + $0x28] sm:$0xff] }
 0x23f   :  { %v2944_v31 = vld [vmem:[#allocation3 + $0x2b] sm:$0xff]  ;;  %v2945_v32 = vld [vmem:[#allocation3 + $0x33] sm:$0xff]  ;;  %1923 = vst.msk [vmem:[#allocation3 + $0x58] sm:$0xff] %vm210_vm12, %v1898_v61  ;;  %2469 = vst.msk [vmem:[#allocation4 + $0x38] sm:$0xff] %vm210_vm12, %v2444_v6  ;;  %5078 = vmatpush3.bf16.msra.mxu1 %v5455_v7 }
 0x240   :  { %2969 = vst.msk [vmem:[#allocation4 + $0x40] sm:$0xff] %vm210_vm12, %v2944_v31  ;;  %2970 = vst.msk [vmem:[#allocation4 + $0x58] sm:$0xff] %vm210_vm12, %v2945_v32  ;;  %2692 = vrot.lane.b32.xlu1 %v2493_v17, %s5572_s20  ;;  %v1822_v56 = vpop.permute.xlu0 %1821  ;;  %v1942_v9 = vld [vmem:[#allocation3 + $0x1d] sm:$0xff]  ;;  %v2446_v10 = vld [vmem:[#allocation3 + $0x30] sm:$0xff] }
 0x241   :  { %1922 = vst.msk [vmem:[#allocation3 + $0x50] sm:$0xff] %vm210_vm12, %v1897_v28  ;;  %2041 = vrot.lane.b32.xlu0 %v1990_v29, %s5571_s2  ;;  %v1817_v35 = vpop.permute.xlu1 %1816  ;;  %v1900_v37 = vmul.f32 %v1822_v56, %v1725_v49  ;;  %2470 = vst.msk [vmem:[#allocation4 + $0x50] sm:$0xff] %vm210_vm12, %v2445_v8  ;;  %v2447_v59 = vld [vmem:[#allocation3 + $0x38] sm:$0xff]  ;;  %v1943_v60 = vld [vmem:[#allocation3 + $0x25] sm:$0xff] }
 0x242   :  { %v1899_v36 = vmul.f32 %v1817_v35, %v1724_v34  ;;  %1967 = vst.msk [vmem:[#allocation4 + $0x48] sm:$0xff] %vm210_vm12, %v1942_v9  ;;  %2471 = vst.msk [vmem:[#allocation4 + $0x68] sm:$0xff] %vm210_vm12, %v2446_v10  ;;  %v1944_v12 = vld [vmem:[#allocation3 + $0x2d] sm:$0xff]  ;;  %v1945_v16 = vld [vmem:[#allocation3 + $0x35] sm:$0xff] }
 0x243   :  { %v2994_v44 = vld [vmem:[#allocation4 + $0x10] sm:$0xff]  ;;  %1925 = vst.msk [vmem:[#allocation3 + $0x68] sm:$0xff] %vm210_vm12, %v1900_v37  ;;  %v2997_v45 = vld [vmem:[#allocation4 + $0x28] sm:$0xff]  ;;  %2472 = vst.msk [vmem:[#allocation4 + $0x80] sm:$0xff] %vm210_vm12, %v2447_v59 }
 0x244   :  { %v2946_v41 = vld [vmem:[#allocation3 + $0x3b] sm:$0xff]  ;;  %v2947_v42 = vld [vmem:[#allocation3 + $0x43] sm:$0xff]  ;;  %1924 = vst.msk [vmem:[#allocation3 + $0x60] sm:$0xff] %vm210_vm12, %v1899_v36  ;;  %2190 = vrot.lane.b32.xlu1 %v2140_v20, %s5572_s20  ;;  %v3069_v39 = vpack.c.bf16 %v2997_v45, %v2994_v44  ;;  %1968 = vst.msk [vmem:[#allocation4 + $0x60] sm:$0xff] %vm210_vm12, %v1943_v60  ;;  %v1832_v38 = vpop.permute.xlu0 %1831 }
 0x245   :  { %2971 = vst.msk [vmem:[#allocation4 + $0x70] sm:$0xff] %vm210_vm12, %v2946_v41  ;;  %2972 = vst.msk [vmem:[#allocation4 + $0x88] sm:$0xff] %vm210_vm12, %v2947_v42  ;;  %2694 = vrot.lane.b32.xlu0 %v7047_v26, %s5572_s20  ;;  %v2448_v14 = vld [vmem:[#allocation3 + $0x40] sm:$0xff]  ;;  %v2449_v15 = vld [vmem:[#allocation3 + $0x48] sm:$0xff]  ;;  %v1827_v29 = vpop.permute.xlu1 %1826 }
 0x246   :  { %5335 = vmatmul.mubr.msk.bf16.vlgmr.msra.gmra.mxu0 %vm210_vm12, %v3069_v39  ;;  %1969 = vst.msk [vmem:[#allocation4 + $0x78] sm:$0xff] %vm210_vm12, %v1944_v12  ;;  %v2495_v18 = vld [vmem:[#allocation3 + $0x29] sm:$0xff]  ;;  %v1991_v19 = vld [vmem:[#allocation3 + $0x16] sm:$0xff]  ;;  %2473 = vst.msk [vmem:[#allocation4 + $0x98] sm:$0xff] %vm210_vm12, %v2448_v14 }
 0x247   :  { %5338 = vmatprep.mubr.msk.bf16.mxu0 %vm5568_vm2, %v5565_v5  ;;  %v3000_v50 = vld [vmem:[#allocation4 + $0x40] sm:$0xff]  ;;  %v3003_v51 = vld [vmem:[#allocation4 + $0x58] sm:$0xff]  ;;  %2474 = vst.msk [vmem:[#allocation4 + $0xb0] sm:$0xff] %vm210_vm12, %v2449_v15  ;;  %1970 = vst.msk [vmem:[#allocation4 + $0x90] sm:$0xff] %vm210_vm12, %v1945_v16 }
 0x248   :  { %v2948_v46 = vld [vmem:[#allocation3 + $0x4b] sm:$0xff]  ;;  %v2949_v47 = vld [vmem:[#allocation3 + $0x53] sm:$0xff]  ;;  %2842 = vrot.lane.b32.xlu1 %v2792_v48, %s5573_s26  ;;  %v3072_v55 = vpack.c.bf16 %v3003_v51, %v3000_v50  ;;  %v1946_v21 = vld [vmem:[#allocation3 + $0x3d] sm:$0xff] }
 0x249   :  { %2973 = vst.msk [vmem:[#allocation4 + $0xa0] sm:$0xff] %vm210_vm12, %v2948_v46  ;;  %2974 = vst.msk [vmem:[#allocation4 + $0xb8] sm:$0xff] %vm210_vm12, %v2949_v47  ;;  %2192 = vrot.lane.b32.xlu0 %v2141_v43, %s5572_s20  ;;  %v2450_v22 = vld [vmem:[#allocation3 + $0x50] sm:$0xff]  ;;  %v2451_v23 = vld [vmem:[#allocation3 + $0x58] sm:$0xff]  ;;  %v1837_v7 = vpop.permute.xlu1 %1836 }
 0x24a   :  { %1971 = vst.msk [vmem:[#allocation4 + $0xa8] sm:$0xff] %vm210_vm12, %v1946_v21  ;;  %2475 = vst.msk [vmem:[#allocation4 + $0xc8] sm:$0xff] %vm210_vm12, %v2450_v22  ;;  %v1947_v28 = vld [vmem:[#allocation3 + $0x45] sm:$0xff]  ;;  %v1948_v61 = vld [vmem:[#allocation3 + $0x4d] sm:$0xff] }
 0x24b   :  { %v2950_v52 = vld [vmem:[#allocation3 + $0x5b] sm:$0xff]  ;;  %v2951_v53 = vld [vmem:[#allocation3 + $0x63] sm:$0xff]  ;;  %2476 = vst.msk [vmem:[#allocation4 + $0xe0] sm:$0xff] %vm210_vm12, %v2451_v23  ;;  %1972 = vst.msk [vmem:[#allocation4 + $0xc0] sm:$0xff] %vm210_vm12, %v1947_v28 }
 0x24c   :  { %2975 = vst.msk [vmem:[#allocation4 + $0xd0] sm:$0xff] %vm210_vm12, %v2950_v52  ;;  %2976 = vst.msk [vmem:[#allocation4 + $0xe8] sm:$0xff] %vm210_vm12, %v2951_v53  ;;  %2341 = vrot.lane.b32.xlu1 %v2141_v43, %s5573_s26  ;;  %v3006_v3 = vld [vmem:[#allocation4 + $0x70] sm:$0xff]  ;;  %v3009_v4 = vld [vmem:[#allocation4 + $0x88] sm:$0xff] }
 0x24d   :  { %2844 = vrot.lane.b32.xlu0 %v2793_v54, %s5573_s26  ;;  %v3075_v17 = vpack.c.bf16 %v3009_v4, %v3006_v3  ;;  %v2452_v62 = vld [vmem:[#allocation3 + $0x60] sm:$0xff]  ;;  %1973 = vst.msk [vmem:[#allocation4 + $0xd8] sm:$0xff] %vm210_vm12, %v1948_v61  ;;  %v2453_v30 = vld [vmem:[#allocation3 + $0x68] sm:$0xff]  ;;  %v1949_v31 = vld [vmem:[#allocation3 + $0x55] sm:$0xff] }
 0x24e   :  { %5339 = vmatmul.mubr.msk.bf16.gmra.mxu0 %vm210_vm12, %v3072_v55  ;;  %2477 = vst.msk [vmem:[#allocation4 + $0xf8] sm:$0xff] %vm210_vm12, %v2452_v62  ;;  %v1950_v32 = vld [vmem:[#allocation3 + $0x5d] sm:$0xff]  ;;  %2478 = vst.msk [vmem:[#allocation4 + $0x110] sm:$0xff] %vm210_vm12, %v2453_v30  ;;  %v1951_v49 = vld [vmem:[#allocation3 + $0x65] sm:$0xff] }
 0x24f   :  { %5342 = vmatprep.mubr.msk.bf16.mxu0 %vm5568_vm2, %v5565_v5  ;;  %1974 = vst.msk [vmem:[#allocation4 + $0xf0] sm:$0xff] %vm210_vm12, %v1949_v31  ;;  %1975 = vst.msk [vmem:[#allocation4 + $0x108] sm:$0xff] %vm210_vm12, %v1950_v32  ;;  %v2645_v42 = vld [vmem:[#allocation3 + $0x31] sm:$0xff]  ;;  %v2143_v46 = vld [vmem:[#allocation3 + $0x1f] sm:$0xff] }
 0x250   :  { %1876 = vperm.xlu1 %5435, %v1761_v57   ;;  %1976 = vst.msk [vmem:[#allocation4 + $0x120] sm:$0xff] %vm210_vm12, %v1951_v49  ;;  %v3012_v20 = vld [vmem:[#allocation4 + $0xa0] sm:$0xff]  ;;  %v3015_v36 = vld [vmem:[#allocation4 + $0xb8] sm:$0xff]  ;;  %v2795_v52 = vld [vmem:[#allocation3 + $0x32] sm:$0xff] }
 0x251   :  { %2343 = vrot.lane.b32.xlu0 %v7083_v0, %s5573_s26  ;;  %v3078_v41 = vpack.c.bf16 %v3015_v36, %v3012_v20  ;;  %v2794_v47 = vld [vmem:[#allocation3 + $0x2a] sm:$0xff]  ;;  %v1763_v55 = vld [vmem:[%s7783_s1 + $0xc0] sm:$0xff]  ;;  %v2647_v14 = vld [vmem:[#allocation3 + $0x41] sm:$0xff] }
 0x252   :  { %v1660_v11 = vpop.f32.mrf.mxu0  ;;  %v2294_v57 = vld [vmem:[#allocation3 + $0x27] sm:$0xff]  ;;  %v2497_v2 = vld [vmem:[#allocation3 + $0x39] sm:$0xff]  ;;  %v2145_v16 = vld [vmem:[#allocation3 + $0x2f] sm:$0xff] }
 0x253   :  { %v1661_v13 = vadd.f32 %v6968_v24, %v1660_v11  ;;  %v3018_v45 = vld [vmem:[#allocation4 + $0xd0] sm:$0xff]  ;;  %v3021_v39 = vld [vmem:[#allocation4 + $0xe8] sm:$0xff]  ;;  %v1993_v9 = vld [vmem:[#allocation3 + $0x26] sm:$0xff] }
 0x254   :  { %2546 = vrot.lane.b32.xlu1 %v7047_v26, %s5571_s2  ;;  %v5304_v27 = vpop.f32.mrf.mxu0  ;;  %v1992_v26 = vld [vmem:[#allocation3 + $0x1e] sm:$0xff]  ;;  %v3081_v50 = vpack.c.bf16 %v3021_v39, %v3018_v45  ;;  %v1994_v10 = vld [vmem:[#allocation3 + $0x2e] sm:$0xff]  ;;  %v1995_v32 = vld [vmem:[#allocation3 + $0x36] sm:$0xff] }
 0x255   :  { %1881 = vperm.xlu0 %5434, %v1762_v1   ;;  %v1726_v25 = vmax.f32 %v1661_v13, 0.0  ;;  %v1842_v13 = vpop.permute.xlu0 %1841  ;;  %v2797_v21 = vld [vmem:[#allocation3 + $0x42] sm:$0xff]  ;;  %v2296_v27 = vld [vmem:[#allocation3 + $0x37] sm:$0xff]  ;;  %v2798_v45 = vld [vmem:[#allocation3 + $0x4a] sm:$0xff] }
 0x256   :  { %5343 = vmatmul.mubr.msk.bf16.gmra.mxu0 %vm210_vm12, %v3075_v17  ;;  %v1663_v34 = vpop.f32.mrf.mxu0  ;;  %v2499_v61 = vld [vmem:[#allocation3 + $0x49] sm:$0xff]  ;;  %v2799_v39 = vld [vmem:[#allocation3 + $0x52] sm:$0xff] }
 0x257   :  { %v1901_v33 = vmul.f32 %v1827_v29, %v1726_v25  ;;  %v1664_v35 = vadd.f32 %v6968_v24, %v1663_v34  ;;  %5346 = vmatprep.mubr.msk.bf16.mxu0 %vm5568_vm2, %v5565_v5  ;;  %v1996_v34 = vld [vmem:[#allocation3 + $0x3e] sm:$0xff] }
 0x258   :  { %2043 = vrot.lane.b32.xlu1 %v1991_v19, %s5571_s2  ;;  %v5305_v56 = vpop.f32.mrf.mxu0  ;;  %v2796_v19 = vld [vmem:[#allocation3 + $0x3a] sm:$0xff] }
 0x259   :  { %2548 = vrot.lane.b32.xlu0 %v2495_v18, %s5571_s2  ;;  %1926 = vst.msk [vmem:[#allocation3 + $0x70] sm:$0xff] %vm210_vm12, %v1901_v33  ;;  %v1727_v37 = vmax.f32 %v1664_v35, 0.0  ;;  %v1847_v56 = vpop.permute.xlu1 %1846 }
 0x25b   :  { %v1902_v40 = vmul.f32 %v1832_v38, %v1727_v37 }
 0x25c   :  { %2696 = vrot.lane.b32.xlu1 %v2495_v18, %s5572_s20 }
 0x25d   :  { %2045 = vrot.lane.b32.xlu0 %v1992_v26, %s5571_s2  ;;  %1927 = vst.msk [vmem:[#allocation3 + $0x78] sm:$0xff] %vm210_vm12, %v1902_v40  ;;  %v2649_v26 = vld [vmem:[#allocation3 + $0x51] sm:$0xff] }
 0x25e   :  { %5347 = vmatmul.mubr.msk.bf16.gmra.mxu0 %vm210_vm12, %v3078_v41  ;;  %v1852_v41 = vpop.permute.xlu0 %1851 }
 0x25f   :  { %5350 = vmatprep.mubr.msk.bf16.mxu0 %vm5568_vm2, %v5565_v5 }
 0x260   :  { %2194 = vrot.lane.b32.xlu1 %v7083_v0, %s5572_s20  ;;  %v2952_v44 = vld [vmem:[#allocation3 + $0x6b] sm:$0xff] }
 0x261   :  { %2698 = vrot.lane.b32.xlu0 %v2645_v42, %s5572_s20  ;;  %2977 = vst.msk [vmem:[#allocation4 + $0x100] sm:$0xff] %vm210_vm12, %v2952_v44  ;;  %v2454_v43 = vld [vmem:[#allocation3 + $0x70] sm:$0xff]  ;;  %v2147_v44 = vld [vmem:[#allocation3 + $0x3f] sm:$0xff] }
 0x262   :  { %2479 = vst.msk [vmem:[#allocation4 + $0x128] sm:$0xff] %vm210_vm12, %v2454_v43  ;;  %v1952_v48 = vld [vmem:[#allocation3 + $0x6d] sm:$0xff] }
 0x263   :  { %1977 = vst.msk [vmem:[#allocation4 + $0x138] sm:$0xff] %vm210_vm12, %v1952_v48  ;;  %v2298_v48 = vld [vmem:[#allocation3 + $0x47] sm:$0xff] }
 0x264   :  { %2846 = vrot.lane.b32.xlu1 %v2794_v47, %s5573_s26  ;;  %v2953_v51 = vld [vmem:[#allocation3 + $0x73] sm:$0xff] }
 0x265   :  { %2196 = vrot.lane.b32.xlu0 %v2143_v46, %s5572_s20  ;;  %2978 = vst.msk [vmem:[#allocation4 + $0x118] sm:$0xff] %vm210_vm12, %v2953_v51  ;;  %v2455_v53 = vld [vmem:[#allocation3 + $0x78] sm:$0xff] }
 0x266   :  { %5351 = vmatmul.mubr.msk.bf16.gmra.mxu0 %vm210_vm12, %v3081_v50  ;;  %2480 = vst.msk [vmem:[#allocation4 + $0x140] sm:$0xff] %vm210_vm12, %v2455_v53  ;;  %v1953_v54 = vld [vmem:[#allocation3 + $0x75] sm:$0xff]  ;;  %v1857_v53 = vpop.permute.xlu1 %1856 }
 0x267   :  { %5354 = vmatprep.mubr.msk.bf16.mxu0 %vm5568_vm2, %v5565_v5  ;;  %1978 = vst.msk [vmem:[#allocation4 + $0x150] sm:$0xff] %vm210_vm12, %v1953_v54  ;;  %v2501_v54 = vld [vmem:[#allocation3 + $0x59] sm:$0xff] }
 0x268   :  { %2345 = vrot.lane.b32.xlu1 %v2143_v46, %s5573_s26  ;;  %v3024_v58 = vld [vmem:[#allocation4 + $0x100] sm:$0xff] }
 0x269   :  { %2848 = vrot.lane.b32.xlu0 %v2795_v52, %s5573_s26 }
 0x26c   :  { %1886 = vperm.xlu1 %5435, %v1763_v55   ;;  %v3027_v63 = vld [vmem:[#allocation4 + $0x118] sm:$0xff] }
 0x26d   :  { %2347 = vrot.lane.b32.xlu0 %v2294_v57, %s5573_s26  ;;  %v3084_v1 = vpack.c.bf16 %v3027_v63, %v3024_v58  ;;  %v1997_v55 = vld [vmem:[#allocation3 + $0x46] sm:$0xff]  ;;  %v1998_v58 = vld [vmem:[#allocation3 + $0x4e] sm:$0xff] }
 0x26e   :  { %v1668_v0 = vpop.f32.mrf.mxu0 }
 0x26f   :  { %v1669_v3 = vadd.f32 %v6968_v24, %v1668_v0  ;;  %5355 = vmatmul.mubr.msk.bf16.gmra.mxu0 %vm210_vm12, %v3084_v1  ;;  %v7208_v1 = vpop.permute.xlu1 %1866 }
 0x270   :  { %2552 = vrot.lane.b32.xlu1 %v2497_v2, %s5571_s2  ;;  %v5308_v4 = vpop.f32.mrf.mxu0  ;;  %5358 = vmatprep.mubr.msk.bf16.mxu0 %vm5568_vm2, %v5565_v5 }
 0x271   :  { %2550 = vrot.lane.b32.xlu0 %v2645_v42, %s5571_s2  ;;  %v1728_v6 = vmax.f32 %v1669_v3, 0.0 }
 0x272   :  { %v1671_v8 = vpop.f32.mrf.mxu0 }
 0x273   :  { %v1903_v59 = vmul.f32 %v1837_v7, %v1728_v6  ;;  %v1672_v60 = vadd.f32 %v6968_v24, %v1671_v8  ;;  %v2651_v6 = vld [vmem:[#allocation3 + $0x61] sm:$0xff] }
 0x274   :  { %2049 = vrot.lane.b32.xlu1 %v1994_v10, %s5571_s2  ;;  %v5309_v11 = vpop.f32.mrf.mxu0 }
 0x275   :  { %2047 = vrot.lane.b32.xlu0 %v1993_v9, %s5571_s2  ;;  %1928 = vst.msk [vmem:[#allocation3 + $0x80] sm:$0xff] %vm210_vm12, %v1903_v59  ;;  %v1729_v12 = vmax.f32 %v1672_v60, 0.0 }
 0x277   :  { %v1904_v15 = vmul.f32 %v1842_v13, %v1729_v12  ;;  %v2149_v12 = vld [vmem:[#allocation3 + $0x4f] sm:$0xff] }
 0x278   :  { %2702 = vrot.lane.b32.xlu1 %v2647_v14, %s5572_s20 }
 0x279   :  { %2700 = vrot.lane.b32.xlu0 %v2497_v2, %s5572_s20  ;;  %1929 = vst.msk [vmem:[#allocation3 + $0x88] sm:$0xff] %vm210_vm12, %v1904_v15 }
 0x27c   :  { %2200 = vrot.lane.b32.xlu1 %v2145_v16, %s5572_s20  ;;  %v2954_v17 = vld [vmem:[#allocation3 + $0x7b] sm:$0xff] }
 0x27d   :  { %2198 = vrot.lane.b32.xlu0 %v2294_v57, %s5572_s20  ;;  %2979 = vst.msk [vmem:[#allocation4 + $0x130] sm:$0xff] %vm210_vm12, %v2954_v17  ;;  %v2456_v18 = vld [vmem:[#allocation3 + $0x80] sm:$0xff]  ;;  %v1862_v57 = vpop.permute.xlu0 %1861 }
 0x27e   :  { %2481 = vst.msk [vmem:[#allocation4 + $0x158] sm:$0xff] %vm210_vm12, %v2456_v18  ;;  %v1954_v22 = vld [vmem:[#allocation3 + $0x7d] sm:$0xff] }
 0x27f   :  { %1979 = vst.msk [vmem:[#allocation4 + $0x168] sm:$0xff] %vm210_vm12, %v1954_v22  ;;  %v2800_v17 = vld [vmem:[#allocation3 + $0x5a] sm:$0xff] }
 0x280   :  { %2852 = vrot.lane.b32.xlu1 %v2797_v21, %s5573_s26  ;;  %v2955_v23 = vld [vmem:[#allocation3 + $0x83] sm:$0xff] }
 0x281   :  { %2850 = vrot.lane.b32.xlu0 %v2796_v19, %s5573_s26  ;;  %2980 = vst.msk [vmem:[#allocation4 + $0x148] sm:$0xff] %vm210_vm12, %v2955_v23  ;;  %v2457_v25 = vld [vmem:[#allocation3 + $0x88] sm:$0xff]  ;;  %v7216_v8 = vpop.permute.xlu0 %1871  ;;  %v2300_v23 = vld [vmem:[#allocation3 + $0x57] sm:$0xff] }
 0x282   :  { %2482 = vst.msk [vmem:[#allocation4 + $0x170] sm:$0xff] %vm210_vm12, %v2457_v25  ;;  %v1955_v28 = vld [vmem:[#allocation3 + $0x85] sm:$0xff] }
 0x283   :  { %1980 = vst.msk [vmem:[#allocation4 + $0x180] sm:$0xff] %vm210_vm12, %v1955_v28  ;;  %v2801_v19 = vld [vmem:[#allocation3 + $0x62] sm:$0xff] }
 0x284   :  { %2351 = vrot.lane.b32.xlu1 %v2296_v27, %s5573_s26  ;;  %v3030_v62 = vld [vmem:[#allocation4 + $0x130] sm:$0xff] }
 0x285   :  { %2349 = vrot.lane.b32.xlu0 %v2145_v16, %s5573_s26 }
 0x288   :  { %2556 = vrot.lane.b32.xlu1 %v2499_v61, %s5571_s2  ;;  %v3033_v29 = vld [vmem:[#allocation4 + $0x148] sm:$0xff] }
 0x289   :  { %2554 = vrot.lane.b32.xlu0 %v2647_v14, %s5571_s2  ;;  %v3087_v30 = vpack.c.bf16 %v3033_v29, %v3030_v62  ;;  %v2503_v29 = vld [vmem:[#allocation3 + $0x69] sm:$0xff] }
 0x28a   :  { %v1676_v31 = vpop.f32.mrf.mxu0 }
 0x28b   :  { %v1677_v33 = vadd.f32 %v6968_v24, %v1676_v31  ;;  %5359 = vmatmul.mubr.msk.bf16.gmra.mxu0 %vm210_vm12, %v3087_v30 }
 0x28c   :  { %2053 = vrot.lane.b32.xlu1 %v1996_v34, %s5571_s2  ;;  %v5312_v49 = vpop.f32.mrf.mxu0  ;;  %5362 = vmatprep.mubr.msk.bf16.mxu0 %vm5568_vm2, %v5565_v5  ;;  %v1999_v34 = vld [vmem:[#allocation3 + $0x56] sm:$0xff] }
 0x28d   :  { %2051 = vrot.lane.b32.xlu0 %v1995_v32, %s5571_s2  ;;  %v1730_v35 = vmax.f32 %v1677_v33, 0.0 }
 0x28e   :  { %v1679_v20 = vpop.f32.mrf.mxu0 }
 0x28f   :  { %v1905_v36 = vmul.f32 %v1847_v56, %v1730_v35  ;;  %v1680_v37 = vadd.f32 %v6968_v24, %v1679_v20  ;;  %v2000_v35 = vld [vmem:[#allocation3 + $0x5e] sm:$0xff] }
 0x290   :  { %2706 = vrot.lane.b32.xlu1 %v2649_v26, %s5572_s20  ;;  %v5313_v38 = vpop.f32.mrf.mxu0 }
 0x291   :  { %2704 = vrot.lane.b32.xlu0 %v2499_v61, %s5572_s20  ;;  %1930 = vst.msk [vmem:[#allocation3 + $0x90] sm:$0xff] %vm210_vm12, %v1905_v36  ;;  %v1731_v40 = vmax.f32 %v1680_v37, 0.0  ;;  %v2653_v36 = vld [vmem:[#allocation3 + $0x71] sm:$0xff] }
 0x293   :  { %v1906_v42 = vmul.f32 %v1852_v41, %v1731_v40 }
 0x294   :  { %2204 = vrot.lane.b32.xlu1 %v2147_v44, %s5572_s20 }
 0x295   :  { %2202 = vrot.lane.b32.xlu0 %v2296_v27, %s5572_s20  ;;  %1931 = vst.msk [vmem:[#allocation3 + $0x98] sm:$0xff] %vm210_vm12, %v1906_v42 }
 0x298   :  { %v2956_v43 = vld [vmem:[#allocation3 + $0x8b] sm:$0xff]  ;;  %2856 = vrot.lane.b32.xlu1 %v2799_v39, %s5573_s26 }
 0x299   :  { %2854 = vrot.lane.b32.xlu0 %v2798_v45, %s5573_s26  ;;  %2981 = vst.msk [vmem:[#allocation4 + $0x160] sm:$0xff] %vm210_vm12, %v2956_v43  ;;  %v2458_v46 = vld [vmem:[#allocation3 + $0x90] sm:$0xff] }
 0x29a   :  { %2483 = vst.msk [vmem:[#allocation4 + $0x188] sm:$0xff] %vm210_vm12, %v2458_v46  ;;  %v1956_v47 = vld [vmem:[#allocation3 + $0x8d] sm:$0xff] }
 0x29b   :  { %1981 = vst.msk [vmem:[#allocation4 + $0x198] sm:$0xff] %vm210_vm12, %v1956_v47 }
 0x29c   :  { %v2957_v50 = vld [vmem:[#allocation3 + $0x93] sm:$0xff]  ;;  %2355 = vrot.lane.b32.xlu1 %v2298_v48, %s5573_s26 }
 0x29d   :  { %2353 = vrot.lane.b32.xlu0 %v2147_v44, %s5573_s26  ;;  %2982 = vst.msk [vmem:[#allocation4 + $0x178] sm:$0xff] %vm210_vm12, %v2957_v50  ;;  %v2459_v51 = vld [vmem:[#allocation3 + $0x98] sm:$0xff] }
 0x29e   :  { %2484 = vst.msk [vmem:[#allocation4 + $0x1a0] sm:$0xff] %vm210_vm12, %v2459_v51  ;;  %v1957_v52 = vld [vmem:[#allocation3 + $0x95] sm:$0xff]  ;;  %v2151_v44 = vld [vmem:[#allocation3 + $0x5f] sm:$0xff] }
 0x29f   :  { %1982 = vst.msk [vmem:[#allocation4 + $0x1b0] sm:$0xff] %vm210_vm12, %v1957_v52 }
 0x2a0   :  { %2560 = vrot.lane.b32.xlu1 %v2501_v54, %s5571_s2  ;;  %v3036_v63 = vld [vmem:[#allocation4 + $0x160] sm:$0xff] }
 0x2a1   :  { %2558 = vrot.lane.b32.xlu0 %v2649_v26, %s5571_s2 }
 0x2a4   :  { %2057 = vrot.lane.b32.xlu1 %v1998_v58, %s5571_s2  ;;  %v3039_v0 = vld [vmem:[#allocation4 + $0x178] sm:$0xff] }
 0x2a5   :  { %2055 = vrot.lane.b32.xlu0 %v1997_v55, %s5571_s2  ;;  %v3090_v2 = vpack.c.bf16 %v3039_v0, %v3036_v63 }
 0x2a6   :  { %v1684_v3 = vpop.f32.mrf.mxu0 }
 0x2a7   :  { %v1685_v4 = vadd.f32 %v6968_v24, %v1684_v3  ;;  %5363 = vmatmul.mubr.msk.bf16.gmra.mxu0 %vm210_vm12, %v3090_v2 }
 0x2a8   :  { %2710 = vrot.lane.b32.xlu1 %v2651_v6, %s5572_s20  ;;  %v5316_v7 = vpop.f32.mrf.mxu0  ;;  %5366 = vmatprep.mubr.msk.bf16.mxu0 %vm5568_vm2, %v5565_v5 }
 0x2a9   :  { %2708 = vrot.lane.b32.xlu0 %v2501_v54, %s5572_s20  ;;  %v1732_v9 = vmax.f32 %v1685_v4, 0.0  ;;  %v2505_v4 = vld [vmem:[#allocation3 + $0x79] sm:$0xff] }
 0x2aa   :  { %v2543_v10 = vpop.permute.xlu1 %2542  ;;  %v1687_v59 = vpop.f32.mrf.mxu0 }
 0x2ab   :  { %2617 = vst.msk [vmem:[#allocation4 + $0x8] sm:$0xff] %vm2114_vm13, %v2543_v10  ;;  %v1907_v60 = vmul.f32 %v1857_v53, %v1732_v9  ;;  %v1688_v11 = vadd.f32 %v6968_v24, %v1687_v59  ;;  %v2803_v53 = vld [vmem:[#allocation3 + $0x72] sm:$0xff]  ;;  %v2001_v10 = vld [vmem:[#allocation3 + $0x66] sm:$0xff] }
 0x2ac   :  { %2208 = vrot.lane.b32.xlu1 %v2149_v12, %s5572_s20  ;;  %v5317_v13 = vpop.f32.mrf.mxu0 }
 0x2ad   :  { %2206 = vrot.lane.b32.xlu0 %v2298_v48, %s5572_s20  ;;  %1932 = vst.msk [vmem:[#allocation3 + $0xa0] sm:$0xff] %vm210_vm12, %v1907_v60  ;;  %v1733_v14 = vmax.f32 %v1688_v11, 0.0  ;;  %v2802_v48 = vld [vmem:[#allocation3 + $0x6a] sm:$0xff] }
 0x2ae   :  { %v2040_v16 = vpop.permute.xlu1 %2039  ;;  %v2002_v60 = vld [vmem:[#allocation3 + $0x6e] sm:$0xff] }
 0x2af   :  { %v2545_v15 = vpop.permute.xlu0 %2544  ;;  %2115 = vst.msk [vmem:[#allocation4] sm:$0xff] %vm2114_vm13, %v2040_v16  ;;  %v1908_v18 = vmul.f32 %v1862_v57, %v1733_v14  ;;  %v2655_v16 = vld [vmem:[#allocation3 + $0x81] sm:$0xff] }
 0x2b0   :  { %2618 = vst.msk [vmem:[#allocation4 + $0x20] sm:$0xff] %vm2114_vm13, %v2545_v15  ;;  %2860 = vrot.lane.b32.xlu1 %v2801_v19, %s5573_s26  ;;  %v2153_v19 = vld [vmem:[#allocation3 + $0x6f] sm:$0xff] }
 0x2b1   :  { %2858 = vrot.lane.b32.xlu0 %v2800_v17, %s5573_s26  ;;  %1933 = vst.msk [vmem:[#allocation3 + $0xa8] sm:$0xff] %vm210_vm12, %v1908_v18 }
 0x2b2   :  { %v2693_v22 = vpop.permute.xlu1 %2692 }
 0x2b3   :  { %v2042_v21 = vpop.permute.xlu0 %2041  ;;  %2767 = vst.msk [vmem:[#allocation4 + $0x8] sm:$0xff] %vm2265_vm14, %v2693_v22 }
 0x2b4   :  { %2116 = vst.msk [vmem:[#allocation4 + $0x18] sm:$0xff] %vm2114_vm13, %v2042_v21  ;;  %v2958_v25 = vld [vmem:[#allocation3 + $0x9b] sm:$0xff]  ;;  %2359 = vrot.lane.b32.xlu1 %v2300_v23, %s5573_s26 }
 0x2b5   :  { %2357 = vrot.lane.b32.xlu0 %v2149_v12, %s5573_s26  ;;  %2983 = vst.msk [vmem:[#allocation4 + $0x190] sm:$0xff] %vm210_vm12, %v2958_v25  ;;  %v2460_v61 = vld [vmem:[#allocation3 + $0xa0] sm:$0xff] }
 0x2b6   :  { %v2191_v28 = vpop.permute.xlu1 %2190  ;;  %2485 = vst.msk [vmem:[#allocation4 + $0x1b8] sm:$0xff] %vm210_vm12, %v2460_v61  ;;  %v1958_v62 = vld [vmem:[#allocation3 + $0x9d] sm:$0xff]  ;;  %v5456_v61 = vld [vmem:[%s7785_s3] ss:$0 sm:$0xff] }
 0x2b7   :  { %v2695_v27 = vpop.permute.xlu0 %2694  ;;  %2266 = vst.msk [vmem:[#allocation4] sm:$0xff] %vm2265_vm14, %v2191_v28  ;;  %v2804_v28 = vld [vmem:[#allocation3 + $0x7a] sm:$0xff] }
 0x2b8   :  { %2768 = vst.msk [vmem:[#allocation4 + $0x20] sm:$0xff] %vm2265_vm14, %v2695_v27  ;;  %v2959_v30 = vld [vmem:[#allocation3 + $0xa3] sm:$0xff]  ;;  %2564 = vrot.lane.b32.xlu1 %v2503_v29, %s5571_s2 }
 0x2b9   :  { %2562 = vrot.lane.b32.xlu0 %v2651_v6, %s5571_s2  ;;  %1983 = vst.msk [vmem:[#allocation4 + $0x1c8] sm:$0xff] %vm210_vm12, %v1958_v62  ;;  %2984 = vst.msk [vmem:[#allocation4 + $0x1a8] sm:$0xff] %vm210_vm12, %v2959_v30  ;;  %v2461_v33 = vld [vmem:[#allocation3 + $0xa8] sm:$0xff] }
 0x2ba   :  { %v2843_v32 = vpop.permute.xlu1 %2842  ;;  %2486 = vst.msk [vmem:[#allocation4 + $0x1d0] sm:$0xff] %vm210_vm12, %v2461_v33  ;;  %v1959_v49 = vld [vmem:[#allocation3 + $0xa5] sm:$0xff] }
 0x2bb   :  { %v2193_v31 = vpop.permute.xlu0 %2192  ;;  %2917 = vst.msk [vmem:[#allocation4 + $0x8] sm:$0xff] %vm2416_vm15, %v2843_v32  ;;  %v2805_v30 = vld [vmem:[#allocation3 + $0x82] sm:$0xff] }
 0x2bc   :  { %2267 = vst.msk [vmem:[#allocation4 + $0x18] sm:$0xff] %vm2265_vm14, %v2193_v31  ;;  %2061 = vrot.lane.b32.xlu1 %v2000_v35, %s5571_s2  ;;  %v3042_v37 = vld [vmem:[#allocation4 + $0x190] sm:$0xff] }
 0x2bd   :  { %2059 = vrot.lane.b32.xlu0 %v1999_v34, %s5571_s2  ;;  %1984 = vst.msk [vmem:[#allocation4 + $0x1e0] sm:$0xff] %vm210_vm12, %v1959_v49 }
 0x2be   :  { %v2342_v20 = vpop.permute.xlu1 %2341 }
 0x2bf   :  { %v2845_v56 = vpop.permute.xlu0 %2844  ;;  %2417 = vst.msk [vmem:[#allocation4] sm:$0xff] %vm2416_vm15, %v2342_v20  ;;  %v2304_v20 = vld [vmem:[#allocation3 + $0x77] sm:$0xff] }
 0x2c0   :  { %2918 = vst.msk [vmem:[#allocation4 + $0x20] sm:$0xff] %vm2416_vm15, %v2845_v56  ;;  %2714 = vrot.lane.b32.xlu1 %v2653_v36, %s5572_s20  ;;  %v3045_v26 = vld [vmem:[#allocation4 + $0x1a8] sm:$0xff] }
 0x2c1   :  { %2712 = vrot.lane.b32.xlu0 %v2503_v29, %s5572_s20  ;;  %v3093_v40 = vpack.c.bf16 %v3045_v26, %v3042_v37 }
 0x2c2   :  { %v1692_v41 = vpop.f32.mrf.mxu0  ;;  %v2993_v43 = vld [vmem:[#allocation4 + $0x8] sm:$0xff] }
 0x2c3   :  { %v2344_v38 = vpop.permute.xlu0 %2343  ;;  %v1693_v42 = vadd.f32 %v6968_v24, %v1692_v41  ;;  %5367 = vmatmul.mubr.msk.bf16.gmra.mxu0 %vm210_vm12, %v3093_v40  ;;  %v2507_v41 = vld [vmem:[#allocation3 + $0x89] sm:$0xff] }
 0x2c4   :  { %2418 = vst.msk [vmem:[#allocation4 + $0x18] sm:$0xff] %vm2416_vm15, %v2344_v38  ;;  %2212 = vrot.lane.b32.xlu1 %v2151_v44, %s5572_s20  ;;  %v5320_v45 = vpop.f32.mrf.mxu0  ;;  %5370 = vmatprep.mubr.msk.bf16.mxu0 %vm5568_vm2, %v5565_v5 }
 0x2c5   :  { %2210 = vrot.lane.b32.xlu0 %v2300_v23, %s5572_s20  ;;  %v1734_v39 = vmax.f32 %v1693_v42, 0.0 }
 0x2c6   :  { %v1695_v47 = vpop.f32.mrf.mxu0  ;;  %v2992_v57 = vld [vmem:[#allocation4] sm:$0xff] }
 0x2c7   :  { %v2996_v46 = vld [vmem:[#allocation4 + $0x20] sm:$0xff]  ;;  %v1909_v51 = vmul.f32 %v7208_v1, %v1734_v39  ;;  %v1696_v52 = vadd.f32 %v6968_v24, %v1695_v47  ;;  %v2004_v47 = vld [vmem:[#allocation3 + $0x7e] sm:$0xff] }
 0x2c8   :  { %v3068_v50 = vpack.c.bf16 %v2996_v46, %v2993_v43  ;;  %2864 = vrot.lane.b32.xlu1 %v2803_v53, %s5573_s26  ;;  %v5321_v54 = vpop.f32.mrf.mxu0  ;;  %v2302_v24 = vld [vmem:[#allocation3 + $0x67] sm:$0xff] }
 0x2c9   :  { %2862 = vrot.lane.b32.xlu0 %v2802_v48, %s5573_s26  ;;  %1934 = vst.msk [vmem:[#allocation3 + $0xb0] sm:$0xff] %vm210_vm12, %v1909_v51  ;;  %v1735_v55 = vmax.f32 %v1696_v52, 0.0 }
 0x2ca   :  { %3328 = vmatprep.mubr.bf16.mxu1 %v3068_v50 }
 0x2cb   :  { %v2995_v58 = vld [vmem:[#allocation4 + $0x18] sm:$0xff]  ;;  %v7262_v63 = vpop.permute.xlu1 %1876  ;;  %v1910_v2 = vmul.f32 %v7216_v8, %v1735_v55 }
 0x2cc   :  { %v3067_v0 = vpack.c.bf16 %v2995_v58, %v2992_v57  ;;  %2363 = vrot.lane.b32.xlu1 %v2302_v24, %s5573_s26 }
 0x2cd   :  { %2361 = vrot.lane.b32.xlu0 %v2151_v44, %s5573_s26  ;;  %1935 = vst.msk [vmem:[#allocation3 + $0xb8] sm:$0xff] %vm210_vm12, %v1910_v2  ;;  %v2003_v44 = vld [vmem:[#allocation3 + $0x76] sm:$0xff] }
 0x2ce   :  { %3329 = vmatmul.mubr.bf16.vlgmr.msra.gmra.mxu1 %v3067_v0 }
 0x2cf   :  { %v2547_v3 = vpop.permute.xlu1 %2546 }
 0x2d0   :  { %v7268_v1 = vpop.permute.xlu0 %1881  ;;  %2619 = vst.msk [vmem:[#allocation4 + $0x38] sm:$0xff] %vm2114_vm13, %v2547_v3  ;;  %v2960_v6 = vld [vmem:[#allocation3 + $0xab] sm:$0xff]  ;;  %2568 = vrot.lane.b32.xlu1 %v2505_v4, %s5571_s2 }
 0x2d1   :  { %2566 = vrot.lane.b32.xlu0 %v2653_v36, %s5571_s2  ;;  %2985 = vst.msk [vmem:[#allocation4 + $0x1c0] sm:$0xff] %vm210_vm12, %v2960_v6  ;;  %v2462_v7 = vld [vmem:[#allocation3 + $0xb0] sm:$0xff] }
 0x2d2   :  { %2487 = vst.msk [vmem:[#allocation4 + $0x1e8] sm:$0xff] %vm210_vm12, %v2462_v7  ;;  %v1960_v59 = vld [vmem:[#allocation3 + $0xad] sm:$0xff] }
 0x2d3   :  { %v2044_v9 = vpop.permute.xlu1 %2043  ;;  %1985 = vst.msk [vmem:[#allocation4 + $0x1f8] sm:$0xff] %vm210_vm12, %v1960_v59  ;;  %v2155_v59 = vld [vmem:[#allocation3 + $0x7f] sm:$0xff] }
 0x2d4   :  { %v2549_v8 = vpop.permute.xlu0 %2548  ;;  %2117 = vst.msk [vmem:[#allocation4 + $0x30] sm:$0xff] %vm2114_vm13, %v2044_v9  ;;  %v2961_v11 = vld [vmem:[#allocation3 + $0xb3] sm:$0xff]  ;;  %2065 = vrot.lane.b32.xlu1 %v2002_v60, %s5571_s2 }
 0x2d5   :  { %2620 = vst.msk [vmem:[#allocation4 + $0x50] sm:$0xff] %vm2114_vm13, %v2549_v8  ;;  %2063 = vrot.lane.b32.xlu0 %v2001_v10, %s5571_s2  ;;  %v2463_v12 = vld [vmem:[#allocation3 + $0xb8] sm:$0xff] }
 0x2d6   :  { %2986 = vst.msk [vmem:[#allocation4 + $0x1d8] sm:$0xff] %vm210_vm12, %v2961_v11  ;;  %2488 = vst.msk [vmem:[#allocation4 + $0x200] sm:$0xff] %vm210_vm12, %v2463_v12  ;;  %v1961_v15 = vld [vmem:[#allocation3 + $0xb5] sm:$0xff]  ;;  %v2806_v11 = vld [vmem:[#allocation3 + $0x8a] sm:$0xff] }
 0x2d7   :  { %v2697_v14 = vpop.permute.xlu1 %2696  ;;  %1986 = vst.msk [vmem:[#allocation4 + $0x210] sm:$0xff] %vm210_vm12, %v1961_v15 }
 0x2d8   :  { %v2046_v13 = vpop.permute.xlu0 %2045  ;;  %2769 = vst.msk [vmem:[#allocation4 + $0x38] sm:$0xff] %vm2265_vm14, %v2697_v14  ;;  %2718 = vrot.lane.b32.xlu1 %v2655_v16, %s5572_s20  ;;  %v3048_v21 = vld [vmem:[#allocation4 + $0x1c0] sm:$0xff] }
 0x2d9   :  { %2118 = vst.msk [vmem:[#allocation4 + $0x48] sm:$0xff] %vm2114_vm13, %v2046_v13  ;;  %2716 = vrot.lane.b32.xlu0 %v2505_v4, %s5572_s20  ;;  %v2807_v13 = vld [vmem:[#allocation3 + $0x92] sm:$0xff] }
 0x2db   :  { %v2195_v18 = vpop.permute.xlu1 %2194 }
 0x2dc   :  { %v2699_v17 = vpop.permute.xlu0 %2698  ;;  %2268 = vst.msk [vmem:[#allocation4 + $0x30] sm:$0xff] %vm2265_vm14, %v2195_v18  ;;  %2216 = vrot.lane.b32.xlu1 %v2153_v19, %s5572_s20 }
 0x2dd   :  { %2770 = vst.msk [vmem:[#allocation4 + $0x50] sm:$0xff] %vm2265_vm14, %v2699_v17  ;;  %2214 = vrot.lane.b32.xlu0 %v2302_v24, %s5572_s20  ;;  %v3051_v22 = vld [vmem:[#allocation4 + $0x1d8] sm:$0xff]  ;;  %v2657_v24 = vld [vmem:[#allocation3 + $0x91] sm:$0xff] }
 0x2de   :  { %v3096_v23 = vpack.c.bf16 %v3051_v22, %v3048_v21  ;;  %v1700_v25 = vpop.f32.mrf.mxu0  ;;  %v2306_v22 = vld [vmem:[#allocation3 + $0x87] sm:$0xff] }
 0x2df   :  { %v1701_v62 = vadd.f32 %v5456_v61, %v1700_v25  ;;  %v2847_v29 = vpop.permute.xlu1 %2846 }
 0x2e0   :  { %v2197_v27 = vpop.permute.xlu0 %2196  ;;  %5371 = vmatmul.mubr.msk.bf16.gmra.mxu0 %vm210_vm12, %v3096_v23  ;;  %2919 = vst.msk [vmem:[#allocation4 + $0x38] sm:$0xff] %vm2416_vm15, %v2847_v29  ;;  %2868 = vrot.lane.b32.xlu1 %v2805_v30, %s5573_s26  ;;  %v5324_v31 = vpop.f32.mrf.mxu0  ;;  %v2005_v30 = vld [vmem:[#allocation3 + $0x86] sm:$0xff] }
 0x2e1   :  { %2269 = vst.msk [vmem:[#allocation4 + $0x48] sm:$0xff] %vm2265_vm14, %v2197_v27  ;;  %2866 = vrot.lane.b32.xlu0 %v2804_v28, %s5573_s26  ;;  %5374 = vmatprep.mubr.msk.bf16.mxu0 %vm5568_vm2, %v5565_v5  ;;  %v1736_v32 = vmax.f32 %v1701_v62, 0.0  ;;  %v2509_v28 = vld [vmem:[#allocation3 + $0x99] sm:$0xff] }
 0x2e2   :  { %v1703_v33 = vpop.f32.mrf.mxu0 }
 0x2e3   :  { %v1911_v49 = vmul.f32 %v7262_v63, %v1736_v32  ;;  %v1704_v35 = vadd.f32 %v5456_v61, %v1703_v33  ;;  %v2346_v56 = vpop.permute.xlu1 %2345 }
 0x2e4   :  { %v2849_v34 = vpop.permute.xlu0 %2848  ;;  %2419 = vst.msk [vmem:[#allocation4 + $0x30] sm:$0xff] %vm2416_vm15, %v2346_v56  ;;  %2367 = vrot.lane.b32.xlu1 %v2304_v20, %s5573_s26  ;;  %v5325_v36 = vpop.f32.mrf.mxu0 }
 0x2e5   :  { %2920 = vst.msk [vmem:[#allocation4 + $0x50] sm:$0xff] %vm2416_vm15, %v2849_v34  ;;  %2365 = vrot.lane.b32.xlu0 %v2153_v19, %s5573_s26  ;;  %v1737_v37 = vmax.f32 %v1704_v35, 0.0  ;;  %v2006_v34 = vld [vmem:[#allocation3 + $0x8e] sm:$0xff] }
 0x2e6   :  { %1936 = vst.msk [vmem:[#allocation3 + $0xc0] sm:$0xff] %vm210_vm12, %v1911_v49 }
 0x2e7   :  { %v1912_v38 = vmul.f32 %v7268_v1, %v1737_v37  ;;  %v1887_v40 = vpop.permute.xlu1 %1886  ;;  %v2999_v45 = vld [vmem:[#allocation4 + $0x38] sm:$0xff] }
 0x2e8   :  { %v2348_v26 = vpop.permute.xlu0 %2347  ;;  %2572 = vrot.lane.b32.xlu1 %v2507_v41, %s5571_s2 }
 0x2e9   :  { %2420 = vst.msk [vmem:[#allocation4 + $0x48] sm:$0xff] %vm2416_vm15, %v2348_v26  ;;  %2570 = vrot.lane.b32.xlu0 %v2655_v16, %s5571_s2  ;;  %v2659_v26 = vld [vmem:[#allocation3 + $0xa1] sm:$0xff] }
 0x2ea   :  { %1937 = vst.msk [vmem:[#allocation3 + $0xc8] sm:$0xff] %vm210_vm12, %v1912_v38 }
 0x2eb   :  { %v2553_v43 = vpop.permute.xlu1 %2552  ;;  %v1708_v46 = vpop.f32.mrf.mxu0  ;;  %v2998_v53 = vld [vmem:[#allocation4 + $0x30] sm:$0xff] }
 0x2ec   :  { %v2551_v42 = vpop.permute.xlu0 %2550  ;;  %v3002_v39 = vld [vmem:[#allocation4 + $0x50] sm:$0xff]  ;;  %2622 = vst.msk [vmem:[#allocation4 + $0x80] sm:$0xff] %vm2114_vm13, %v2553_v43  ;;  %v1709_v51 = vadd.f32 %v5456_v61, %v1708_v46  ;;  %2069 = vrot.lane.b32.xlu1 %v2004_v47, %s5571_s2 }
 0x2ed   :  { %2621 = vst.msk [vmem:[#allocation4 + $0x68] sm:$0xff] %vm2114_vm13, %v2551_v42  ;;  %2067 = vrot.lane.b32.xlu0 %v2003_v44, %s5571_s2  ;;  %v3071_v48 = vpack.c.bf16 %v3002_v39, %v2999_v45  ;;  %v2962_v50 = vld [vmem:[#allocation3 + $0xbb] sm:$0xff]  ;;  %v5328_v52 = vpop.f32.mrf.mxu0  ;;  %v2157_v39 = vld [vmem:[#allocation3 + $0x8f] sm:$0xff] }
 0x2ee   :  { %2987 = vst.msk [vmem:[#allocation4 + $0x1f0] sm:$0xff] %vm210_vm12, %v2962_v50  ;;  %v1738_v54 = vmax.f32 %v1709_v51, 0.0  ;;  %v2464_v58 = vld [vmem:[#allocation3 + $0xc0] sm:$0xff] }
 0x2ef   :  { %3336 = vmatprep.mubr.bf16.mxu1 %v3071_v48  ;;  %v1962_v63 = vld [vmem:[#allocation3 + $0xbd] sm:$0xff]  ;;  %v2050_v0 = vpop.permute.xlu1 %2049  ;;  %v1711_v2 = vpop.f32.mrf.mxu0  ;;  %2489 = vst.msk [vmem:[#allocation4 + $0x218] sm:$0xff] %vm210_vm12, %v2464_v58 }
 0x2f0   :  { %v2048_v55 = vpop.permute.xlu0 %2047  ;;  %v3001_v57 = vld [vmem:[#allocation4 + $0x48] sm:$0xff]  ;;  %1987 = vst.msk [vmem:[#allocation4 + $0x228] sm:$0xff] %vm210_vm12, %v1962_v63  ;;  %v1913_v4 = vmul.f32 %v1887_v40, %v1738_v54  ;;  %2722 = vrot.lane.b32.xlu1 %v2657_v24, %s5572_s20  ;;  %v2808_v48 = vld [vmem:[#allocation3 + $0x9a] sm:$0xff]  ;;  %v2809_v51 = vld [vmem:[#allocation3 + $0xa2] sm:$0xff] }
 0x2f1   :  { %2119 = vst.msk [vmem:[#allocation4 + $0x60] sm:$0xff] %vm2114_vm13, %v2048_v55  ;;  %2720 = vrot.lane.b32.xlu0 %v2507_v41, %s5572_s20  ;;  %v3070_v1 = vpack.c.bf16 %v3001_v57, %v2998_v53  ;;  %v2963_v3 = vld [vmem:[#allocation3 + $0xc3] sm:$0xff]  ;;  %2120 = vst.msk [vmem:[#allocation4 + $0x78] sm:$0xff] %vm2114_vm13, %v2050_v0  ;;  %v5329_v6 = vpop.f32.mrf.mxu0  ;;  %v2308_v57 = vld [vmem:[#allocation3 + $0x97] sm:$0xff] }
 0x2f2   :  { %2988 = vst.msk [vmem:[#allocation4 + $0x208] sm:$0xff] %vm210_vm12, %v2963_v3  ;;  %1938 = vst.msk [vmem:[#allocation3 + $0xd0] sm:$0xff] %vm210_vm12, %v1913_v4  ;;  %v2465_v8 = vld [vmem:[#allocation3 + $0xc8] sm:$0xff]  ;;  %v2007_v6 = vld [vmem:[#allocation3 + $0x96] sm:$0xff] }
 0x2f3   :  { %3337 = vmatmul.mubr.bf16.gmra.mxu1 %v3070_v1  ;;  %v1963_v9 = vld [vmem:[#allocation3 + $0xc5] sm:$0xff]  ;;  %v2703_v10 = vpop.permute.xlu1 %2702  ;;  %2490 = vst.msk [vmem:[#allocation4 + $0x230] sm:$0xff] %vm210_vm12, %v2465_v8 }
 0x2f4   :  { %v2701_v7 = vpop.permute.xlu0 %2700  ;;  %1988 = vst.msk [vmem:[#allocation4 + $0x240] sm:$0xff] %vm210_vm12, %v1963_v9  ;;  %2220 = vrot.lane.b32.xlu1 %v2155_v59, %s5572_s20  ;;  %v2008_v9 = vld [vmem:[#allocation3 + $0x9e] sm:$0xff] }
 0x2f5   :  { %2771 = vst.msk [vmem:[#allocation4 + $0x68] sm:$0xff] %vm2265_vm14, %v2701_v7  ;;  %2218 = vrot.lane.b32.xlu0 %v2304_v20, %s5572_s20  ;;  %2772 = vst.msk [vmem:[#allocation4 + $0x80] sm:$0xff] %vm2265_vm14, %v2703_v10  ;;  %v3054_v14 = vld [vmem:[#allocation4 + $0x1f0] sm:$0xff] }
 0x2f7   :  { %v2201_v12 = vpop.permute.xlu1 %2200 }
 0x2f8   :  { %v2199_v60 = vpop.permute.xlu0 %2198  ;;  %2271 = vst.msk [vmem:[#allocation4 + $0x78] sm:$0xff] %vm2265_vm14, %v2201_v12  ;;  %2872 = vrot.lane.b32.xlu1 %v2807_v13, %s5573_s26 }
 0x2f9   :  { %2270 = vst.msk [vmem:[#allocation4 + $0x60] sm:$0xff] %vm2265_vm14, %v2199_v60  ;;  %2870 = vrot.lane.b32.xlu0 %v2806_v11, %s5573_s26  ;;  %v3057_v15 = vld [vmem:[#allocation4 + $0x208] sm:$0xff] }
 0x2fa   :  { %v2964_v16 = vld [vmem:[#allocation3 + $0xcb] sm:$0xff]  ;;  %v2965_v17 = vld [vmem:[#allocation3 + $0xd3] sm:$0xff]  ;;  %v3099_v18 = vpack.c.bf16 %v3057_v15, %v3054_v14 }
 0x2fb   :  { %2989 = vst.msk [vmem:[#allocation4 + $0x220] sm:$0xff] %vm210_vm12, %v2964_v16  ;;  %2990 = vst.msk [vmem:[#allocation4 + $0x238] sm:$0xff] %vm210_vm12, %v2965_v17  ;;  %v2853_v21 = vpop.permute.xlu1 %2852  ;;  %v2466_v23 = vld [vmem:[#allocation3 + $0xd0] sm:$0xff] }
 0x2fc   :  { %v2851_v19 = vpop.permute.xlu0 %2850  ;;  %5375 = vmatmul.mubr.msk.bf16.gmra.mxu0 %vm210_vm12, %v3099_v18  ;;  %2922 = vst.msk [vmem:[#allocation4 + $0x80] sm:$0xff] %vm2416_vm15, %v2853_v21  ;;  %2371 = vrot.lane.b32.xlu1 %v2306_v22, %s5573_s26  ;;  %v2661_v15 = vld [vmem:[#allocation3 + $0xb1] sm:$0xff] }
 0x2fd   :  { %2921 = vst.msk [vmem:[#allocation4 + $0x68] sm:$0xff] %vm2416_vm15, %v2851_v19  ;;  %2369 = vrot.lane.b32.xlu0 %v2155_v59, %s5573_s26  ;;  %5378 = vmatprep.mubr.msk.bf16.mxu0 %vm5568_vm2, %v5565_v5 }
 0x2fe   :  { %2491 = vst.msk [vmem:[#allocation4 + $0x248] sm:$0xff] %vm210_vm12, %v2466_v23  ;;  %v2159_v23 = vld [vmem:[#allocation3 + $0x9f] sm:$0xff] }
 0x2ff   :  { %v2352_v27 = vpop.permute.xlu1 %2351 }
 0x300   :  { %v2350_v25 = vpop.permute.xlu0 %2349  ;;  %2422 = vst.msk [vmem:[#allocation4 + $0x78] sm:$0xff] %vm2416_vm15, %v2352_v27  ;;  %2576 = vrot.lane.b32.xlu1 %v2509_v28, %s5571_s2 }
 0x301   :  { %2421 = vst.msk [vmem:[#allocation4 + $0x60] sm:$0xff] %vm2416_vm15, %v2350_v25  ;;  %2574 = vrot.lane.b32.xlu0 %v2657_v24, %s5571_s2  ;;  %v2511_v24 = vld [vmem:[#allocation3 + $0xa9] sm:$0xff] }
 0x302   :  { %v3060_v61 = vld [vmem:[#allocation4 + $0x220] sm:$0xff]  ;;  %v3063_v62 = vld [vmem:[#allocation4 + $0x238] sm:$0xff] }
 0x303   :  { %v3102_v31 = vpack.c.bf16 %v3063_v62, %v3060_v61  ;;  %v2557_v33 = vpop.permute.xlu1 %2556  ;;  %v3008_v49 = vld [vmem:[#allocation4 + $0x80] sm:$0xff] }
 0x304   :  { %v2555_v29 = vpop.permute.xlu0 %2554  ;;  %v3005_v32 = vld [vmem:[#allocation4 + $0x68] sm:$0xff]  ;;  %2624 = vst.msk [vmem:[#allocation4 + $0xb0] sm:$0xff] %vm2114_vm13, %v2557_v33  ;;  %2073 = vrot.lane.b32.xlu1 %v2006_v34, %s5571_s2  ;;  %v2310_v34 = vld [vmem:[#allocation3 + $0xa7] sm:$0xff] }
 0x305   :  { %2623 = vst.msk [vmem:[#allocation4 + $0x98] sm:$0xff] %vm2114_vm13, %v2555_v29  ;;  %2071 = vrot.lane.b32.xlu0 %v2005_v30, %s5571_s2  ;;  %5379 = vmatmul.mubr.msk.bf16.gmra.mxu0 %vm210_vm12, %v3102_v31  ;;  %v3074_v35 = vpack.c.bf16 %v3008_v49, %v3005_v32  ;;  %v2810_v61 = vld [vmem:[#allocation3 + $0xaa] sm:$0xff]  ;;  %v2811_v29 = vld [vmem:[#allocation3 + $0xb2] sm:$0xff] }
 0x306   :  { %5382 = vmatprep.mubr.msk.bf16.mxu0 %vm5568_vm2, %v5565_v5  ;;  %v7356_v56 = vpop.f32.mrf.mxu0 }
 0x307   :  { %3344 = vmatprep.mubr.bf16.mxu1 %v3074_v35  ;;  %v2054_v37 = vpop.permute.xlu1 %2053  ;;  %v3007_v38 = vld [vmem:[#allocation4 + $0x78] sm:$0xff] }
 0x308   :  { %v2052_v20 = vpop.permute.xlu0 %2051  ;;  %v3004_v36 = vld [vmem:[#allocation4 + $0x60] sm:$0xff]  ;;  %2122 = vst.msk [vmem:[#allocation4 + $0xa8] sm:$0xff] %vm2114_vm13, %v2054_v37  ;;  %v5336_v40 = vpop.f32.mrf.mxu0  ;;  %2726 = vrot.lane.b32.xlu1 %v2659_v26, %s5572_s20 }
 0x309   :  { %2121 = vst.msk [vmem:[#allocation4 + $0x90] sm:$0xff] %vm2114_vm13, %v2052_v20  ;;  %2724 = vrot.lane.b32.xlu0 %v2509_v28, %s5572_s20  ;;  %v3073_v41 = vpack.c.bf16 %v3007_v38, %v3004_v36  ;;  %v2513_v36 = vld [vmem:[#allocation3 + $0xb9] sm:$0xff]  ;;  %v2009_v40 = vld [vmem:[#allocation3 + $0xa6] sm:$0xff] }
 0x30a   :  { %v7362_v42 = vpop.f32.mrf.mxu0 }
 0x30b   :  { %3345 = vmatmul.mubr.bf16.gmra.mxu1 %v3073_v41  ;;  %v2707_v45 = vpop.permute.xlu1 %2706 }
 0x30c   :  { %v2705_v44 = vpop.permute.xlu0 %2704  ;;  %2774 = vst.msk [vmem:[#allocation4 + $0xb0] sm:$0xff] %vm2265_vm14, %v2707_v45  ;;  %v5337_v43 = vpop.f32.mrf.mxu0  ;;  %2224 = vrot.lane.b32.xlu1 %v2157_v39, %s5572_s20  ;;  %v2010_v45 = vld [vmem:[#allocation3 + $0xae] sm:$0xff] }
 0x30d   :  { %2773 = vst.msk [vmem:[#allocation4 + $0x98] sm:$0xff] %vm2265_vm14, %v2705_v44  ;;  %2222 = vrot.lane.b32.xlu0 %v2306_v22, %s5572_s20 }
 0x30e   :  { %v7368_v46 = vpop.f32.mrf.mxu0 }
 0x30f   :  { %v2205_v50 = vpop.permute.xlu1 %2204 }
 0x310   :  { %v2203_v47 = vpop.permute.xlu0 %2202  ;;  %2273 = vst.msk [vmem:[#allocation4 + $0xa8] sm:$0xff] %vm2265_vm14, %v2205_v50  ;;  %v5340_v52 = vpop.f32.mrf.mxu0  ;;  %2876 = vrot.lane.b32.xlu1 %v2809_v51, %s5573_s26 }
 0x311   :  { %2272 = vst.msk [vmem:[#allocation4 + $0x90] sm:$0xff] %vm2265_vm14, %v2203_v47  ;;  %2874 = vrot.lane.b32.xlu0 %v2808_v48, %s5573_s26 }
 0x312   :  { %v7378_v53 = vpop.f32.mrf.mxu0 }
 0x313   :  { %v2857_v55 = vpop.permute.xlu1 %2856 }
 0x314   :  { %v2855_v54 = vpop.permute.xlu0 %2854  ;;  %2924 = vst.msk [vmem:[#allocation4 + $0xb0] sm:$0xff] %vm2416_vm15, %v2857_v55  ;;  %v5341_v58 = vpop.f32.mrf.mxu0  ;;  %2375 = vrot.lane.b32.xlu1 %v2308_v57, %s5573_s26 }
 0x315   :  { %2923 = vst.msk [vmem:[#allocation4 + $0x98] sm:$0xff] %vm2416_vm15, %v2855_v54  ;;  %2373 = vrot.lane.b32.xlu0 %v2157_v39, %s5573_s26  ;;  %v2663_v54 = vld [vmem:[#allocation3 + $0xc1] sm:$0xff] }
 0x316   :  { %v7384_v63 = vpop.f32.mrf.mxu0 }
 0x317   :  { %v2356_v2 = vpop.permute.xlu1 %2355 }
 0x318   :  { %v2354_v0 = vpop.permute.xlu0 %2353  ;;  %2424 = vst.msk [vmem:[#allocation4 + $0xa8] sm:$0xff] %vm2416_vm15, %v2356_v2  ;;  %v5344_v1 = vpop.f32.mrf.mxu0  ;;  %2580 = vrot.lane.b32.xlu1 %v2511_v24, %s5571_s2  ;;  %v2161_v2 = vld [vmem:[#allocation3 + $0xaf] sm:$0xff] }
 0x319   :  { %2423 = vst.msk [vmem:[#allocation4 + $0x90] sm:$0xff] %vm2416_vm15, %v2354_v0  ;;  %2578 = vrot.lane.b32.xlu0 %v2659_v26, %s5571_s2  ;;  %v2812_v1 = vld [vmem:[#allocation3 + $0xba] sm:$0xff] }
 0x31a   :  { %v7390_v3 = vpop.f32.mrf.mxu0 }
 0x31b   :  { %v2561_v8 = vpop.permute.xlu1 %2560  ;;  %v3014_v10 = vld [vmem:[#allocation4 + $0xb0] sm:$0xff] }
 0x31c   :  { %v2559_v4 = vpop.permute.xlu0 %2558  ;;  %v3011_v7 = vld [vmem:[#allocation4 + $0x98] sm:$0xff]  ;;  %2626 = vst.msk [vmem:[#allocation4 + $0xe0] sm:$0xff] %vm2114_vm13, %v2561_v8  ;;  %v5345_v59 = vpop.f32.mrf.mxu0  ;;  %2077 = vrot.lane.b32.xlu1 %v2008_v9, %s5571_s2  ;;  %v2312_v9 = vld [vmem:[#allocation3 + $0xb7] sm:$0xff] }
 0x31d   :  { %2625 = vst.msk [vmem:[#allocation4 + $0xc8] sm:$0xff] %vm2114_vm13, %v2559_v4  ;;  %2075 = vrot.lane.b32.xlu0 %v2007_v6, %s5571_s2  ;;  %v3077_v60 = vpack.c.bf16 %v3014_v10, %v3011_v7  ;;  %v2813_v6 = vld [vmem:[#allocation3 + $0xc2] sm:$0xff] }
 0x31e   :  { %v7396_v11 = vpop.f32.mrf.mxu0 }
 0x31f   :  { %3352 = vmatprep.mubr.bf16.mxu1 %v3077_v60  ;;  %v2058_v14 = vpop.permute.xlu1 %2057  ;;  %v3013_v16 = vld [vmem:[#allocation4 + $0xa8] sm:$0xff] }
 0x320   :  { %v2056_v12 = vpop.permute.xlu0 %2055  ;;  %v3010_v13 = vld [vmem:[#allocation4 + $0x90] sm:$0xff]  ;;  %2124 = vst.msk [vmem:[#allocation4 + $0xd8] sm:$0xff] %vm2114_vm13, %v2058_v14  ;;  %v5348_v17 = vpop.f32.mrf.mxu0  ;;  %2730 = vrot.lane.b32.xlu1 %v2661_v15, %s5572_s20  ;;  %v2515_v60 = vld [vmem:[#allocation3 + $0xc9] sm:$0xff] }
 0x321   :  { %2123 = vst.msk [vmem:[#allocation4 + $0xc0] sm:$0xff] %vm2114_vm13, %v2056_v12  ;;  %2728 = vrot.lane.b32.xlu0 %v2511_v24, %s5572_s20  ;;  %v3076_v18 = vpack.c.bf16 %v3013_v16, %v3010_v13  ;;  %v2011_v13 = vld [vmem:[#allocation3 + $0xb6] sm:$0xff]  ;;  %v2012_v17 = vld [vmem:[#allocation3 + $0xbe] sm:$0xff] }
 0x322   :  { %v7402_v19 = vpop.f32.mrf.mxu0 }
 0x323   :  { %3353 = vmatmul.mubr.bf16.gmra.mxu1 %v3076_v18  ;;  %v2711_v22 = vpop.permute.xlu1 %2710 }
 0x324   :  { %v2709_v21 = vpop.permute.xlu0 %2708  ;;  %2776 = vst.msk [vmem:[#allocation4 + $0xe0] sm:$0xff] %vm2265_vm14, %v2711_v22  ;;  %v5349_v25 = vpop.f32.mrf.mxu0  ;;  %2228 = vrot.lane.b32.xlu1 %v2159_v23, %s5572_s20 }
 0x325   :  { %2775 = vst.msk [vmem:[#allocation4 + $0xc8] sm:$0xff] %vm2265_vm14, %v2709_v21  ;;  %2226 = vrot.lane.b32.xlu0 %v2308_v57, %s5572_s20 }
 0x326   :  { %v7408_v27 = vpop.f32.mrf.mxu0 }
 0x327   :  { %v2209_v62 = vpop.permute.xlu1 %2208 }
 0x328   :  { %v2207_v28 = vpop.permute.xlu0 %2206  ;;  %2275 = vst.msk [vmem:[#allocation4 + $0xd8] sm:$0xff] %vm2265_vm14, %v2209_v62  ;;  %v5352_v30 = vpop.f32.mrf.mxu0  ;;  %2880 = vrot.lane.b32.xlu1 %v2811_v29, %s5573_s26  ;;  %v2665_v62 = vld [vmem:[#allocation3 + $0xd1] sm:$0xff] }
 0x329   :  { %2274 = vst.msk [vmem:[#allocation4 + $0xc0] sm:$0xff] %vm2265_vm14, %v2207_v28  ;;  %2878 = vrot.lane.b32.xlu0 %v2810_v61, %s5573_s26 }
 0x32a   :  { %v7414_v31 = vpop.f32.mrf.mxu0 }
 0x32b   :  { %v2861_v33 = vpop.permute.xlu1 %2860 }
 0x32c   :  { %v2859_v32 = vpop.permute.xlu0 %2858  ;;  %2926 = vst.msk [vmem:[#allocation4 + $0xe0] sm:$0xff] %vm2416_vm15, %v2861_v33  ;;  %v5353_v49 = vpop.f32.mrf.mxu0  ;;  %2379 = vrot.lane.b32.xlu1 %v2310_v34, %s5573_s26 }
 0x32d   :  { %2925 = vst.msk [vmem:[#allocation4 + $0xc8] sm:$0xff] %vm2416_vm15, %v2859_v32  ;;  %2377 = vrot.lane.b32.xlu0 %v2159_v23, %s5573_s26  ;;  %v2163_v49 = vld [vmem:[#allocation3 + $0xbf] sm:$0xff] }
 0x32f   :  { %v2360_v20 = vpop.permute.xlu1 %2359  ;;  %v7423_v37 = vpop.f32.mrf.mxu0 }
 0x330   :  { %v2358_v35 = vpop.permute.xlu0 %2357  ;;  %2426 = vst.msk [vmem:[#allocation4 + $0xd8] sm:$0xff] %vm2416_vm15, %v2360_v20  ;;  %2584 = vrot.lane.b32.xlu1 %v2513_v36, %s5571_s2  ;;  %v2814_v20 = vld [vmem:[#allocation3 + $0xca] sm:$0xff] }
 0x331   :  { %2425 = vst.msk [vmem:[#allocation4 + $0xc0] sm:$0xff] %vm2416_vm15, %v2358_v35  ;;  %2582 = vrot.lane.b32.xlu0 %v2661_v15, %s5571_s2  ;;  %v5356_v26 = vpop.f32.mrf.mxu0 }
 0x332   :  { %v2815_v26 = vld [vmem:[#allocation3 + $0xd2] sm:$0xff] }
 0x333   :  { %v2565_v44 = vpop.permute.xlu1 %2564  ;;  %v3020_v39 = vld [vmem:[#allocation4 + $0xe0] sm:$0xff]  ;;  %v7429_v43 = vpop.f32.mrf.mxu0 }
 0x334   :  { %v2563_v38 = vpop.permute.xlu0 %2562  ;;  %v3017_v41 = vld [vmem:[#allocation4 + $0xc8] sm:$0xff]  ;;  %2628 = vst.msk [vmem:[#allocation4 + $0x110] sm:$0xff] %vm2114_vm13, %v2565_v44  ;;  %2081 = vrot.lane.b32.xlu1 %v2010_v45, %s5571_s2 }
 0x335   :  { %2627 = vst.msk [vmem:[#allocation4 + $0xf8] sm:$0xff] %vm2114_vm13, %v2563_v38  ;;  %2079 = vrot.lane.b32.xlu0 %v2009_v40, %s5571_s2  ;;  %v3080_v47 = vpack.c.bf16 %v3020_v39, %v3017_v41  ;;  %v5357_v48 = vpop.f32.mrf.mxu0  ;;  %v2314_v41 = vld [vmem:[#allocation3 + $0xc7] sm:$0xff] }
 0x336   :  { %v2013_v39 = vld [vmem:[#allocation3 + $0xc6] sm:$0xff] }
 0x337   :  { %3360 = vmatprep.mubr.bf16.mxu1 %v3080_v47  ;;  %v2062_v52 = vpop.permute.xlu1 %2061  ;;  %v3019_v55 = vld [vmem:[#allocation4 + $0xd8] sm:$0xff] }
 0x338   :  { %v2060_v50 = vpop.permute.xlu0 %2059  ;;  %v3016_v51 = vld [vmem:[#allocation4 + $0xc0] sm:$0xff]  ;;  %2126 = vst.msk [vmem:[#allocation4 + $0x108] sm:$0xff] %vm2114_vm13, %v2062_v52  ;;  %2734 = vrot.lane.b32.xlu1 %v2663_v54, %s5572_s20  ;;  %v2666_v47 = vld [vmem:[#allocation3 + $0xd9] sm:$0xff] }
 0x339   :  { %2125 = vst.msk [vmem:[#allocation4 + $0xf0] sm:$0xff] %vm2114_vm13, %v2060_v50  ;;  %2732 = vrot.lane.b32.xlu0 %v2513_v36, %s5572_s20  ;;  %v3079_v57 = vpack.c.bf16 %v3019_v55, %v3016_v51  ;;  %v2816_v55 = vld [vmem:[#allocation3 + $0xda] sm:$0xff] }
 0x33b   :  { %3361 = vmatmul.mubr.bf16.gmra.mxu1 %v3079_v57  ;;  %v2715_v0 = vpop.permute.xlu1 %2714 }
 0x33c   :  { %v2713_v58 = vpop.permute.xlu0 %2712  ;;  %2778 = vst.msk [vmem:[#allocation4 + $0x110] sm:$0xff] %vm2265_vm14, %v2715_v0  ;;  %2232 = vrot.lane.b32.xlu1 %v2161_v2, %s5572_s20 }
 0x33d   :  { %2777 = vst.msk [vmem:[#allocation4 + $0xf8] sm:$0xff] %vm2265_vm14, %v2713_v58  ;;  %2230 = vrot.lane.b32.xlu0 %v2310_v34, %s5572_s20 }
 0x33f   :  { %v2213_v4 = vpop.permute.xlu1 %2212 }
 0x340   :  { %v2211_v24 = vpop.permute.xlu0 %2210  ;;  %2277 = vst.msk [vmem:[#allocation4 + $0x108] sm:$0xff] %vm2265_vm14, %v2213_v4  ;;  %2884 = vrot.lane.b32.xlu1 %v2813_v6, %s5573_s26 }
 0x341   :  { %2276 = vst.msk [vmem:[#allocation4 + $0xf0] sm:$0xff] %vm2265_vm14, %v2211_v24  ;;  %2882 = vrot.lane.b32.xlu0 %v2812_v1, %s5573_s26  ;;  %v2315_v24 = vld [vmem:[#allocation3 + $0xcf] sm:$0xff] }
 0x343   :  { %v2865_v8 = vpop.permute.xlu1 %2864 }
 0x344   :  { %v2863_v7 = vpop.permute.xlu0 %2862  ;;  %2928 = vst.msk [vmem:[#allocation4 + $0x110] sm:$0xff] %vm2416_vm15, %v2865_v8  ;;  %2383 = vrot.lane.b32.xlu1 %v2312_v9, %s5573_s26 }
 0x345   :  { %2927 = vst.msk [vmem:[#allocation4 + $0xf8] sm:$0xff] %vm2416_vm15, %v2863_v7  ;;  %2381 = vrot.lane.b32.xlu0 %v2161_v2, %s5573_s26 }
 0x347   :  { %v2364_v59 = vpop.permute.xlu1 %2363 }
 0x348   :  { %v2362_v10 = vpop.permute.xlu0 %2361  ;;  %2428 = vst.msk [vmem:[#allocation4 + $0x108] sm:$0xff] %vm2416_vm15, %v2364_v59  ;;  %2588 = vrot.lane.b32.xlu1 %v2515_v60, %s5571_s2 }
 0x349   :  { %2427 = vst.msk [vmem:[#allocation4 + $0xf0] sm:$0xff] %vm2416_vm15, %v2362_v10  ;;  %2586 = vrot.lane.b32.xlu0 %v2663_v54, %s5571_s2 }
 0x34b   :  { %v2569_v15 = vpop.permute.xlu1 %2568  ;;  %v7453_v16 = vpop.f32.mrf.mxu0  ;;  %v3026_v18 = vld [vmem:[#allocation4 + $0x110] sm:$0xff] }
 0x34c   :  { %v2567_v12 = vpop.permute.xlu0 %2566  ;;  %v3023_v14 = vld [vmem:[#allocation4 + $0xf8] sm:$0xff]  ;;  %2630 = vst.msk [vmem:[#allocation4 + $0x140] sm:$0xff] %vm2114_vm13, %v2569_v15  ;;  %2085 = vrot.lane.b32.xlu1 %v2012_v17, %s5571_s2 }
 0x34d   :  { %2629 = vst.msk [vmem:[#allocation4 + $0x128] sm:$0xff] %vm2114_vm13, %v2567_v12  ;;  %2083 = vrot.lane.b32.xlu0 %v2011_v13, %s5571_s2  ;;  %v3083_v21 = vpack.c.bf16 %v3026_v18, %v3023_v14  ;;  %v5360_v22 = vpop.f32.mrf.mxu0 }
 0x34f   :  { %3368 = vmatprep.mubr.bf16.mxu1 %v3083_v21  ;;  %v2066_v28 = vpop.permute.xlu1 %2065  ;;  %v7459_v61 = vpop.f32.mrf.mxu0  ;;  %v3025_v29 = vld [vmem:[#allocation4 + $0x108] sm:$0xff]  ;;  %v2966_v21 = vld [vmem:[#allocation3 + $0xdb] sm:$0xff] }
 0x350   :  { %v2064_v23 = vpop.permute.xlu0 %2063  ;;  %v3022_v25 = vld [vmem:[#allocation4 + $0xf0] sm:$0xff]  ;;  %2128 = vst.msk [vmem:[#allocation4 + $0x138] sm:$0xff] %vm2114_vm13, %v2066_v28  ;;  %2738 = vrot.lane.b32.xlu1 %v2665_v62, %s5572_s20 }
 0x351   :  { %2127 = vst.msk [vmem:[#allocation4 + $0x120] sm:$0xff] %vm2114_vm13, %v2064_v23  ;;  %2736 = vrot.lane.b32.xlu0 %v2515_v60, %s5572_s20  ;;  %v3082_v30 = vpack.c.bf16 %v3025_v29, %v3022_v25  ;;  %v5361_v32 = vpop.f32.mrf.mxu0 }
 0x352   :  { %2991 = vst.msk [vmem:[#allocation4 + $0x250] sm:$0xff] %vm210_vm12, %v2966_v21 }
 0x353   :  { %3369 = vmatmul.mubr.bf16.gmra.mxu1 %v3082_v30  ;;  %v2719_v34 = vpop.permute.xlu1 %2718 }
 0x354   :  { %v2717_v33 = vpop.permute.xlu0 %2716  ;;  %2780 = vst.msk [vmem:[#allocation4 + $0x140] sm:$0xff] %vm2265_vm14, %v2719_v34  ;;  %2236 = vrot.lane.b32.xlu1 %v2163_v49, %s5572_s20 }
 0x355   :  { %2779 = vst.msk [vmem:[#allocation4 + $0x128] sm:$0xff] %vm2265_vm14, %v2717_v33  ;;  %2234 = vrot.lane.b32.xlu0 %v2312_v9, %s5572_s20 }
 0x357   :  { %v2217_v36 = vpop.permute.xlu1 %2216 }
 0x358   :  { %v2215_v35 = vpop.permute.xlu0 %2214  ;;  %2279 = vst.msk [vmem:[#allocation4 + $0x138] sm:$0xff] %vm2265_vm14, %v2217_v36  ;;  %2888 = vrot.lane.b32.xlu1 %v2815_v26, %s5573_s26 }
 0x359   :  { %2278 = vst.msk [vmem:[#allocation4 + $0x120] sm:$0xff] %vm2265_vm14, %v2215_v35  ;;  %2886 = vrot.lane.b32.xlu0 %v2814_v20, %s5573_s26  ;;  %v3066_v34 = vld [vmem:[#allocation4 + $0x250] sm:$0xff] }
 0x35a   :  { %v3105_v20 = vpack.c.bf16 %v3066_v34, %v3066_v34 }
 0x35b   :  { %v2869_v40 = vpop.permute.xlu1 %2868 }
 0x35c   :  { %v2867_v38 = vpop.permute.xlu0 %2866  ;;  %2930 = vst.msk [vmem:[#allocation4 + $0x140] sm:$0xff] %vm2416_vm15, %v2869_v40  ;;  %2387 = vrot.lane.b32.xlu1 %v2314_v41, %s5573_s26  ;;  %5383 = vmatmul.mubr.msk.bf16.gmra.mxu0 %vm210_vm12, %v3105_v20 }
 0x35d   :  { %2929 = vst.msk [vmem:[#allocation4 + $0x128] sm:$0xff] %vm2416_vm15, %v2867_v38  ;;  %2385 = vrot.lane.b32.xlu0 %v2163_v49, %s5573_s26 }
 0x35f   :  { %v2368_v45 = vpop.permute.xlu1 %2367 }
 0x360   :  { %v2366_v44 = vpop.permute.xlu0 %2365  ;;  %2430 = vst.msk [vmem:[#allocation4 + $0x138] sm:$0xff] %vm2416_vm15, %v2368_v45  ;;  %2087 = vrot.lane.b32.xlu1 %v2013_v39, %s5571_s2 }
 0x361   :  { %2429 = vst.msk [vmem:[#allocation4 + $0x120] sm:$0xff] %vm2416_vm15, %v2366_v44  ;;  %2590 = vrot.lane.b32.xlu0 %v2665_v62, %s5571_s2 }
 0x363   :  { %v2573_v51 = vpop.permute.xlu1 %2572  ;;  %v3032_v52 = vld [vmem:[#allocation4 + $0x140] sm:$0xff] }
 0x364   :  { %v2571_v48 = vpop.permute.xlu0 %2570  ;;  %v3029_v50 = vld [vmem:[#allocation4 + $0x128] sm:$0xff]  ;;  %2632 = vst.msk [vmem:[#allocation4 + $0x170] sm:$0xff] %vm2114_vm13, %v2573_v51  ;;  %2238 = vrot.lane.b32.xlu1 %v2314_v41, %s5572_s20 }
 0x365   :  { %2631 = vst.msk [vmem:[#allocation4 + $0x158] sm:$0xff] %vm2114_vm13, %v2571_v48  ;;  %2740 = vrot.lane.b32.xlu0 %v2666_v47, %s5572_s20  ;;  %v3086_v54 = vpack.c.bf16 %v3032_v52, %v3029_v50  ;;  %v7519_v48 = vld [vmem:[%s7787_s5] ss:$0 sm:$0xff] }
 0x367   :  { %3376 = vmatprep.mubr.bf16.mxu1 %v3086_v54  ;;  %v2070_v0 = vpop.permute.xlu1 %2069  ;;  %v7485_v2 = vpop.f32.mrf.mxu0  ;;  %v3031_v1 = vld [vmem:[#allocation4 + $0x138] sm:$0xff] }
 0x368   :  { %v2068_v57 = vpop.permute.xlu0 %2067  ;;  %v3028_v58 = vld [vmem:[#allocation4 + $0x120] sm:$0xff]  ;;  %2130 = vst.msk [vmem:[#allocation4 + $0x168] sm:$0xff] %vm2114_vm13, %v2070_v0  ;;  %2389 = vrot.lane.b32.xlu1 %v2315_v24, %s5573_s26 }
 0x369   :  { %2129 = vst.msk [vmem:[#allocation4 + $0x150] sm:$0xff] %vm2114_vm13, %v2068_v57  ;;  %2890 = vrot.lane.b32.xlu0 %v2816_v55, %s5573_s26  ;;  %v3085_v4 = vpack.c.bf16 %v3031_v1, %v3028_v58  ;;  %v5364_v6 = vpop.f32.mrf.mxu0 }
 0x36b   :  { %3377 = vmatmul.mubr.bf16.gmra.mxu1 %v3085_v4  ;;  %v2723_v8 = vpop.permute.xlu1 %2722  ;;  %v7491_v9 = vpop.f32.mrf.mxu0 }
 0x36c   :  { %v2721_v7 = vpop.permute.xlu0 %2720  ;;  %2782 = vst.msk [vmem:[#allocation4 + $0x170] sm:$0xff] %vm2265_vm14, %v2723_v8 }
 0x36d   :  { %2781 = vst.msk [vmem:[#allocation4 + $0x158] sm:$0xff] %vm2265_vm14, %v2721_v7  ;;  %v5365_v10 = vpop.f32.mrf.mxu0 }
 0x36f   :  { %v2221_v60 = vpop.permute.xlu1 %2220 }
 0x370   :  { %v2219_v59 = vpop.permute.xlu0 %2218  ;;  %2281 = vst.msk [vmem:[#allocation4 + $0x168] sm:$0xff] %vm2265_vm14, %v2221_v60 }
 0x371   :  { %2280 = vst.msk [vmem:[#allocation4 + $0x150] sm:$0xff] %vm2265_vm14, %v2219_v59 }
 0x373   :  { %v2873_v13 = vpop.permute.xlu1 %2872 }
 0x374   :  { %v2871_v12 = vpop.permute.xlu0 %2870  ;;  %2932 = vst.msk [vmem:[#allocation4 + $0x170] sm:$0xff] %vm2416_vm15, %v2873_v13 }
 0x375   :  { %2931 = vst.msk [vmem:[#allocation4 + $0x158] sm:$0xff] %vm2416_vm15, %v2871_v12 }
 0x377   :  { %v2372_v15 = vpop.permute.xlu1 %2371 }
 0x378   :  { %v2370_v14 = vpop.permute.xlu0 %2369  ;;  %2432 = vst.msk [vmem:[#allocation4 + $0x168] sm:$0xff] %vm2416_vm15, %v2372_v15 }
 0x379   :  { %2431 = vst.msk [vmem:[#allocation4 + $0x150] sm:$0xff] %vm2416_vm15, %v2370_v14 }
 0x37b   :  { %v2577_v22 = vpop.permute.xlu1 %2576  ;;  %v3038_v23 = vld [vmem:[#allocation4 + $0x170] sm:$0xff] }
 0x37c   :  { %v2575_v17 = vpop.permute.xlu0 %2574  ;;  %v3035_v18 = vld [vmem:[#allocation4 + $0x158] sm:$0xff]  ;;  %2634 = vst.msk [vmem:[#allocation4 + $0x1a0] sm:$0xff] %vm2114_vm13, %v2577_v22 }
 0x37d   :  { %2633 = vst.msk [vmem:[#allocation4 + $0x188] sm:$0xff] %vm2114_vm13, %v2575_v17  ;;  %v3089_v25 = vpack.c.bf16 %v3038_v23, %v3035_v18 }
 0x37f   :  { %3384 = vmatprep.mubr.bf16.mxu1 %v3089_v25  ;;  %v2074_v29 = vpop.permute.xlu1 %2073  ;;  %v3037_v30 = vld [vmem:[#allocation4 + $0x168] sm:$0xff] }
 0x380   :  { %v2072_v28 = vpop.permute.xlu0 %2071  ;;  %v3034_v62 = vld [vmem:[#allocation4 + $0x150] sm:$0xff]  ;;  %2132 = vst.msk [vmem:[#allocation4 + $0x198] sm:$0xff] %vm2114_vm13, %v2074_v29 }
 0x381   :  { %2131 = vst.msk [vmem:[#allocation4 + $0x180] sm:$0xff] %vm2114_vm13, %v2072_v28  ;;  %v3088_v32 = vpack.c.bf16 %v3037_v30, %v3034_v62 }
 0x383   :  { %3385 = vmatmul.mubr.bf16.gmra.mxu1 %v3088_v32  ;;  %v2727_v49 = vpop.permute.xlu1 %2726  ;;  %v7506_v35 = vpop.f32.mrf.mxu0 }
 0x384   :  { %v2725_v33 = vpop.permute.xlu0 %2724  ;;  %2784 = vst.msk [vmem:[#allocation4 + $0x1a0] sm:$0xff] %vm2265_vm14, %v2727_v49 }
 0x385   :  { %2783 = vst.msk [vmem:[#allocation4 + $0x188] sm:$0xff] %vm2265_vm14, %v2725_v33  ;;  %v5368_v36 = vpop.f32.mrf.mxu0 }
 0x387   :  { %v2225_v38 = vpop.permute.xlu1 %2224  ;;  %v7511_v40 = vpop.f32.mrf.mxu0 }
 0x388   :  { %v2223_v26 = vpop.permute.xlu0 %2222  ;;  %2283 = vst.msk [vmem:[#allocation4 + $0x198] sm:$0xff] %vm2265_vm14, %v2225_v38 }
 0x389   :  { %2282 = vst.msk [vmem:[#allocation4 + $0x180] sm:$0xff] %vm2265_vm14, %v2223_v26  ;;  %v5369_v41 = vpop.f32.mrf.mxu0 }
 0x38b   :  { %v2877_v45 = vpop.permute.xlu1 %2876 }
 0x38c   :  { %v2875_v44 = vpop.permute.xlu0 %2874  ;;  %2934 = vst.msk [vmem:[#allocation4 + $0x1a0] sm:$0xff] %vm2416_vm15, %v2877_v45 }
 0x38d   :  { %2933 = vst.msk [vmem:[#allocation4 + $0x188] sm:$0xff] %vm2416_vm15, %v2875_v44 }
 0x38e   :  { %v5079_v39 = vpop.f32.mrf.mxu1 }
 0x38f   :  { %v2376_v51 = vpop.permute.xlu1 %2375 }
 0x390   :  { %v2374_v47 = vpop.permute.xlu0 %2373  ;;  %v5080_v50 = vpop.f32.mrf.mxu1  ;;  %2434 = vst.msk [vmem:[#allocation4 + $0x198] sm:$0xff] %vm2416_vm15, %v2376_v51 }
 0x391   :  { %2433 = vst.msk [vmem:[#allocation4 + $0x180] sm:$0xff] %vm2416_vm15, %v2374_v47  ;;  %v5081_v52 = vadd.f32 %v5080_v50, %v5079_v39 }
 0x392   :  { %v5082_v54 = vpop.f32.mrf.mxu1 }
 0x393   :  { %v3331_v55 = vadd.f32 %v5081_v52, %v7519_v48  ;;  %v2581_v1 = vpop.permute.xlu1 %2580  ;;  %v3044_v6 = vld [vmem:[#allocation4 + $0x1a0] sm:$0xff] }
 0x394   :  { %v2579_v57 = vpop.permute.xlu0 %2578  ;;  %v5083_v58 = vpop.f32.mrf.mxu1  ;;  %v3041_v0 = vld [vmem:[#allocation4 + $0x188] sm:$0xff]  ;;  %2636 = vst.msk [vmem:[#allocation4 + $0x1d0] sm:$0xff] %vm2114_vm13, %v2581_v1 }
 0x395   :  { %v3467_v24 = vadd.f32 %v7356_v56, %v3331_v55  ;;  %2635 = vst.msk [vmem:[#allocation4 + $0x1b8] sm:$0xff] %vm2114_vm13, %v2579_v57  ;;  %v5084_v4 = vadd.f32 %v5083_v58, %v5082_v54  ;;  %v3092_v7 = vpack.c.bf16 %v3044_v6, %v3041_v0 }
 0x397   :  { %v3568_v8 = vmax.f32 %v3467_v24, 0.0  ;;  %v3334_v10 = vadd.f32 %v5084_v4, %v7519_v48  ;;  %3392 = vmatprep.mubr.bf16.mxu1 %v3092_v7  ;;  %v2078_v56 = vpop.permute.xlu1 %2077  ;;  %v3043_v13 = vld [vmem:[#allocation4 + $0x198] sm:$0xff] }
 0x398   :  { %v2076_v59 = vpop.permute.xlu0 %2075  ;;  %v3040_v60 = vld [vmem:[#allocation4 + $0x180] sm:$0xff]  ;;  %2134 = vst.msk [vmem:[#allocation4 + $0x1c8] sm:$0xff] %vm2114_vm13, %v2078_v56 }
 0x399   :  { %3593 = vst.msk [vmem:[#allocation5] sm:$0xff] %vm215_vm0, %v3568_v8  ;;  %v3470_v12 = vadd.f32 %v7362_v42, %v3334_v10  ;;  %v3091_v14 = vpack.c.bf16 %v3043_v13, %v3040_v60 }
 0x39a   :  { %2133 = vst.msk [vmem:[#allocation4 + $0x1b0] sm:$0xff] %vm2114_vm13, %v2076_v59 }
 0x39b   :  { %v3569_v15 = vmax.f32 %v3470_v12, 0.0  ;;  %3393 = vmatmul.mubr.bf16.gmra.mxu1 %v3091_v14  ;;  %v2731_v18 = vpop.permute.xlu1 %2730 }
 0x39c   :  { %v2729_v17 = vpop.permute.xlu0 %2728  ;;  %2786 = vst.msk [vmem:[#allocation4 + $0x1d0] sm:$0xff] %vm2265_vm14, %v2731_v18 }
 0x39d   :  { %3594 = vst.msk [vmem:[#allocation5 + $0x8] sm:$0xff] %vm215_vm0, %v3569_v15 }
 0x39e   :  { %2785 = vst.msk [vmem:[#allocation4 + $0x1b8] sm:$0xff] %vm2265_vm14, %v2729_v17 }
 0x39f   :  { %v2229_v42 = vpop.permute.xlu1 %2228 }
 0x3a0   :  { %v2227_v21 = vpop.permute.xlu0 %2226  ;;  %v7536_v22 = vpop.f32.mrf.mxu0  ;;  %2285 = vst.msk [vmem:[#allocation4 + $0x1c8] sm:$0xff] %vm2265_vm14, %v2229_v42 }
 0x3a1   :  { %2284 = vst.msk [vmem:[#allocation4 + $0x1b0] sm:$0xff] %vm2265_vm14, %v2227_v21 }
 0x3a2   :  { %v5372_v23 = vpop.f32.mrf.mxu0 }
 0x3a3   :  { %v2881_v28 = vpop.permute.xlu1 %2880 }
 0x3a4   :  { %v2879_v25 = vpop.permute.xlu0 %2878  ;;  %v7540_v62 = vpop.f32.mrf.mxu0  ;;  %2936 = vst.msk [vmem:[#allocation4 + $0x1d0] sm:$0xff] %vm2416_vm15, %v2881_v28 }
 0x3a5   :  { %2935 = vst.msk [vmem:[#allocation4 + $0x1b8] sm:$0xff] %vm2416_vm15, %v2879_v25 }
 0x3a6   :  { %v5373_v29 = vpop.f32.mrf.mxu0 }
 0x3a7   :  { %v2380_v32 = vpop.permute.xlu1 %2379 }
 0x3a8   :  { %v2378_v30 = vpop.permute.xlu0 %2377  ;;  %2436 = vst.msk [vmem:[#allocation4 + $0x1c8] sm:$0xff] %vm2416_vm15, %v2380_v32 }
 0x3a9   :  { %2435 = vst.msk [vmem:[#allocation4 + $0x1b0] sm:$0xff] %vm2416_vm15, %v2378_v30 }
 0x3ab   :  { %v2585_v49 = vpop.permute.xlu1 %2584  ;;  %v3050_v20 = vld [vmem:[#allocation4 + $0x1d0] sm:$0xff] }
 0x3ac   :  { %v2583_v33 = vpop.permute.xlu0 %2582  ;;  %v3047_v34 = vld [vmem:[#allocation4 + $0x1b8] sm:$0xff]  ;;  %2638 = vst.msk [vmem:[#allocation4 + $0x200] sm:$0xff] %vm2114_vm13, %v2585_v49 }
 0x3ad   :  { %2637 = vst.msk [vmem:[#allocation4 + $0x1e8] sm:$0xff] %vm2114_vm13, %v2583_v33  ;;  %v3095_v36 = vpack.c.bf16 %v3050_v20, %v3047_v34  ;;  %v3619_v33 = vld [vmem:[#allocation5 + $0x8] sm:$0xff] }
 0x3af   :  { %3400 = vmatprep.mubr.bf16.mxu1 %v3095_v36  ;;  %v2082_v41 = vpop.permute.xlu1 %2081  ;;  %v3049_v44 = vld [vmem:[#allocation4 + $0x1c8] sm:$0xff] }
 0x3b0   :  { %v2080_v26 = vpop.permute.xlu0 %2079  ;;  %v3046_v38 = vld [vmem:[#allocation4 + $0x1b0] sm:$0xff]  ;;  %2136 = vst.msk [vmem:[#allocation4 + $0x1f8] sm:$0xff] %vm2114_vm13, %v2082_v41 }
 0x3b1   :  { %2135 = vst.msk [vmem:[#allocation4 + $0x1e0] sm:$0xff] %vm2114_vm13, %v2080_v26  ;;  %v3094_v45 = vpack.c.bf16 %v3049_v44, %v3046_v38 }
 0x3b3   :  { %v5085_v39 = vpop.f32.mrf.mxu1  ;;  %3401 = vmatmul.mubr.bf16.gmra.mxu1 %v3094_v45  ;;  %v2735_v50 = vpop.permute.xlu1 %2734 }
 0x3b4   :  { %v2733_v47 = vpop.permute.xlu0 %2732  ;;  %2788 = vst.msk [vmem:[#allocation4 + $0x200] sm:$0xff] %vm2265_vm14, %v2735_v50 }
 0x3b5   :  { %2787 = vst.msk [vmem:[#allocation4 + $0x1e8] sm:$0xff] %vm2265_vm14, %v2733_v47  ;;  %v5086_v51 = vpop.f32.mrf.mxu1 }
 0x3b6   :  { %v5087_v52 = vadd.f32 %v5086_v51, %v5085_v39 }
 0x3b7   :  { %v5088_v54 = vpop.f32.mrf.mxu1  ;;  %v2233_v58 = vpop.permute.xlu1 %2232 }
 0x3b8   :  { %v3339_v55 = vadd.f32 %v5087_v52, %v7519_v48  ;;  %v2231_v57 = vpop.permute.xlu0 %2230  ;;  %2287 = vst.msk [vmem:[#allocation4 + $0x1f8] sm:$0xff] %vm2265_vm14, %v2233_v58 }
 0x3b9   :  { %2286 = vst.msk [vmem:[#allocation4 + $0x1e0] sm:$0xff] %vm2265_vm14, %v2231_v57  ;;  %v5089_v0 = vpop.f32.mrf.mxu1 }
 0x3ba   :  { %v3475_v24 = vadd.f32 %v7368_v46, %v3339_v55  ;;  %v5090_v1 = vadd.f32 %v5089_v0, %v5088_v54 }
 0x3bb   :  { %v2885_v8 = vpop.permute.xlu1 %2884 }
 0x3bc   :  { %v3570_v4 = vmax.f32 %v3475_v24, 0.0  ;;  %v3342_v6 = vadd.f32 %v5090_v1, %v7519_v48  ;;  %v2883_v7 = vpop.permute.xlu0 %2882  ;;  %v7557_v10 = vpop.f32.mrf.mxu0  ;;  %2938 = vst.msk [vmem:[#allocation4 + $0x200] sm:$0xff] %vm2416_vm15, %v2885_v8 }
 0x3bd   :  { %2937 = vst.msk [vmem:[#allocation4 + $0x1e8] sm:$0xff] %vm2416_vm15, %v2883_v7 }
 0x3be   :  { %3595 = vst.msk [vmem:[#allocation5 + $0x10] sm:$0xff] %vm215_vm0, %v3570_v4  ;;  %v3478_v59 = vadd.f32 %v7378_v53, %v3342_v6  ;;  %v5376_v60 = vpop.f32.mrf.mxu0 }
 0x3bf   :  { %v2384_v56 = vpop.permute.xlu1 %2383 }
 0x3c0   :  { %v3571_v46 = vmax.f32 %v3478_v59, 0.0  ;;  %v2382_v12 = vpop.permute.xlu0 %2381  ;;  %v7563_v13 = vpop.f32.mrf.mxu0  ;;  %2438 = vst.msk [vmem:[#allocation4 + $0x1f8] sm:$0xff] %vm2416_vm15, %v2384_v56 }
 0x3c1   :  { %2437 = vst.msk [vmem:[#allocation4 + $0x1e0] sm:$0xff] %vm2416_vm15, %v2382_v12 }
 0x3c2   :  { %3596 = vst.msk [vmem:[#allocation5 + $0x18] sm:$0xff] %vm215_vm0, %v3571_v46  ;;  %v5377_v14 = vpop.f32.mrf.mxu0 }
 0x3c3   :  { %v2589_v53 = vpop.permute.xlu1 %2588  ;;  %v3056_v21 = vld [vmem:[#allocation4 + $0x200] sm:$0xff] }
 0x3c4   :  { %v2587_v15 = vpop.permute.xlu0 %2586  ;;  %v3053_v17 = vld [vmem:[#allocation4 + $0x1e8] sm:$0xff]  ;;  %2640 = vst.msk [vmem:[#allocation4 + $0x230] sm:$0xff] %vm2114_vm13, %v2589_v53 }
 0x3c5   :  { %2639 = vst.msk [vmem:[#allocation4 + $0x218] sm:$0xff] %vm2114_vm13, %v2587_v15  ;;  %v7569_v18 = vpop.f32.mrf.mxu0  ;;  %v3098_v42 = vpack.c.bf16 %v3056_v21, %v3053_v17  ;;  %v3644_v23 = vld [vmem:[#allocation5 + $0x9] sm:$0xff] }
 0x3c6   :  { %v3669_v36 = vmax.f32 %v3619_v33, %v3644_v23  ;;  %v3620_v53 = vld [vmem:[#allocation5 + $0x10] sm:$0xff] }
 0x3c7   :  { %v5380_v28 = vpop.f32.mrf.mxu0  ;;  %3408 = vmatprep.mubr.bf16.mxu1 %v3098_v42  ;;  %v2086_v32 = vpop.permute.xlu1 %2085  ;;  %v3055_v20 = vld [vmem:[#allocation4 + $0x1f8] sm:$0xff] }
 0x3c8   :  { %v2084_v25 = vpop.permute.xlu0 %2083  ;;  %v3052_v29 = vld [vmem:[#allocation4 + $0x1e0] sm:$0xff]  ;;  %2138 = vst.msk [vmem:[#allocation4 + $0x228] sm:$0xff] %vm2114_vm13, %v2086_v32 }
 0x3c9   :  { %v3694_v30 = vld [vmem:[#allocation5 + $0x12] sm:$0xff]  ;;  %2137 = vst.msk [vmem:[#allocation4 + $0x210] sm:$0xff] %vm2114_vm13, %v2084_v25  ;;  %v7573_v49 = vpop.f32.mrf.mxu0  ;;  %v3097_v38 = vpack.c.bf16 %v3055_v20, %v3052_v29 }
 0x3ca   :  { %v3719_v34 = vld [vmem:[#allocation5 + $0x13] sm:$0xff] }
 0x3cb   :  { %v3744_v26 = vmax.f32 %v3694_v30, %v3719_v34  ;;  %v5091_v41 = vpop.f32.mrf.mxu1  ;;  %v5381_v44 = vpop.f32.mrf.mxu0  ;;  %3409 = vmatmul.mubr.bf16.gmra.mxu1 %v3097_v38 }
 0x3cc   :  { %v2737_v39 = vpop.permute.xlu0 %2736  ;;  %v2739_v47 = vpop.permute.xlu1 %2738 }
 0x3cd   :  { %v3769_v45 = vmax.f32 %v3669_v36, %v3744_v26  ;;  %2789 = vst.msk [vmem:[#allocation4 + $0x218] sm:$0xff] %vm2265_vm14, %v2737_v39  ;;  %2790 = vst.msk [vmem:[#allocation4 + $0x230] sm:$0xff] %vm2265_vm14, %v2739_v47  ;;  %v5092_v50 = vpop.f32.mrf.mxu1  ;;  %v3621_v36 = vld [vmem:[#allocation5 + $0x18] sm:$0xff] }
 0x3ce   :  { %v5093_v51 = vadd.f32 %v5092_v50, %v5091_v41 }
 0x3cf   :  { %3794 = vst.msk [vmem:[#allocation6 + $0x8] sm:$0xff] %vm215_vm0, %v3769_v45  ;;  %v5094_v52 = vpop.f32.mrf.mxu1 }
 0x3d0   :  { %v3347_v54 = vadd.f32 %v5093_v51, %v7519_v48  ;;  %v2235_v55 = vpop.permute.xlu0 %2234  ;;  %v2237_v57 = vpop.permute.xlu1 %2236 }
 0x3d1   :  { %2288 = vst.msk [vmem:[#allocation4 + $0x210] sm:$0xff] %vm2265_vm14, %v2235_v55  ;;  %2289 = vst.msk [vmem:[#allocation4 + $0x228] sm:$0xff] %vm2265_vm14, %v2237_v57  ;;  %v5095_v58 = vpop.f32.mrf.mxu1 }
 0x3d2   :  { %v3483_v0 = vadd.f32 %v7384_v63, %v3347_v54  ;;  %v5096_v24 = vadd.f32 %v5095_v58, %v5094_v52  ;;  %v3645_v63 = vld [vmem:[#allocation5 + $0x11] sm:$0xff] }
 0x3d3   :  { %v3670_v42 = vmax.f32 %v3620_v53, %v3645_v63 }
 0x3d4   :  { %v3572_v1 = vmax.f32 %v3483_v0, 0.0  ;;  %v3350_v4 = vadd.f32 %v5096_v24, %v7519_v48  ;;  %v2887_v6 = vpop.permute.xlu0 %2886  ;;  %v2889_v7 = vpop.permute.xlu1 %2888 }
 0x3d5   :  { %2939 = vst.msk [vmem:[#allocation4 + $0x218] sm:$0xff] %vm2416_vm15, %v2887_v6  ;;  %2940 = vst.msk [vmem:[#allocation4 + $0x230] sm:$0xff] %vm2416_vm15, %v2889_v7 }
 0x3d6   :  { %3597 = vst.msk [vmem:[#allocation5 + $0x20] sm:$0xff] %vm215_vm0, %v3572_v1  ;;  %v3486_v8 = vadd.f32 %v7390_v3, %v3350_v4 }
 0x3d8   :  { %v3573_v59 = vmax.f32 %v3486_v8, 0.0  ;;  %v2386_v60 = vpop.permute.xlu0 %2385  ;;  %v2388_v46 = vpop.permute.xlu1 %2387 }
 0x3d9   :  { %2439 = vst.msk [vmem:[#allocation4 + $0x210] sm:$0xff] %vm2416_vm15, %v2386_v60  ;;  %2440 = vst.msk [vmem:[#allocation4 + $0x228] sm:$0xff] %vm2416_vm15, %v2388_v46 }
 0x3da   :  { %3598 = vst.msk [vmem:[#allocation5 + $0x28] sm:$0xff] %vm215_vm0, %v3573_v59 }
 0x3dc   :  { %v2591_v12 = vpop.permute.xlu0 %2590  ;;  %v2088_v56 = vpop.permute.xlu1 %2087  ;;  %v3059_v14 = vld [vmem:[#allocation4 + $0x218] sm:$0xff]  ;;  %v3062_v15 = vld [vmem:[#allocation4 + $0x230] sm:$0xff] }
 0x3dd   :  { %v3695_v17 = vld [vmem:[#allocation5 + $0x1a] sm:$0xff]  ;;  %2641 = vst.msk [vmem:[#allocation4 + $0x248] sm:$0xff] %vm2114_vm13, %v2591_v12  ;;  %2139 = vst.msk [vmem:[#allocation4 + $0x240] sm:$0xff] %vm2114_vm13, %v2088_v56  ;;  %v3101_v3 = vpack.c.bf16 %v3062_v15, %v3059_v14 }
 0x3de   :  { %v3720_v21 = vld [vmem:[#allocation5 + $0x1b] sm:$0xff] }
 0x3df   :  { %v3745_v23 = vmax.f32 %v3695_v17, %v3720_v21  ;;  %3416 = vmatprep.mubr.bf16.mxu1 %v3101_v3  ;;  %v3646_v25 = vld [vmem:[#allocation5 + $0x19] sm:$0xff] }
 0x3e0   :  { %v2741_v28 = vpop.permute.xlu0 %2740  ;;  %v2239_v29 = vpop.permute.xlu1 %2238  ;;  %v3058_v30 = vld [vmem:[#allocation4 + $0x210] sm:$0xff]  ;;  %v3061_v32 = vld [vmem:[#allocation4 + $0x228] sm:$0xff]  ;;  %v3671_v38 = vmax.f32 %v3621_v36, %v3646_v25 }
 0x3e1   :  { %v3770_v33 = vmax.f32 %v3670_v42, %v3745_v23  ;;  %v3696_v34 = vld [vmem:[#allocation5 + $0x22] sm:$0xff]  ;;  %2791 = vst.msk [vmem:[#allocation4 + $0x248] sm:$0xff] %vm2265_vm14, %v2741_v28  ;;  %2290 = vst.msk [vmem:[#allocation4 + $0x240] sm:$0xff] %vm2265_vm14, %v2239_v29  ;;  %v3100_v20 = vpack.c.bf16 %v3061_v32, %v3058_v30 }
 0x3e2   :  { %v3721_v26 = vld [vmem:[#allocation5 + $0x23] sm:$0xff] }
 0x3e3   :  { %3795 = vst.msk [vmem:[#allocation6 + $0x10] sm:$0xff] %vm215_vm0, %v3770_v33  ;;  %v3746_v41 = vmax.f32 %v3696_v34, %v3721_v26  ;;  %v5097_v44 = vpop.f32.mrf.mxu1  ;;  %3417 = vmatmul.mubr.bf16.gmra.mxu1 %v3100_v20  ;;  %v3647_v60 = vld [vmem:[#allocation5 + $0x21] sm:$0xff] }
 0x3e4   :  { %v2891_v45 = vpop.permute.xlu0 %2890  ;;  %v2390_v39 = vpop.permute.xlu1 %2389 }
 0x3e5   :  { %2941 = vst.msk [vmem:[#allocation4 + $0x248] sm:$0xff] %vm2416_vm15, %v2891_v45  ;;  %2441 = vst.msk [vmem:[#allocation4 + $0x240] sm:$0xff] %vm2416_vm15, %v2390_v39  ;;  %v5098_v47 = vpop.f32.mrf.mxu1  ;;  %v3771_v50 = vmax.f32 %v3671_v38, %v3746_v41 }
 0x3e6   :  { %v5099_v51 = vadd.f32 %v5098_v47, %v5097_v44 }
 0x3e7   :  { %v5100_v52 = vpop.f32.mrf.mxu1  ;;  %3796 = vst.msk [vmem:[#allocation6 + $0x18] sm:$0xff] %vm215_vm0, %v3771_v50 }
 0x3e8   :  { %v3355_v54 = vadd.f32 %v5099_v51, %v7519_v48 }
 0x3e9   :  { %v5101_v55 = vpop.f32.mrf.mxu1 }
 0x3ea   :  { %v3491_v57 = vadd.f32 %v7396_v11, %v3355_v54  ;;  %v5102_v58 = vadd.f32 %v5101_v55, %v5100_v52  ;;  %v3622_v11 = vld [vmem:[#allocation5 + $0x20] sm:$0xff] }
 0x3eb   :  { %v3672_v12 = vmax.f32 %v3622_v11, %v3647_v60 }
 0x3ec   :  { %v3574_v0 = vmax.f32 %v3491_v57, 0.0  ;;  %v3358_v24 = vadd.f32 %v5102_v58, %v7519_v48  ;;  %v3065_v1 = vld [vmem:[#allocation4 + $0x248] sm:$0xff]  ;;  %v3064_v4 = vld [vmem:[#allocation4 + $0x240] sm:$0xff] }
 0x3ed   :  { %v3104_v6 = vpack.c.bf16 %v3065_v1, %v3065_v1  ;;  %v3103_v7 = vpack.c.bf16 %v3064_v4, %v3064_v4 }
 0x3ee   :  { %3599 = vst.msk [vmem:[#allocation5 + $0x30] sm:$0xff] %vm215_vm0, %v3574_v0  ;;  %v3494_v8 = vadd.f32 %v7402_v19, %v3358_v24 }
 0x3ef   :  { %3424 = vmatprep.mubr.bf16.mxu1 %v3104_v6 }
 0x3f0   :  { %v3575_v59 = vmax.f32 %v3494_v8, 0.0  ;;  %3425 = vmatmul.mubr.bf16.gmra.mxu1 %v3103_v7 }
 0x3f2   :  { %3600 = vst.msk [vmem:[#allocation5 + $0x38] sm:$0xff] %vm215_vm0, %v3575_v59 }
 0x3f5   :  { %v3697_v46 = vld [vmem:[#allocation5 + $0x2a] sm:$0xff] }
 0x3f6   :  { %v3722_v63 = vld [vmem:[#allocation5 + $0x2b] sm:$0xff] }
 0x3f7   :  { %v3747_v56 = vmax.f32 %v3697_v46, %v3722_v63  ;;  %v3624_v34 = vld [vmem:[#allocation5 + $0x30] sm:$0xff] }
 0x3f9   :  { %v3772_v14 = vmax.f32 %v3672_v12, %v3747_v56  ;;  %v3649_v32 = vld [vmem:[#allocation5 + $0x31] sm:$0xff] }
 0x3fa   :  { %v3674_v36 = vmax.f32 %v3624_v34, %v3649_v32  ;;  %v3625_v44 = vld [vmem:[#allocation5 + $0x38] sm:$0xff] }
 0x3fb   :  { %3797 = vst.msk [vmem:[#allocation6 + $0x20] sm:$0xff] %vm215_vm0, %v3772_v14  ;;  %v5103_v15 = vpop.f32.mrf.mxu1 }
 0x3fd   :  { %v5104_v17 = vpop.f32.mrf.mxu1 }
 0x3fe   :  { %v5105_v3 = vadd.f32 %v5104_v17, %v5103_v15 }
 0x3ff   :  { %v5106_v53 = vpop.f32.mrf.mxu1 }
 0x400   :  { %v3363_v19 = vadd.f32 %v5105_v3, %v7519_v48 }
 0x401   :  { %v5107_v21 = vpop.f32.mrf.mxu1 }
 0x402   :  { %v3499_v42 = vadd.f32 %v7408_v27, %v3363_v19  ;;  %v5108_v23 = vadd.f32 %v5107_v21, %v5106_v53 }
 0x404   :  { %v3576_v25 = vmax.f32 %v3499_v42, 0.0  ;;  %v3366_v28 = vadd.f32 %v5108_v23, %v7519_v48 }
 0x406   :  { %3601 = vst.msk [vmem:[#allocation5 + $0x40] sm:$0xff] %vm215_vm0, %v3576_v25  ;;  %v3502_v29 = vadd.f32 %v7414_v31, %v3366_v28 }
 0x408   :  { %v3577_v30 = vmax.f32 %v3502_v29, 0.0 }
 0x40a   :  { %3602 = vst.msk [vmem:[#allocation5 + $0x48] sm:$0xff] %vm215_vm0, %v3577_v30 }
 0x40d   :  { %v3699_v33 = vld [vmem:[#allocation5 + $0x3a] sm:$0xff] }
 0x40e   :  { %v3724_v20 = vld [vmem:[#allocation5 + $0x3b] sm:$0xff] }
 0x40f   :  { %v3749_v26 = vmax.f32 %v3699_v33, %v3724_v20  ;;  %v3650_v38 = vld [vmem:[#allocation5 + $0x39] sm:$0xff] }
 0x410   :  { %v3675_v39 = vmax.f32 %v3625_v44, %v3650_v38  ;;  %v3626_v59 = vld [vmem:[#allocation5 + $0x40] sm:$0xff] }
 0x411   :  { %v3774_v41 = vmax.f32 %v3674_v36, %v3749_v26  ;;  %v3700_v27 = vld [vmem:[#allocation5 + $0x42] sm:$0xff] }
 0x412   :  { %v3725_v45 = vld [vmem:[#allocation5 + $0x43] sm:$0xff] }
 0x413   :  { %3799 = vst.msk [vmem:[#allocation6 + $0x30] sm:$0xff] %vm215_vm0, %v3774_v41  ;;  %v3750_v47 = vmax.f32 %v3700_v27, %v3725_v45  ;;  %v5109_v50 = vpop.f32.mrf.mxu1  ;;  %v3651_v7 = vld [vmem:[#allocation5 + $0x41] sm:$0xff] }
 0x414   :  { %v3676_v46 = vmax.f32 %v3626_v59, %v3651_v7  ;;  %v3627_v56 = vld [vmem:[#allocation5 + $0x48] sm:$0xff] }
 0x415   :  { %v3775_v31 = vmax.f32 %v3675_v39, %v3750_v47  ;;  %v5110_v51 = vpop.f32.mrf.mxu1 }
 0x416   :  { %v5111_v52 = vadd.f32 %v5110_v51, %v5109_v50 }
 0x417   :  { %3800 = vst.msk [vmem:[#allocation6 + $0x38] sm:$0xff] %vm215_vm0, %v3775_v31  ;;  %v5112_v54 = vpop.f32.mrf.mxu1 }
 0x418   :  { %v3371_v55 = vadd.f32 %v5111_v52, %v7519_v48 }
 0x419   :  { %v5113_v57 = vpop.f32.mrf.mxu1 }
 0x41a   :  { %v3507_v58 = vadd.f32 %v7423_v37, %v3371_v55  ;;  %v5114_v0 = vadd.f32 %v5113_v57, %v5112_v54 }
 0x41c   :  { %v3578_v24 = vmax.f32 %v3507_v58, 0.0  ;;  %v3374_v1 = vadd.f32 %v5114_v0, %v7519_v48  ;;  %v7627_v26 = vpop.f32.mrf.mxu0 }
 0x41e   :  { %3603 = vst.msk [vmem:[#allocation5 + $0x50] sm:$0xff] %vm215_vm0, %v3578_v24  ;;  %v3510_v4 = vadd.f32 %v7429_v43, %v3374_v1 }
 0x420   :  { %v3579_v6 = vmax.f32 %v3510_v4, 0.0 }
 0x422   :  { %3604 = vst.msk [vmem:[#allocation5 + $0x58] sm:$0xff] %vm215_vm0, %v3579_v6 }
 0x425   :  { %v3701_v8 = vld [vmem:[#allocation5 + $0x4a] sm:$0xff] }
 0x426   :  { %v3726_v60 = vld [vmem:[#allocation5 + $0x4b] sm:$0xff] }
 0x427   :  { %v3751_v11 = vmax.f32 %v3701_v8, %v3726_v60  ;;  %v3652_v63 = vld [vmem:[#allocation5 + $0x49] sm:$0xff] }
 0x428   :  { %v3677_v15 = vmax.f32 %v3627_v56, %v3652_v63 }
 0x429   :  { %v3702_v12 = vld [vmem:[#allocation5 + $0x52] sm:$0xff]  ;;  %v3776_v37 = vmax.f32 %v3676_v46, %v3751_v11 }
 0x42a   :  { %v3727_v14 = vld [vmem:[#allocation5 + $0x53] sm:$0xff] }
 0x42b   :  { %v3752_v17 = vmax.f32 %v3702_v12, %v3727_v14  ;;  %v5115_v3 = vpop.f32.mrf.mxu1  ;;  %3801 = vst.msk [vmem:[#allocation6 + $0x40] sm:$0xff] %vm215_vm0, %v3776_v37 }
 0x42d   :  { %v3777_v43 = vmax.f32 %v3677_v15, %v3752_v17  ;;  %v5116_v53 = vpop.f32.mrf.mxu1 }
 0x42e   :  { %v5117_v19 = vadd.f32 %v5116_v53, %v5115_v3  ;;  %v5574_v3 = vmov 1983009808   ;;  %v3828_v53 = vlaneseq }
 0x42f   :  { %3802 = vst.msk [vmem:[#allocation6 + $0x48] sm:$0xff] %vm215_vm0, %v3777_v43  ;;  %v5118_v21 = vpop.f32.mrf.mxu1  ;;  %v3826_v43 = vunpack.c.l.s4 %v5574_v3 }
 0x430   :  { %v3379_v42 = vadd.f32 %v5117_v19, %v7519_v48 }
 0x431   :  { %v5119_v23 = vpop.f32.mrf.mxu1 }
 0x432   :  { %v3515_v25 = vadd.f32 %v7453_v16, %v3379_v42  ;;  %v5120_v28 = vadd.f32 %v5119_v23, %v5118_v21  ;;  %v5384_v16 = vpop.f32.mrf.mxu0  ;;  %v3829_v42 = vshrl.u32 %v3828_v53, 7 }
 0x434   :  { %v3580_v29 = vmax.f32 %v3515_v25, 0.0  ;;  %v3382_v30 = vadd.f32 %v5120_v28, %v7519_v48  ;;  %v3565_v39 = vpop.f32.mrf.mxu0 }
 0x436   :  { %3605 = vst.msk [vmem:[#allocation5 + $0x60] sm:$0xff] %vm215_vm0, %v3580_v29  ;;  %v3518_v32 = vadd.f32 %v7459_v61, %v3382_v30  ;;  %v5385_v50 = vpop.f32.mrf.mxu0 }
 0x438   :  { %v3581_v33 = vmax.f32 %v3518_v32, 0.0 }
 0x43a   :  { %3606 = vst.msk [vmem:[#allocation5 + $0x68] sm:$0xff] %vm215_vm0, %v3581_v33 }
 0x441   :  { %v3631_v55 = vld [vmem:[#allocation5 + $0x68] sm:$0xff] }
 0x443   :  { %v5121_v34 = vpop.f32.mrf.mxu1 }
 0x445   :  { %v5122_v20 = vpop.f32.mrf.mxu1 }
 0x446   :  { %v5123_v36 = vadd.f32 %v5122_v20, %v5121_v34 }
 0x447   :  { %v5124_v38 = vpop.f32.mrf.mxu1 }
 0x448   :  { %v3387_v41 = vadd.f32 %v5123_v36, %v7519_v48 }
 0x449   :  { %v5125_v27 = vpop.f32.mrf.mxu1 }
 0x44a   :  { %v3523_v44 = vadd.f32 %v7485_v2, %v3387_v41  ;;  %v5126_v45 = vadd.f32 %v5125_v27, %v5124_v38 }
 0x44c   :  { %v3582_v47 = vmax.f32 %v3523_v44, 0.0  ;;  %v3390_v61 = vadd.f32 %v5126_v45, %v7519_v48 }
 0x44e   :  { %3607 = vst.msk [vmem:[#allocation5 + $0x70] sm:$0xff] %vm215_vm0, %v3582_v47  ;;  %v3526_v31 = vadd.f32 %v7491_v9, %v3390_v61 }
 0x450   :  { %v3583_v51 = vmax.f32 %v3526_v31, 0.0 }
 0x452   :  { %3608 = vst.msk [vmem:[#allocation5 + $0x78] sm:$0xff] %vm215_vm0, %v3583_v51 }
 0x455   :  { %v3656_v52 = vld [vmem:[#allocation5 + $0x69] sm:$0xff] }
 0x456   :  { %v3681_v58 = vmax.f32 %v3631_v55, %v3656_v52  ;;  %v3632_v14 = vld [vmem:[#allocation5 + $0x70] sm:$0xff] }
 0x459   :  { %v3706_v54 = vld [vmem:[#allocation5 + $0x72] sm:$0xff] }
 0x45a   :  { %v3731_v57 = vld [vmem:[#allocation5 + $0x73] sm:$0xff] }
 0x45b   :  { %v3756_v0 = vmax.f32 %v3706_v54, %v3731_v57  ;;  %v5127_v2 = vpop.f32.mrf.mxu1  ;;  %v3657_v37 = vld [vmem:[#allocation5 + $0x71] sm:$0xff] }
 0x45d   :  { %v5128_v24 = vpop.f32.mrf.mxu1  ;;  %v3781_v1 = vmax.f32 %v3681_v58, %v3756_v0 }
 0x45e   :  { %v5129_v4 = vadd.f32 %v5128_v24, %v5127_v2 }
 0x45f   :  { %v5130_v6 = vpop.f32.mrf.mxu1  ;;  %3806 = vst.msk [vmem:[#allocation6 + $0x68] sm:$0xff] %vm215_vm0, %v3781_v1 }
 0x460   :  { %v3395_v7 = vadd.f32 %v5129_v4, %v7519_v48 }
 0x461   :  { %v5131_v8 = vpop.f32.mrf.mxu1 }
 0x462   :  { %v3531_v9 = vadd.f32 %v7506_v35, %v3395_v7  ;;  %v5132_v59 = vadd.f32 %v5131_v8, %v5130_v6  ;;  %v3682_v35 = vmax.f32 %v3632_v14, %v3657_v37 }
 0x464   :  { %v3584_v60 = vmax.f32 %v3531_v9, 0.0  ;;  %v3398_v46 = vadd.f32 %v5132_v59, %v7519_v48 }
 0x466   :  { %3609 = vst.msk [vmem:[#allocation5 + $0x80] sm:$0xff] %vm215_vm0, %v3584_v60  ;;  %v3534_v11 = vadd.f32 %v7511_v40, %v3398_v46  ;;  %v3819_v63 = vld [vmem:[#allocation6 + $0xb] ss:$100 sm:$0x3]  ;;  %v3827_v40 = vunpack.c.0.s8 %v3826_v43 }
 0x467   :  { %3821 = vst.msk [vmem:[#allocation7] sm:$0x3] %vm3820_vm1, %v3819_v63 }
 0x468   :  { %v3585_v12 = vmax.f32 %v3534_v11, 0.0  ;;  %v7644_v29 = vsub.s32 %v3827_v40, %v3829_v42 }
 0x46a   :  { %3610 = vst.msk [vmem:[#allocation5 + $0x88] sm:$0xff] %vm215_vm0, %v3585_v12 }
 0x46d   :  { %v3707_v56 = vld [vmem:[#allocation5 + $0x7a] sm:$0xff] }
 0x46e   :  { %v3732_v15 = vld [vmem:[#allocation5 + $0x7b] sm:$0xff] }
 0x46f   :  { %v3757_v17 = vmax.f32 %v3707_v56, %v3732_v15  ;;  %v3634_v61 = vld [vmem:[#allocation5 + $0x80] sm:$0xff] }
 0x471   :  { %v3782_v19 = vmax.f32 %v3682_v35, %v3757_v17  ;;  %v3659_v39 = vld [vmem:[#allocation5 + $0x81] sm:$0xff] }
 0x472   :  { %v3684_v31 = vmax.f32 %v3634_v61, %v3659_v39  ;;  %v3635_v57 = vld [vmem:[#allocation5 + $0x88] sm:$0xff] }
 0x473   :  { %3807 = vst.msk [vmem:[#allocation6 + $0x70] sm:$0xff] %vm215_vm0, %v3782_v19  ;;  %v5133_v21 = vpop.f32.mrf.mxu1 }
 0x475   :  { %v5134_v23 = vpop.f32.mrf.mxu1 }
 0x476   :  { %v5135_v25 = vadd.f32 %v5134_v23, %v5133_v21 }
 0x477   :  { %v5136_v28 = vpop.f32.mrf.mxu1 }
 0x478   :  { %v3403_v30 = vadd.f32 %v5135_v25, %v7519_v48 }
 0x479   :  { %v5137_v32 = vpop.f32.mrf.mxu1 }
 0x47a   :  { %v3539_v33 = vadd.f32 %v7536_v22, %v3403_v30  ;;  %v5138_v34 = vadd.f32 %v5137_v32, %v5136_v28  ;;  %v3841_v20 = vld [vmem:[#allocation6 + $0x11] ss:$100 sm:$0x3]  ;;  %v3838_v16 = vld [vmem:[#allocation6 + $0xf] ss:$100 sm:$0x3] }
 0x47b   :  { %v3823_v36 = vld [vmem:[#allocation6 + $0xd] ss:$100 sm:$0x3]  ;;  %v3849_v38 = vrot.slane %v3841_v20, %v7644_v29  ;;  %3839 = vst.msk [vmem:[#allocation7 + $0x2] sm:$0x3] %vm3820_vm1, %v3838_v16 }
 0x47c   :  { %v3831_v41 = vrot.slane %v3823_v36, %v7644_v29  ;;  %v3586_v27 = vmax.f32 %v3539_v33, 0.0  ;;  %v3406_v44 = vadd.f32 %v5138_v34, %v7519_v48 }
 0x47d   :  { %3850 = vrot.lane.b32.xlu1 %v3849_v38, %s5572_s20 }
 0x47e   :  { %3832 = vrot.lane.b32.xlu0 %v3831_v41, %s5572_s20  ;;  %3611 = vst.msk [vmem:[#allocation5 + $0x90] sm:$0xff] %vm215_vm0, %v3586_v27  ;;  %v3542_v22 = vadd.f32 %v7540_v62, %v3406_v44 }
 0x480   :  { %v3587_v45 = vmax.f32 %v3542_v22, 0.0 }
 0x482   :  { %3612 = vst.msk [vmem:[#allocation5 + $0x98] sm:$0xff] %vm215_vm0, %v3587_v45 }
 0x485   :  { %v3709_v47 = vld [vmem:[#allocation5 + $0x8a] sm:$0xff] }
 0x486   :  { %v3734_v50 = vld [vmem:[#allocation5 + $0x8b] sm:$0xff] }
 0x487   :  { %v3759_v51 = vmax.f32 %v3709_v47, %v3734_v50  ;;  %v3660_v52 = vld [vmem:[#allocation5 + $0x89] sm:$0xff] }
 0x488   :  { %v3685_v0 = vmax.f32 %v3635_v57, %v3660_v52  ;;  %v3636_v3 = vld [vmem:[#allocation5 + $0x90] sm:$0xff] }
 0x489   :  { %v3784_v54 = vmax.f32 %v3684_v31, %v3759_v51  ;;  %v3710_v55 = vld [vmem:[#allocation5 + $0x92] sm:$0xff] }
 0x48a   :  { %v3735_v58 = vld [vmem:[#allocation5 + $0x93] sm:$0xff] }
 0x48b   :  { %3809 = vst.msk [vmem:[#allocation6 + $0x80] sm:$0xff] %vm215_vm0, %v3784_v54  ;;  %v3760_v2 = vmax.f32 %v3710_v55, %v3735_v58  ;;  %v5139_v24 = vpop.f32.mrf.mxu1  ;;  %v3661_v35 = vld [vmem:[#allocation5 + $0x91] sm:$0xff] }
 0x48c   :  { %v3686_v53 = vmax.f32 %v3636_v3, %v3661_v35  ;;  %v3637_v23 = vld [vmem:[#allocation5 + $0x98] sm:$0xff] }
 0x48d   :  { %v3785_v62 = vmax.f32 %v3685_v0, %v3760_v2  ;;  %v5140_v1 = vpop.f32.mrf.mxu1  ;;  %v5457_v54 = vld [vmem:[%s7787_s5] ss:$0 sm:$0xff] }
 0x48e   :  { %v5141_v4 = vadd.f32 %v5140_v1, %v5139_v24 }
 0x48f   :  { %3810 = vst.msk [vmem:[#allocation6 + $0x88] sm:$0xff] %vm215_vm0, %v3785_v62  ;;  %v5142_v6 = vpop.f32.mrf.mxu1 }
 0x490   :  { %v3411_v7 = vadd.f32 %v5141_v4, %v7519_v48 }
 0x491   :  { %v5143_v8 = vpop.f32.mrf.mxu1 }
 0x492   :  { %v3858_v9 = vld [vmem:[#allocation6 + $0x21] ss:$100 sm:$0x3]  ;;  %v3855_v59 = vld [vmem:[#allocation6 + $0x1f] ss:$100 sm:$0x3]  ;;  %v3547_v60 = vadd.f32 %v7557_v10, %v3411_v7  ;;  %v5144_v46 = vadd.f32 %v5143_v8, %v5142_v6 }
 0x493   :  { %v3866_v11 = vrot.slane %v3858_v9, %v7644_v29  ;;  %3856 = vst.msk [vmem:[#allocation7 + $0x4] sm:$0x3] %vm3820_vm1, %v3855_v59  ;;  %v3872_v63 = vld [vmem:[#allocation6 + $0x23] ss:$100 sm:$0x3] }
 0x494   :  { %3873 = vst.msk [vmem:[#allocation7 + $0x6] sm:$0x3] %vm3820_vm1, %v3872_v63  ;;  %v3588_v12 = vmax.f32 %v3547_v60, 0.0  ;;  %v3414_v37 = vadd.f32 %v5144_v46, %v7519_v48 }
 0x495   :  { %3867 = vrot.lane.b32.xlu0 %v3866_v11, %s5572_s20 }
 0x496   :  { %v3875_v56 = vld [vmem:[#allocation6 + $0x25] ss:$100 sm:$0x3]  ;;  %3613 = vst.msk [vmem:[#allocation5 + $0xa0] sm:$0xff] %vm215_vm0, %v3588_v12  ;;  %v3550_v14 = vadd.f32 %v7563_v13, %v3414_v37 }
 0x497   :  { %v3883_v10 = vrot.slane %v3875_v56, %v7644_v29 }
 0x498   :  { %v3589_v15 = vmax.f32 %v3550_v14, 0.0 }
 0x499   :  { %3884 = vrot.lane.b32.xlu1 %v3883_v10, %s5572_s20 }
 0x49a   :  { %3614 = vst.msk [vmem:[#allocation5 + $0xa8] sm:$0xff] %vm215_vm0, %v3589_v15 }
 0x49d   :  { %v3711_v17 = vld [vmem:[#allocation5 + $0x9a] sm:$0xff] }
 0x49e   :  { %v3736_v43 = vld [vmem:[#allocation5 + $0x9b] sm:$0xff] }
 0x49f   :  { %v3761_v19 = vmax.f32 %v3711_v17, %v3736_v43  ;;  %v3662_v21 = vld [vmem:[#allocation5 + $0x99] sm:$0xff] }
 0x4a0   :  { %v3687_v13 = vmax.f32 %v3637_v23, %v3662_v21 }
 0x4a1   :  { %v3712_v40 = vld [vmem:[#allocation5 + $0xa2] sm:$0xff]  ;;  %v3786_v42 = vmax.f32 %v3686_v53, %v3761_v19 }
 0x4a2   :  { %v3737_v25 = vld [vmem:[#allocation5 + $0xa3] sm:$0xff] }
 0x4a3   :  { %v5145_v28 = vpop.f32.mrf.mxu1  ;;  %v3762_v30 = vmax.f32 %v3712_v40, %v3737_v25  ;;  %3811 = vst.msk [vmem:[#allocation6 + $0x90] sm:$0xff] %vm215_vm0, %v3786_v42  ;;  %v3639_v62 = vld [vmem:[#allocation5 + $0xa8] sm:$0xff] }
 0x4a5   :  { %v5146_v32 = vpop.f32.mrf.mxu1  ;;  %v3787_v33 = vmax.f32 %v3687_v13, %v3762_v30 }
 0x4a6   :  { %v5147_v34 = vadd.f32 %v5146_v32, %v5145_v28 }
 0x4a7   :  { %v5148_v20 = vpop.f32.mrf.mxu1  ;;  %3812 = vst.msk [vmem:[#allocation6 + $0x98] sm:$0xff] %vm215_vm0, %v3787_v33 }
 0x4a8   :  { %v3419_v36 = vadd.f32 %v5147_v34, %v7519_v48 }
 0x4a9   :  { %v5149_v38 = vpop.f32.mrf.mxu1 }
 0x4aa   :  { %v3555_v41 = vadd.f32 %v7569_v18, %v3419_v36  ;;  %v5150_v16 = vadd.f32 %v5149_v38, %v5148_v20  ;;  %v3889_v27 = vld [vmem:[#allocation6 + $0x33] ss:$100 sm:$0x3] }
 0x4ab   :  { %3890 = vst.msk [vmem:[#allocation7 + $0x8] sm:$0x3] %vm3820_vm1, %v3889_v27 }
 0x4ac   :  { %v3590_v44 = vmax.f32 %v3555_v41, 0.0  ;;  %v3422_v22 = vadd.f32 %v5150_v16, %v7519_v48 }
 0x4ae   :  { %3615 = vst.msk [vmem:[#allocation5 + $0xb0] sm:$0xff] %vm215_vm0, %v3590_v44  ;;  %v3558_v45 = vadd.f32 %v7573_v49, %v3422_v22  ;;  %v3909_v39 = vld [vmem:[#allocation6 + $0x39] ss:$100 sm:$0x3] }
 0x4af   :  { %v3892_v47 = vld [vmem:[#allocation6 + $0x35] ss:$100 sm:$0x3]  ;;  %v3917_v31 = vrot.slane %v3909_v39, %v7644_v29  ;;  %v3906_v18 = vld [vmem:[#allocation6 + $0x37] ss:$100 sm:$0x3] }
 0x4b0   :  { %v3591_v61 = vmax.f32 %v3558_v45, 0.0  ;;  %v5151_v50 = vpop.f32.mrf.mxu1  ;;  %v3900_v51 = vrot.slane %v3892_v47, %v7644_v29  ;;  %3907 = vst.msk [vmem:[#allocation7 + $0xa] sm:$0x3] %vm3820_vm1, %v3906_v18 }
 0x4b1   :  { %3918 = vrot.lane.b32.xlu1 %v3917_v31, %s5572_s20 }
 0x4b2   :  { %3616 = vst.msk [vmem:[#allocation5 + $0xb8] sm:$0xff] %vm215_vm0, %v3591_v61  ;;  %3901 = vrot.lane.b32.xlu0 %v3900_v51, %s5572_s20  ;;  %v5152_v48 = vpop.f32.mrf.mxu1 }
 0x4b3   :  { %v5153_v52 = vadd.f32 %v5152_v48, %v5151_v50 }
 0x4b4   :  { %v5154_v49 = vpop.f32.mrf.mxu1 }
 0x4b5   :  { %v3427_v55 = vadd.f32 %v5457_v54, %v5153_v52  ;;  %v3664_v0 = vld [vmem:[#allocation5 + $0xa9] sm:$0xff] }
 0x4b6   :  { %v5155_v57 = vpop.f32.mrf.mxu1  ;;  %v3689_v4 = vmax.f32 %v3639_v62, %v3664_v0  ;;  %v3640_v8 = vld [vmem:[#allocation5 + $0xb0] sm:$0xff] }
 0x4b7   :  { %v3563_v58 = vadd.f32 %v7627_v26, %v3427_v55 }
 0x4b9   :  { %v3714_v2 = vld [vmem:[#allocation5 + $0xb2] sm:$0xff]  ;;  %v3592_v24 = vmax.f32 %v3563_v58, 0.0 }
 0x4ba   :  { %v3739_v1 = vld [vmem:[#allocation5 + $0xb3] sm:$0xff] }
 0x4bb   :  { %v3764_v6 = vmax.f32 %v3714_v2, %v3739_v1  ;;  %3617 = vst.msk [vmem:[#allocation5 + $0xc0] sm:$0xff] %vm215_vm0, %v3592_v24  ;;  %v3665_v9 = vld [vmem:[#allocation5 + $0xb1] sm:$0xff] }
 0x4bc   :  { %v3690_v46 = vmax.f32 %v3640_v8, %v3665_v9 }
 0x4bd   :  { %v3789_v7 = vmax.f32 %v3689_v4, %v3764_v6 }
 0x4bf   :  { %3814 = vst.msk [vmem:[#allocation6 + $0xa8] sm:$0xff] %vm215_vm0, %v3789_v7 }
 0x4c2   :  { %v3715_v59 = vld [vmem:[#allocation5 + $0xba] sm:$0xff] }
 0x4c3   :  { %v3740_v60 = vld [vmem:[#allocation5 + $0xbb] sm:$0xff] }
 0x4c4   :  { %v3765_v11 = vmax.f32 %v3715_v59, %v3740_v60 }
 0x4c6   :  { %v3790_v63 = vmax.f32 %v3690_v46, %v3765_v11  ;;  %v3926_v26 = vld [vmem:[#allocation6 + $0x49] ss:$100 sm:$0x3]  ;;  %v3923_v12 = vld [vmem:[#allocation6 + $0x47] ss:$100 sm:$0x3] }
 0x4c7   :  { %v3934_v37 = vrot.slane %v3926_v26, %v7644_v29  ;;  %3924 = vst.msk [vmem:[#allocation7 + $0xc] sm:$0x3] %vm3820_vm1, %v3923_v12  ;;  %v3940_v56 = vld [vmem:[#allocation6 + $0x4b] ss:$100 sm:$0x3] }
 0x4c8   :  { %3815 = vst.msk [vmem:[#allocation6 + $0xb0] sm:$0xff] %vm215_vm0, %v3790_v63 }
 0x4c9   :  { %3941 = vst.msk [vmem:[#allocation7 + $0xe] sm:$0x3] %vm3820_vm1, %v3940_v56  ;;  %3935 = vrot.lane.b32.xlu0 %v3934_v37, %s5572_s20 }
 0x4cf   :  { %v3943_v14 = vld [vmem:[#allocation6 + $0x4d] ss:$100 sm:$0x3] }
 0x4d0   :  { %v3951_v10 = vrot.slane %v3943_v14, %v7644_v29 }
 0x4d2   :  { %3952 = vrot.lane.b32.xlu1 %v3951_v10, %s5572_s20 }
 0x4ef   :  { %v3851_v15 = vpop.permute.xlu1 %3850 }
 0x4f0   :  { %v3833_v35 = vpop.permute.xlu0 %3832  ;;  %3853 = vst.msk [vmem:[#allocation7 + $0x2] sm:$0x3] %vm3835_vm3, %v3851_v15 }
 0x4f1   :  { %3836 = vst.msk [vmem:[#allocation7] sm:$0x3] %vm3835_vm3, %v3833_v35 }
 0x507   :  { %v3868_v17 = vpop.permute.xlu0 %3867 }
 0x508   :  { %3870 = vst.msk [vmem:[#allocation7 + $0x4] sm:$0x3] %vm3835_vm3, %v3868_v17 }
 0x50b   :  { %v3885_v3 = vpop.permute.xlu1 %3884 }
 0x50c   :  { %3887 = vst.msk [vmem:[#allocation7 + $0x6] sm:$0x3] %vm3835_vm3, %v3885_v3 }
 0x523   :  { %v3919_v43 = vpop.permute.xlu1 %3918 }
 0x524   :  { %v3902_v53 = vpop.permute.xlu0 %3901  ;;  %3921 = vst.msk [vmem:[#allocation7 + $0xa] sm:$0x3] %vm3835_vm3, %v3919_v43 }
 0x525   :  { %3904 = vst.msk [vmem:[#allocation7 + $0x8] sm:$0x3] %vm3835_vm3, %v3902_v53 }
 0x53b   :  { %v3936_v19 = vpop.permute.xlu0 %3935 }
 0x53c   :  { %3938 = vst.msk [vmem:[#allocation7 + $0xc] sm:$0x3] %vm3835_vm3, %v3936_v19 }
 0x544   :  { %v3953_v21 = vpop.permute.xlu1 %3952 }
 0x545   :  { %3955 = vst.msk [vmem:[#allocation7 + $0xe] sm:$0x3] %vm3835_vm3, %v3953_v21 }
 0x546   :  { %5556 = dma.done.wait [#allocation9], 8192 }
 0x547   :  { %5557 = vsyncadd [#allocation9], 4294959104  ;;  %v5458_v40 = vld [vmem:[#allocation8 + $0x78] sm:$0xff]   ;;  %v5460_v23 = vld [vmem:[#allocation8 + $0x70] sm:$0xff]   ;;  %s5575_s27 = smov [#allocation10]  }
 0x548   :  { %v5459_v42 = vld [vmem:[#allocation8 + $0x38] sm:$0xff]   ;;  %5172 = vmatprep.subr.bf16.mxu1 %v5458_v40  ;;  %v5461_v25 = vld [vmem:[#allocation8 + $0x30] sm:$0xff]   ;;  %v5462_v28 = vld [vmem:[#allocation8 + $0x68] sm:$0xff]  }
 0x549   :  { %5173 = vmatpush3.bf16.msra.mxu1 %v5459_v42  ;;  %v5463_v13 = vld [vmem:[#allocation8 + $0x28] sm:$0xff]   ;;  %v5464_v30 = vld [vmem:[#allocation8 + $0x60] sm:$0xff]   ;;  %v5466_v33 = vld [vmem:[#allocation8 + $0x58] sm:$0xff]  }
 0x54a   :  { %5174 = vmatprep.subr.bf16.mxu1 %v5460_v23  ;;  %v5465_v32 = vld [vmem:[#allocation8 + $0x20] sm:$0xff]   ;;  %v5467_v34 = vld [vmem:[#allocation8 + $0x18] sm:$0xff]   ;;  %v5468_v20 = vld [vmem:[#allocation8 + $0x50] sm:$0xff]  }
 0x54b   :  { %v3960_v36 = vld [vmem:[#allocation7] sm:$0xff]  ;;  %v5470_v44 = vld [vmem:[#allocation8 + $0x48] sm:$0xff]   ;;  %v5472_v47 = vld [vmem:[#allocation8 + $0x40] sm:$0xff]  }
 0x54c   :  { %v3971_v38 = vrot.slane %v3960_v36, %v7644_v29  ;;  %v5469_v41 = vld [vmem:[#allocation8 + $0x10] sm:$0xff]   ;;  %v3964_v16 = vcombine.high %v3960_v36, %v3960_v36  ;;  %v5471_v45 = vld [vmem:[#allocation8 + $0x8] sm:$0xff]   ;;  %v5473_v61 = vld [vmem:[#allocation8] sm:$0xff]  }
 0x54d   :  { %5175 = vmatpush3.bf16.msra.mxu1 %v5461_v25  ;;  %v5475_v31 = vld [vmem:[#allocation8 + $0xf8] sm:$0xff]   ;;  %v5477_v48 = vld [vmem:[#allocation8 + $0xf0] sm:$0xff]   ;;  %v5479_v57 = vld [vmem:[#allocation8 + $0xe8] sm:$0xff]  }
 0x54e   :  { %5176 = vmatprep.subr.bf16.mxu1 %v5462_v28  ;;  %v3979_v27 = vcombine.high %v3971_v38, %v3971_v38  ;;  %v7708_v39 = vrot.slane %v3964_v16, %v7644_v29  ;;  %v4006_v51 = vpack.c.bf16 %v3971_v38, %v3971_v38  ;;  %v5476_v18 = vld [vmem:[#allocation8 + $0xb8] sm:$0xff]   ;;  %v5478_v54 = vld [vmem:[#allocation8 + $0xb0] sm:$0xff]   ;;  %v5480_v0 = vld [vmem:[#allocation8 + $0xa8] sm:$0xff]  }
 0x54f   :  { %v5490_v49 = vld [vmem:[#allocation8 + $0x1f8] sm:$0xff]   ;;  %v5494_v58 = vld [vmem:[#allocation8 + $0x1f0] sm:$0xff]   ;;  %v5481_v24 = vld [vmem:[#allocation8 + $0xe0] sm:$0xff]  }
 0x550   :  { %v4007_v22 = vpack.c.bf16 %v3979_v27, %v3979_v27  ;;  %v3980_v50 = vcombine.high %v7708_v39, %v7708_v39  ;;  %5238 = vmatprep.subr.bf16.mxu0 %v5490_v49  ;;  %v5492_v55 = vld [vmem:[#allocation8 + $0x1b8] sm:$0xff]   ;;  %v5496_v2 = vld [vmem:[#allocation8 + $0x1b0] sm:$0xff]   ;;  %v5498_v62 = vld [vmem:[#allocation8 + $0x1e8] sm:$0xff]   ;;  %v4008_v3 = vpack.c.bf16 %v7708_v39, %v7708_v39 }
 0x551   :  { %5177 = vmatpush3.bf16.msra.mxu1 %v5463_v13  ;;  %5239 = vmatpush3.bf16.msra.mxu0 %v5492_v55  ;;  %v5482_v1 = vld [vmem:[#allocation8 + $0xa0] sm:$0xff]   ;;  %v5500_v4 = vld [vmem:[#allocation8 + $0x1a8] sm:$0xff]   ;;  %v5483_v6 = vld [vmem:[#allocation8 + $0xd8] sm:$0xff]  }
 0x552   :  { %5178 = vmatprep.subr.bf16.mxu1 %v5464_v30  ;;  %4565 = vmatprep.mubr.bf16.mxu1 %v4007_v22  ;;  %v4009_v52 = vpack.c.bf16 %v3980_v50, %v3980_v50  ;;  %v5502_v7 = vld [vmem:[#allocation8 + $0x1e0] sm:$0xff]   ;;  %v5484_v8 = vld [vmem:[#allocation8 + $0x98] sm:$0xff]   ;;  %v5485_v59 = vld [vmem:[#allocation8 + $0xd0] sm:$0xff]  }
 0x553   :  { %5240 = vmatprep.subr.bf16.mxu0 %v5494_v58  ;;  %v5504_v9 = vld [vmem:[#allocation8 + $0x1a0] sm:$0xff]   ;;  %v5506_v60 = vld [vmem:[#allocation8 + $0x1d8] sm:$0xff]   ;;  %v5486_v46 = vld [vmem:[#allocation8 + $0x90] sm:$0xff]  }
 0x554   :  { %v5508_v11 = vld [vmem:[#allocation8 + $0x198] sm:$0xff]   ;;  %v5487_v63 = vld [vmem:[#allocation8 + $0xc8] sm:$0xff]   ;;  %v5510_v26 = vld [vmem:[#allocation8 + $0x1d0] sm:$0xff]  }
 0x555   :  { %5179 = vmatpush3.bf16.msra.mxu1 %v5465_v32  ;;  %5241 = vmatpush3.bf16.msra.mxu0 %v5496_v2  ;;  %v5488_v12 = vld [vmem:[#allocation8 + $0x88] sm:$0xff]   ;;  %v5512_v37 = vld [vmem:[#allocation8 + $0x190] sm:$0xff]   ;;  %v5489_v56 = vld [vmem:[#allocation8 + $0xc0] sm:$0xff]  }
 0x556   :  { %5180 = vmatprep.subr.bf16.mxu1 %v5466_v33  ;;  %5242 = vmatprep.subr.bf16.mxu0 %v5498_v62  ;;  %v5514_v14 = vld [vmem:[#allocation8 + $0x1c8] sm:$0xff]   ;;  %v5491_v10 = vld [vmem:[#allocation8 + $0x80] sm:$0xff]   ;;  %v5493_v35 = vld [vmem:[#allocation8 + $0x178] sm:$0xff]  }
 0x557   :  { %v5516_v15 = vld [vmem:[#allocation8 + $0x188] sm:$0xff]   ;;  %v5518_v17 = vld [vmem:[#allocation8 + $0x1c0] sm:$0xff]   ;;  %v3961_v53 = vld [vmem:[#allocation7 + $0x8] sm:$0xff] }
 0x558   :  { %v5520_v43 = vld [vmem:[#allocation8 + $0x180] sm:$0xff]   ;;  %v5495_v19 = vld [vmem:[#allocation8 + $0x138] sm:$0xff]   ;;  %v3981_v21 = vcombine.high %v3961_v53, %v3961_v53  ;;  %v3988_v40 = vrot.slane %v3961_v53, %v7644_v29  ;;  %v5497_v42 = vld [vmem:[#allocation8 + $0x170] sm:$0xff]  }
 0x559   :  { %5181 = vmatpush3.bf16.msra.mxu1 %v5467_v34  ;;  %5243 = vmatpush3.bf16.msra.mxu0 %v5500_v4  ;;  %v5499_v23 = vld [vmem:[#allocation8 + $0x130] sm:$0xff]   ;;  %v5501_v13 = vld [vmem:[#allocation8 + $0x168] sm:$0xff]   ;;  %v5505_v36 = vld [vmem:[#allocation8 + $0x160] sm:$0xff]  }
 0x55a   :  { %5182 = vmatprep.subr.bf16.mxu1 %v5468_v20  ;;  %5244 = vmatprep.subr.bf16.mxu0 %v5502_v7  ;;  %v3995_v25 = vrot.slane %v3981_v21, %v7644_v29  ;;  %v3996_v28 = vcombine.high %v3988_v40, %v3988_v40  ;;  %v5503_v34 = vld [vmem:[#allocation8 + $0x128] sm:$0xff]   ;;  %v5507_v29 = vld [vmem:[#allocation8 + $0x120] sm:$0xff]   ;;  %v5509_v38 = vld [vmem:[#allocation8 + $0x158] sm:$0xff]  }
 0x55b   :  { %v5513_v16 = vld [vmem:[#allocation8 + $0x150] sm:$0xff]   ;;  %v5519_v22 = vld [vmem:[#allocation8 + $0x108] sm:$0xff]   ;;  %v5523_v39 = vld [vmem:[#allocation8 + $0x100] sm:$0xff]  }
 0x55c   :  { %v3997_v30 = vcombine.high %v3995_v25, %v3995_v25  ;;  %v4011_v32 = vpack.c.bf16 %v3996_v28, %v3996_v28  ;;  %v4012_v33 = vpack.c.bf16 %v3995_v25, %v3995_v25  ;;  %v5515_v27 = vld [vmem:[#allocation8 + $0x110] sm:$0xff]   ;;  %v5525_v50 = vld [vmem:[%s7790_s8 + $0x30] sm:$0xff]   ;;  %v5531_v49 = vld [vmem:[%s7790_s8] sm:$0xff]  }
 0x55d   :  { %5183 = vmatpush3.bf16.msra.mxu1 %v5469_v41  ;;  %5245 = vmatpush3.bf16.msra.mxu0 %v5504_v9  ;;  %v5511_v41 = vld [vmem:[#allocation8 + $0x118] sm:$0xff]   ;;  %v5535_v53 = vld [vmem:[%s7792_s10] sm:$0xff]  }
 0x55e   :  { %5184 = vmatprep.subr.bf16.mxu1 %v5470_v44  ;;  %5246 = vmatprep.subr.bf16.mxu0 %v5506_v60  ;;  %v4013_v20 = vpack.c.bf16 %v3997_v30, %v3997_v30  ;;  %v5517_v44 = vld [vmem:[#allocation8 + $0x148] sm:$0xff]   ;;  %v5533_v55 = vld [vmem:[%s7792_s10 + $0x10] sm:$0xff]  }
 0x55f   :  { %v4967_v60 = vld [vmem:[%s7789_s7] ss:$0 sm:$0xff] }
 0x560   :  { %4685 = vmatprep.mubr.bf16.mxu0 %v4013_v20 }
 0x561   :  { %5185 = vmatpush3.bf16.msra.mxu1 %v5471_v45  ;;  %5247 = vmatpush3.bf16.msra.mxu0 %v5508_v11  ;;  %v5522_v45 = vld [vmem:[#allocation8 + $0x140] sm:$0xff]  }
 0x562   :  { %5186 = vmatprep.subr.bf16.mxu1 %v5472_v47  ;;  %5248 = vmatprep.subr.bf16.mxu0 %v5510_v26  ;;  %v4010_v47 = vpack.c.bf16 %v3988_v40, %v3988_v40 }
 0x565   :  { %5187 = vmatpush3.bf16.msra.mxu1 %v5473_v61  ;;  %5249 = vmatpush3.bf16.msra.mxu0 %v5512_v37  ;;  %v5524_v61 = vld [vmem:[%s7790_s8 + $0x38] sm:$0xff]  }
 0x566   :  { %5194 = vmatprep.subr.bf16.mxu1 %v5475_v31  ;;  %5250 = vmatprep.subr.bf16.mxu0 %v5514_v14  ;;  %v5526_v31 = vld [vmem:[%s7790_s8 + $0x28] sm:$0xff]  }
 0x568   :  { %4566 = vmatmul.mubr.bf16.vlgmr.msra.gmra.mxu1 %v4006_v51  ;;  %v5527_v51 = vld [vmem:[%s7790_s8 + $0x20] sm:$0xff]  }
 0x569   :  { %5195 = vmatpush3.bf16.msra.mxu1 %v5476_v18  ;;  %4605 = vmatprep.mubr.bf16.mxu1 %v4009_v52  ;;  %v5528_v18 = vld [vmem:[%s7790_s8 + $0x18] sm:$0xff]   ;;  %v5530_v52 = vld [vmem:[%s7790_s8 + $0x8] sm:$0xff]  }
 0x56a   :  { %5196 = vmatprep.subr.bf16.mxu1 %v5477_v48  ;;  %5251 = vmatpush3.bf16.msra.mxu0 %v5516_v15  ;;  %v5529_v48 = vld [vmem:[%s7790_s8 + $0x10] sm:$0xff]  }
 0x56b   :  { %5252 = vmatprep.subr.bf16.mxu0 %v5518_v17 }
 0x56d   :  { %5197 = vmatpush3.bf16.msra.mxu1 %v5478_v54  ;;  %v5532_v54 = vld [vmem:[%s7792_s10 + $0x18] sm:$0xff]  }
 0x56e   :  { %5198 = vmatprep.subr.bf16.mxu1 %v5479_v57  ;;  %5253 = vmatpush3.bf16.msra.mxu0 %v5520_v43  ;;  %v5534_v43 = vld [vmem:[%s7792_s10 + $0x8] sm:$0xff]   ;;  %s4897_s10 = sshll.u32 %s5575_s27, 4  ;;  %s4898_s10 = int_to_ptr.vmem [resolvable:$true] %s4897_s10 }
 0x56f   :  { %5406 = vmatprep.subr.bf16.mxu0 %v5565_v5  ;;  %p5541_p1 = scmp.lt.s32.totalorder %s4898_s10, %s4898_s10 }
 0x571   :  { %5199 = vmatpush3.bf16.msra.mxu1 %v5480_v0  ;;  %4686 = vmatmul.mubr.bf16.vlgmr.msra.gmra.mxu0 %v4012_v33 }
 0x572   :  { %5200 = vmatprep.subr.bf16.mxu1 %v5481_v24  ;;  %5414 = vmatprep.mubr.msk.bf16.mxu0 %vm5568_vm2, %v5565_v5 }
 0x573   :  { %5407 = vmatpush3.bf16.msra.mxu0 %v5532_v54 }
 0x574   :  { %5408 = vmatprep.subr.bf16.mxu0 %v5565_v5 }
 0x575   :  { %5201 = vmatpush3.bf16.msra.mxu1 %v5482_v1 }
 0x576   :  { %5202 = vmatprep.subr.bf16.mxu1 %v5483_v6 }
 0x577   :  { %5409 = vmatpush3.bf16.msra.mxu0 %v5533_v55 }
 0x578   :  { %5410 = vmatprep.subr.bf16.mxu0 %v5565_v5 }
 0x579   :  { %5203 = vmatpush3.bf16.msra.mxu1 %v5484_v8 }
 0x57a   :  { %5204 = vmatprep.subr.bf16.mxu1 %v5485_v59 }
 0x57b   :  { %5411 = vmatpush3.bf16.msra.mxu0 %v5534_v43 }
 0x57c   :  { %5412 = vmatprep.subr.bf16.mxu0 %v5565_v5 }
 0x57d   :  { %5205 = vmatpush3.bf16.msra.mxu1 %v5486_v46 }
 0x57e   :  { %5206 = vmatprep.subr.bf16.mxu1 %v5487_v63 }
 0x57f   :  { %5413 = vmatpush3.bf16.msra.mxu0 %v5535_v53 }
 0x581   :  { %5207 = vmatpush3.bf16.msra.mxu1 %v5488_v12 }
 0x582   :  { %5208 = vmatprep.subr.bf16.mxu1 %v5489_v56 }
 0x585   :  { %5209 = vmatpush3.bf16.msra.mxu1 %v5491_v10 }
 0x586   :  { %5216 = vmatprep.subr.bf16.mxu1 %v5493_v35 }
 0x588   :  { %4606 = vmatmul.mubr.bf16.vlgmr.msra.gmra.mxu1 %v4008_v3 }
 0x589   :  { %5217 = vmatpush3.bf16.msra.mxu1 %v5495_v19  ;;  %4645 = vmatprep.mubr.bf16.mxu1 %v4011_v32  ;;  %v5032_v19 = vld [vmem:[%s7791_s9] ss:$0 sm:$0xff]  ;;  %s5536_s9 = scalar_lea.vmem %s4898_s10, 32 }
 0x58a   :  { %5218 = vmatprep.subr.bf16.mxu1 %v5497_v42  ;;  %p5537_p0 = scmp.ne.s32.totalorder %s4898_s10, %s5536_s9  ;;  %p5542_p2 = scmp.lt.s32.totalorder %s5536_s9, %s5536_s9 }
 0x58c   :  { %p5543_p3 = por %p5542_p2, %p5541_p1 }
 0x58d   :  { %5219 = vmatpush3.bf16.msra.mxu1 %v5499_v23 }
 0x58e   :  { %5220 = vmatprep.subr.bf16.mxu1 %v5501_v13  ;;  %p5544_p4 = pnand %p5543_p3, %p5537_p0 }
 0x591   :  { %5221 = vmatpush3.bf16.msra.mxu1 %v5503_v34 }
 0x592   :  { %5222 = vmatprep.subr.bf16.mxu1 %v5505_v36 }
 0x595   :  { %5223 = vmatpush3.bf16.msra.mxu1 %v5507_v29 }
 0x596   :  { %5224 = vmatprep.subr.bf16.mxu1 %v5509_v38 }
 0x599   :  { %5225 = vmatpush3.bf16.msra.mxu1 %v5511_v41 }
 0x59a   :  { %5226 = vmatprep.subr.bf16.mxu1 %v5513_v16 }
 0x59d   :  { %5227 = vmatpush3.bf16.msra.mxu1 %v5515_v27 }
 0x59e   :  { %5228 = vmatprep.subr.bf16.mxu1 %v5517_v44 }
 0x5a1   :  { %5229 = vmatpush3.bf16.msra.mxu1 %v5519_v22 }
 0x5a2   :  { %5230 = vmatprep.subr.bf16.mxu1 %v5522_v45 }
 0x5a5   :  { %5231 = vmatpush3.bf16.msra.mxu1 %v5523_v39 }
 0x5a6   :  { %5386 = vmatprep.subr.bf16.mxu1 %v5565_v5 }
 0x5a8   :  { %4646 = vmatmul.mubr.bf16.vlgmr.msra.gmra.mxu1 %v4010_v47 }
 0x5a9   :  { %5402 = vmatprep.mubr.msk.bf16.mxu1 %vm5568_vm2, %v5565_v5  ;;  %5387 = vmatpush3.bf16.msra.mxu1 %v5524_v61 }
 0x5aa   :  { %5388 = vmatprep.subr.bf16.mxu1 %v5565_v5 }
 0x5ad   :  { %5389 = vmatpush3.bf16.msra.mxu1 %v5525_v50 }
 0x5ae   :  { %5390 = vmatprep.subr.bf16.mxu1 %v5565_v5 }
 0x5b1   :  { %5391 = vmatpush3.bf16.msra.mxu1 %v5526_v31 }
 0x5b2   :  { %5392 = vmatprep.subr.bf16.mxu1 %v5565_v5 }
 0x5b5   :  { %5393 = vmatpush3.bf16.msra.mxu1 %v5527_v51 }
 0x5b6   :  { %5394 = vmatprep.subr.bf16.mxu1 %v5565_v5 }
 0x5b9   :  { %5395 = vmatpush3.bf16.msra.mxu1 %v5528_v18 }
 0x5ba   :  { %5396 = vmatprep.subr.bf16.mxu1 %v5565_v5 }
 0x5bd   :  { %5397 = vmatpush3.bf16.msra.mxu1 %v5529_v48 }
 0x5be   :  { %5398 = vmatprep.subr.bf16.mxu1 %v5565_v5 }
 0x5c1   :  { %5399 = vmatpush3.bf16.msra.mxu1 %v5530_v52 }
 0x5c2   :  { %5400 = vmatprep.subr.bf16.mxu1 %v5565_v5  ;;  %v5041_v5 = vld [vmem:[%s7793_s11] ss:$0 sm:$0xff] }
 0x5c5   :  { %5401 = vmatpush3.bf16.msra.mxu1 %v5531_v49 }
 0x628   :  { %v5188_v57 = vpop.f32.mrf.mxu1 }
 0x62a   :  { %v5189_v58 = vpop.f32.mrf.mxu1 }
 0x62b   :  { %v5190_v59 = vadd.f32 %v5189_v58, %v5188_v57 }
 0x62c   :  { %v5191_v0 = vpop.f32.mrf.mxu1 }
 0x62d   :  { %v4568_v63 = vadd.f32 %v5190_v59, %v4967_v60 }
 0x62e   :  { %v5192_v2 = vpop.f32.mrf.mxu1 }
 0x631   :  { %v5254_v6 = vpop.f32.mrf.mxu0 }
 0x633   :  { %v5255_v7 = vpop.f32.mrf.mxu0 }
 0x634   :  { %v5256_v14 = vadd.f32 %v5255_v7, %v5254_v6 }
 0x635   :  { %v5257_v8 = vpop.f32.mrf.mxu0 }
 0x637   :  { %v5258_v9 = vpop.f32.mrf.mxu0 }
 0x648   :  { %v5210_v24 = vpop.f32.mrf.mxu1 }
 0x64a   :  { %v5211_v62 = vpop.f32.mrf.mxu1 }
 0x64b   :  { %v5212_v46 = vadd.f32 %v5211_v62, %v5210_v24 }
 0x64c   :  { %v5213_v1 = vpop.f32.mrf.mxu1 }
 0x64d   :  { %v4608_v12 = vadd.f32 %v5212_v46, %v4568_v63 }
 0x64e   :  { %v5214_v4 = vpop.f32.mrf.mxu1 }
 0x668   :  { %v5232_v11 = vpop.f32.mrf.mxu1 }
 0x66a   :  { %v5233_v26 = vpop.f32.mrf.mxu1 }
 0x66b   :  { %v5234_v37 = vadd.f32 %v5233_v26, %v5232_v11 }
 0x66c   :  { %v5235_v56 = vpop.f32.mrf.mxu1 }
 0x66d   :  { %v4648_v10 = vadd.f32 %v5234_v37, %v4608_v12 }
 0x66e   :  { %v5236_v15 = vpop.f32.mrf.mxu1 }
 0x66f   :  { %v4688_v35 = vadd.f32 %v5256_v14, %v4648_v10 }
 0x671   :  { %v4693_v17 = vmax.f32 %v4688_v35, 0.0 }
 0x673   :  { %v4694_v3 = vpack.c.bf16 %v4693_v17, %v4693_v17 }
 0x675   :  { %5403 = vmatmul.mubr.bf16.vlgmr.msra.gmra.mxu1 %v4694_v3 }
 0x735   :  { %v4800_v21 = vpop.f32.mrf.mxu1 }
 0x736   :  { %v4801_v40 = vadd.f32 %v5032_v19, %v4800_v21 }
 0x737   :  { %v5404_v42 = vpop.f32.mrf.mxu1 }
 0x738   :  { %v4806_v23 = vmax.f32 %v4801_v40, 0.0 }
 0x739   :  { %v4803_v25 = vpop.f32.mrf.mxu1 }
 0x73a   :  { %v4807_v28 = vpack.c.bf16 %v4806_v23, %v4806_v23 }
 0x73b   :  { %v5405_v13 = vpop.f32.mrf.mxu1 }
 0x73c   :  { %5415 = vmatmul.mubr.msk.bf16.vlgmr.msra.gmra.mxu0 %vm215_vm0, %v4807_v28 }
 0x7fc   :  { %v4884_v30 = vpop.f32.mrf.mxu0 }
 0x7fd   :  { %v4885_v32 = vadd.f32 %v5041_v5, %v4884_v30 }
 0x7fe   :  { %v5416_v33 = vpop.f32.mrf.mxu0 }
 0x7ff   :  { %4890 = vst.msk [vmem:[#allocation10] sm:$0x3] %vm3820_vm1, %v4885_v32 }
 0x800   :  { %v4887_v34 = vpop.f32.mrf.mxu0 }
 0x801   :  { %5547 = shalt.err (!%p5544_p4)
}
 0x802   :  { %4900 = dma.vmem_to_hbm [thread:$0]  %s4898_s10, 32, %s7794_s12, [#allocation11]   ;;  %v5417_v20 = vpop.f32.mrf.mxu0 }
 0x803   :  { %5558 = dma.done.wait [#allocation11], 32  }
 0x804   :  { %5559 = vsyncadd [#allocation11], 4294967264 }
 0x805   :  { %4904 = vsyncpa [#allocation11], 1 }
 0x806   :  { %4905 = vsyncmov [#allocation9] }
 0x809   :  { %s4906_s11 = vpop.sfrf %4905 }
 0x80a   :  { %p5047_p5 = scmp.ne.s32.totalorder %s4906_s11, 0 }
 0x80c   :  { %4910 = shalt.err (%p5047_p5)  }

</bundles_post_ra>
